<compile_context>
chip_gen: v6e
topology: v6e:2x2x1
jax: 0.10.0
libtpu: 0.0.40
codegen_flags: <defaults>
</compile_context>

<pallas_src>
import numpy as np
import jax
import jax.numpy as jnp
from jax.experimental import pallas as pl
from jax.experimental.pallas import tpu as pltpu

# ----------------------------- configuration --------------------------------
K_DEG = 1
L_DEG = 1
C_IN = 4
C_OUT = 4
J_SIZE = K_DEG + L_DEG - abs(K_DEG - L_DEG) + 1      # 3
DIM_L = 2 * L_DEG + 1                                # 3
DIM_K = 2 * K_DEG + 1                                # 3
LK = DIM_L * DIM_K                                   # 9
OI = C_OUT * C_IN                                    # 16
OILK = OI * LK                                       # 144  (lane-dense output width)
R_SIZE = J_SIZE * OI                                 # 48
HID = 16
EPS = 1e-5

N_NODES = 16


# ------------------------------- helpers -------------------------------------
def _layernorm(h, g, b):
    # two-pass LN (mu, then E[(h-mu)^2]) -- matches PyTorch LayerNorm numerics
    mu = jnp.mean(h, axis=-1, keepdims=True)
    d = h - mu
    var = jnp.mean(d * d, axis=-1, keepdims=True)
    return d * jax.lax.rsqrt(var + EPS) * g + b


def _lane_tile(x, reps):
    # replicate x `reps` times along the lane (last) axis via log2 doubling;
    # lowers to cheap minor-dim concats, no gathers / 3-D relayouts.
    out = x
    built = 1
    while built * 2 <= reps:
        out = jnp.concatenate([out, out], axis=-1)
        built *= 2
    if built < reps:
        out = jnp.concatenate([out] + [x] * (reps - built), axis=-1)
    return out


# ------------------------------- kernel -------------------------------------
def wlayer_kernel(x_ref, wj_ref,
                  w1_ref, b1_ref, g1_ref, be1_ref,
                  w2_ref, b2_ref, g2_ref, be2_ref,
                  w3e_ref, b3e_ref,
                  out_ref):
    # x_ref   : (tile_e, c_in+1)
    # wj_ref  : (tile_e, J*LK)  = 27 cols  (un-expanded w_j, column order j*LK + lk)
    # w3e_ref : (J, HID, OI*LK) lk-expanded last-Linear weights, per-j slab
    # b3e_ref : (J, 1,   OI*LK)
    # out_ref : (tile_e, OI*LK) lane-dense (column order oi*LK + lk)
    x = x_ref[...]

    # radial MLP: Linear -> LayerNorm -> ReLU -> Linear -> LayerNorm -> ReLU
    h = jnp.dot(x, w1_ref[...], preferred_element_type=jnp.float32) + b1_ref[...]
    h = jnp.maximum(_layernorm(h, g1_ref[...], be1_ref[...]), 0.0)
    h = jnp.dot(h, w2_ref[...], preferred_element_type=jnp.float32) + b2_ref[...]
    h = jnp.maximum(_layernorm(h, g2_ref[...], be2_ref[...]), 0.0)

    # last Linear + einsum('ejoi,ejlk->eoilk') fused as a per-j sum of 144-wide slabs:
    #   out[:, oi*LK+lk] = sum_j (h @ w3e[j] + b3e[j])[:, oi*LK+lk] * w_j[:, j*LK+lk]
    wj = wj_ref[...]                                   # (tile_e, 27)
    acc = None
    for j in range(J_SIZE):                            # static unroll, J=3
        # lk-expanded last Linear for slab j: (tile_e,16) @ (16,144) -> (tile_e,144)
        r_j = jnp.dot(h, w3e_ref[j], preferred_element_type=jnp.float32) + b3e_ref[j]
        # in-kernel oi-replication of w_j (9 -> 144 lanes) via lane doubling
        wj_e = _lane_tile(wj[:, j * LK:(j + 1) * LK], OI)
        term = r_j * wj_e
        acc = term if acc is None else acc + term
    out_ref[...] = acc                                 # (tile_e, 144) lane-dense store


# ------------------------------- wrapper -------------------------------------
def prepare_params(params):
    """One-time param prep (hoisted out of the forward call).

    Folds the (2l+1)(2k+1) replication of R into the last Linear and splits it
    per j-slab so every in-kernel slab starts at lane 0:
      w3e[j, h, oi*LK + lk] = w3[h, j*OI + oi]
    """
    w1, b1, g1, be1, w2, b2, g2, be2, w3, b3 = params
    w3e = jnp.repeat(w3, LK, axis=1).reshape(HID, J_SIZE, OILK).transpose(1, 0, 2)
    b3e = jnp.repeat(b3, LK, axis=1).reshape(1, J_SIZE, OILK).transpose(1, 0, 2)
    return (w1, b1, g1, be1, w2, b2, g2, be2, w3e, b3e)


def wlayer_forward(input_vector, w_j, kparams, *, tile_e=512):
    """input_vector: (E, c_in+1); w_j: (E, J, 2l+1, 2k+1); kparams from prepare_params."""
    E = input_vector.shape[0]
    wj2 = w_j.reshape(E, J_SIZE * LK)                  # (E, 27), un-expanded (16x less HBM)

    # row tile: multiple of 8, clamped to the (rounded-up) edge count; pad the tail.
    # NOTE(v7x): for large E pick tile_e <= E//2 so the parallel grid axis has >=2
    # steps and both TensorCores are fed; budget VMEM against 64 MiB (32 MiB scoped).
    assert tile_e % 8 == 0
    te = min(tile_e, -(-E // 8) * 8)
    e_pad = -(-E // te) * te
    if e_pad != E:
        input_vector = jnp.pad(input_vector, ((0, e_pad - E), (0, 0)))
        wj2 = jnp.pad(wj2, ((0, e_pad - E), (0, 0)))

    param_specs = [
        pl.BlockSpec(p.shape, lambda i, nd=p.ndim: (0,) * nd) for p in kparams
    ]

    out = pl.pallas_call(
        wlayer_kernel,
        out_shape=jax.ShapeDtypeStruct((e_pad, OILK), jnp.float32),
        grid_spec=pltpu.PrefetchScalarGridSpec(
            num_scalar_prefetch=0,
            grid=(e_pad // te,),
            in_specs=[pl.BlockSpec((te, C_IN + 1), lambda i: (i, 0)),
                      pl.BlockSpec((te, J_SIZE * LK), lambda i: (i, 0))]
                     + param_specs,
            out_specs=pl.BlockSpec((te, OILK), lambda i: (i, 0)),
        ),
        compiler_params=pltpu.CompilerParams(dimension_semantics=("parallel",)),
    )(input_vector, wj2, *kparams)

    if e_pad != E:
        out = out[:E]
    # lane-dense (E, OI*LK) -> PyTorch 'eoilk' layout (glue)
    return out.reshape(E, C_OUT, C_IN, DIM_L, DIM_K)


# --------------------------- parameter init ----------------------------------
def init_params(key):
    def xavier_normal(k, fan_out, fan_in):
        std = np.sqrt(2.0 / (fan_in + fan_out))
        # stored transposed for the kernel: (in, out)
        return (jax.random.normal(k, (fan_out, fan_in), jnp.float32) * std).T

    def bias_uniform(k, fan_in, fan_out):
        bound = 1.0 / np.sqrt(fan_in)
        return jax.random.uniform(k, (1, fan_out), jnp.float32, -bound, bound)

    ks = jax.random.split(key, 6)
    w1 = xavier_normal(ks[0], HID, C_IN + 1)          # (c_in+1, 16)
    b1 = bias_uniform(ks[1], C_IN + 1, HID)           # (1, 16)
    g1 = jnp.ones((1, HID), jnp.float32)
    be1 = jnp.zeros((1, HID), jnp.float32)
    w2 = xavier_normal(ks[2], HID, HID)               # (16, 16)
    b2 = bias_uniform(ks[3], HID, HID)                # (1, 16)
    g2 = jnp.ones((1, HID), jnp.float32)
    be2 = jnp.zeros((1, HID), jnp.float32)
    w3 = xavier_normal(ks[4], R_SIZE, HID)            # (16, 48)
    b3 = bias_uniform(ks[5], HID, R_SIZE)             # (1, 48)
    return (w1, b1, g1, be1, w2, b2, g2, be2, w3, b3)


# ------------------------------ reference ------------------------------------
def reference(input_vector, w_j, params):
    hp = jax.lax.Precision.HIGHEST
    w1, b1, g1, be1, w2, b2, g2, be2, w3, b3 = params
    h = jnp.dot(input_vector, w1, precision=hp) + b1
    h = jax.nn.relu(_layernorm(h, g1, be1))
    h = jnp.dot(h, w2, precision=hp) + b2
    h = jax.nn.relu(_layernorm(h, g2, be2))
    R = (jnp.dot(h, w3, precision=hp) + b3).reshape(-1, J_SIZE, C_OUT, C_IN)
    return jnp.einsum('ejoi,ejlk->eoilk', R, w_j, precision=hp)


# --------------------------------- main ---------------------------------------
if __name__ == "__main__":
    kp, kdata1, kdata2 = jax.random.split(jax.random.PRNGKey(0), 3)

    params = init_params(kp)
    kparams = prepare_params(params)     # one-time glue, hoisted out of forward

    # synthetic graph data (prep_input glue, like pc.graph.edges() / edata['dist'])
    def make_edge_data(n_edges, key):
        kf, kd, ku, kv, kw = jax.random.split(key, 5)
        u = jax.random.randint(ku, (n_edges,), 0, N_NODES)
        v = jax.random.randint(kv, (n_edges,), 0, N_NODES)
        f0 = jax.random.normal(kf, (N_NODES, C_IN, 1), jnp.float32)   # degree-0 features
        dist = jax.random.uniform(kd, (n_edges,), jnp.float32)
        w_j = jax.random.normal(kw, (n_edges, J_SIZE, DIM_L, DIM_K), jnp.float32)
        zero = jnp.sum(f0[u] * f0[v], axis=2)                         # (E, c_in)
        input_vector = jnp.concatenate([zero, dist[:, None]], axis=1) # (E, c_in+1)
        return input_vector, w_j

    # case 1: E=128 -> single grid step (tile clamps from 512 down to 128)
    iv1, wj1 = make_edge_data(128, kdata1)
    out1 = jax.block_until_ready(wlayer_forward(iv1, wj1, kparams))
    ref1 = jax.block_until_ready(reference(iv1, wj1, params))
    assert out1.shape == (128, C_OUT, C_IN, DIM_L, DIM_K)
    np.testing.assert_allclose(np.asarray(out1), np.asarray(ref1), rtol=1e-4, atol=1e-4)

    # case 2: ragged E=200 with tile_e=64 -> 4-step parallel grid + padded tail
    iv2, wj2 = make_edge_data(200, kdata2)
    out2 = jax.block_until_ready(wlayer_forward(iv2, wj2, kparams, tile_e=64))
    ref2 = jax.block_until_ready(reference(iv2, wj2, params))
    assert out2.shape == (200, C_OUT, C_IN, DIM_L, DIM_K)
    np.testing.assert_allclose(np.asarray(out2), np.asarray(ref2), rtol=1e-4, atol=1e-4)

    print("KERNEL_OK")
</pallas_src>

<mosaic_0001>
module attributes {stable_mosaic.version = 11 : i64} {
  func.func @wlayer_kernel(%arg0: i32, %arg1: memref<128x5xf32, #tpu.memory_space<vmem>>, %arg2: memref<128x27xf32, #tpu.memory_space<vmem>>, %arg3: memref<5x16xf32, #tpu.memory_space<vmem>>, %arg4: memref<1x16xf32, #tpu.memory_space<vmem>>, %arg5: memref<1x16xf32, #tpu.memory_space<vmem>>, %arg6: memref<1x16xf32, #tpu.memory_space<vmem>>, %arg7: memref<16x16xf32, #tpu.memory_space<vmem>>, %arg8: memref<1x16xf32, #tpu.memory_space<vmem>>, %arg9: memref<1x16xf32, #tpu.memory_space<vmem>>, %arg10: memref<1x16xf32, #tpu.memory_space<vmem>>, %arg11: memref<3x16x144xf32, #tpu.memory_space<vmem>>, %arg12: memref<3x1x144xf32, #tpu.memory_space<vmem>>, %arg13: memref<128x144xf32, #tpu.memory_space<vmem>>) attributes {dimension_semantics = [#tpu.dimension_semantics<parallel>], iteration_bounds = array<i64: 1>, scalar_prefetch = 0 : i64, scratch_operands = 0 : i64, tpu.core_type = #tpu.core_type<tc>, window_params = [{transform_indices = @transform_0, window_bounds = array<i64: 128, 5>}, {transform_indices = @transform_1, window_bounds = array<i64: 128, 27>}, {pipeline_mode = #tpu.pipeline_mode<synchronous>, transform_indices = @transform_2, window_bounds = array<i64: 5, 16>}, {pipeline_mode = #tpu.pipeline_mode<synchronous>, transform_indices = @transform_3, window_bounds = array<i64: 1, 16>}, {pipeline_mode = #tpu.pipeline_mode<synchronous>, transform_indices = @transform_4, window_bounds = array<i64: 1, 16>}, {pipeline_mode = #tpu.pipeline_mode<synchronous>, transform_indices = @transform_5, window_bounds = array<i64: 1, 16>}, {pipeline_mode = #tpu.pipeline_mode<synchronous>, transform_indices = @transform_6, window_bounds = array<i64: 16, 16>}, {pipeline_mode = #tpu.pipeline_mode<synchronous>, transform_indices = @transform_7, window_bounds = array<i64: 1, 16>}, {pipeline_mode = #tpu.pipeline_mode<synchronous>, transform_indices = @transform_8, window_bounds = array<i64: 1, 16>}, {pipeline_mode = #tpu.pipeline_mode<synchronous>, transform_indices = @transform_9, window_bounds = array<i64: 1, 16>}, {pipeline_mode = #tpu.pipeline_mode<synchronous>, transform_indices = @transform_10, window_bounds = array<i64: 3, 16, 144>}, {pipeline_mode = #tpu.pipeline_mode<synchronous>, transform_indices = @transform_11, window_bounds = array<i64: 3, 1, 144>}, {transform_indices = @transform_12, window_bounds = array<i64: 128, 144>}]} {
    %c0 = arith.constant 0 : index
    %c0_0 = arith.constant 0 : index
    %0 = vector.load %arg1[%c0, %c0_0] : memref<128x5xf32, #tpu.memory_space<vmem>>, vector<128x5xf32>
    %c0_1 = arith.constant 0 : index
    %c0_2 = arith.constant 0 : index
    %1 = vector.load %arg3[%c0_1, %c0_2] : memref<5x16xf32, #tpu.memory_space<vmem>>, vector<5x16xf32>
    %cst = arith.constant dense<0.000000e+00> : vector<128x16xf32>
    %2 = tpu.matmul %0, %1, %cst {dimension_numbers = #tpu.dot_dimension_numbers<[1], [0], [0], [1], [0, 0, 1, 1], [], []>} : vector<128x5xf32>, vector<5x16xf32>, vector<128x16xf32> -> vector<128x16xf32>
    %c0_3 = arith.constant 0 : index
    %c0_4 = arith.constant 0 : index
    %3 = vector.load %arg4[%c0_3, %c0_4] : memref<1x16xf32, #tpu.memory_space<vmem>>, vector<1x16xf32>
    %4 = vector.broadcast %3 : vector<1x16xf32> to vector<128x16xf32>
    %5 = arith.addf %2, %4 : vector<128x16xf32>
    %c0_5 = arith.constant 0 : index
    %c0_6 = arith.constant 0 : index
    %6 = vector.load %arg5[%c0_5, %c0_6] : memref<1x16xf32, #tpu.memory_space<vmem>>, vector<1x16xf32>
    %c0_7 = arith.constant 0 : index
    %c0_8 = arith.constant 0 : index
    %7 = vector.load %arg6[%c0_7, %c0_8] : memref<1x16xf32, #tpu.memory_space<vmem>>, vector<1x16xf32>
    %cst_9 = arith.constant dense<0.000000e+00> : vector<128xf32>
    %8 = vector.multi_reduction <add>, %5, %cst_9 [1] : vector<128x16xf32> to vector<128xf32>
    %9 = vector.shape_cast %8 : vector<128xf32> to vector<128x1xf32>
    %cst_10 = arith.constant 1.600000e+01 : f32
    %10 = vector.broadcast %cst_10 : f32 to vector<128x1xf32>
    %11 = arith.divf %9, %10 : vector<128x1xf32>
    %12 = vector.broadcast %11 : vector<128x1xf32> to vector<128x16xf32>
    %13 = arith.subf %5, %12 : vector<128x16xf32>
    %14 = arith.mulf %13, %13 : vector<128x16xf32>
    %cst_11 = arith.constant dense<0.000000e+00> : vector<128xf32>
    %15 = vector.multi_reduction <add>, %14, %cst_11 [1] : vector<128x16xf32> to vector<128xf32>
    %16 = vector.shape_cast %15 : vector<128xf32> to vector<128x1xf32>
    %cst_12 = arith.constant 1.600000e+01 : f32
    %17 = vector.broadcast %cst_12 : f32 to vector<128x1xf32>
    %18 = arith.divf %16, %17 : vector<128x1xf32>
    %cst_13 = arith.constant 9.99999974E-6 : f32
    %19 = vector.broadcast %cst_13 : f32 to vector<128x1xf32>
    %20 = arith.addf %18, %19 : vector<128x1xf32>
    %21 = math.rsqrt %20 : vector<128x1xf32>
    %22 = vector.broadcast %21 : vector<128x1xf32> to vector<128x16xf32>
    %23 = arith.mulf %13, %22 : vector<128x16xf32>
    %24 = vector.broadcast %6 : vector<1x16xf32> to vector<128x16xf32>
    %25 = arith.mulf %23, %24 : vector<128x16xf32>
    %26 = vector.broadcast %7 : vector<1x16xf32> to vector<128x16xf32>
    %27 = arith.addf %25, %26 : vector<128x16xf32>
    %cst_14 = arith.constant 0.000000e+00 : f32
    %28 = vector.broadcast %cst_14 : f32 to vector<128x16xf32>
    %29 = arith.maximumf %27, %28 : vector<128x16xf32>
    %c0_15 = arith.constant 0 : index
    %c0_16 = arith.constant 0 : index
    %30 = vector.load %arg7[%c0_15, %c0_16] : memref<16x16xf32, #tpu.memory_space<vmem>>, vector<16x16xf32>
    %cst_17 = arith.constant dense<0.000000e+00> : vector<128x16xf32>
    %31 = tpu.matmul %29, %30, %cst_17 {dimension_numbers = #tpu.dot_dimension_numbers<[1], [0], [0], [1], [0, 0, 1, 1], [], []>} : vector<128x16xf32>, vector<16x16xf32>, vector<128x16xf32> -> vector<128x16xf32>
    %c0_18 = arith.constant 0 : index
    %c0_19 = arith.constant 0 : index
    %32 = vector.load %arg8[%c0_18, %c0_19] : memref<1x16xf32, #tpu.memory_space<vmem>>, vector<1x16xf32>
    %33 = vector.broadcast %32 : vector<1x16xf32> to vector<128x16xf32>
    %34 = arith.addf %31, %33 : vector<128x16xf32>
    %c0_20 = arith.constant 0 : index
    %c0_21 = arith.constant 0 : index
    %35 = vector.load %arg9[%c0_20, %c0_21] : memref<1x16xf32, #tpu.memory_space<vmem>>, vector<1x16xf32>
    %c0_22 = arith.constant 0 : index
    %c0_23 = arith.constant 0 : index
    %36 = vector.load %arg10[%c0_22, %c0_23] : memref<1x16xf32, #tpu.memory_space<vmem>>, vector<1x16xf32>
    %cst_24 = arith.constant dense<0.000000e+00> : vector<128xf32>
    %37 = vector.multi_reduction <add>, %34, %cst_24 [1] : vector<128x16xf32> to vector<128xf32>
    %38 = vector.shape_cast %37 : vector<128xf32> to vector<128x1xf32>
    %cst_25 = arith.constant 1.600000e+01 : f32
    %39 = vector.broadcast %cst_25 : f32 to vector<128x1xf32>
    %40 = arith.divf %38, %39 : vector<128x1xf32>
    %41 = vector.broadcast %40 : vector<128x1xf32> to vector<128x16xf32>
    %42 = arith.subf %34, %41 : vector<128x16xf32>
    %43 = arith.mulf %42, %42 : vector<128x16xf32>
    %cst_26 = arith.constant dense<0.000000e+00> : vector<128xf32>
    %44 = vector.multi_reduction <add>, %43, %cst_26 [1] : vector<128x16xf32> to vector<128xf32>
    %45 = vector.shape_cast %44 : vector<128xf32> to vector<128x1xf32>
    %cst_27 = arith.constant 1.600000e+01 : f32
    %46 = vector.broadcast %cst_27 : f32 to vector<128x1xf32>
    %47 = arith.divf %45, %46 : vector<128x1xf32>
    %cst_28 = arith.constant 9.99999974E-6 : f32
    %48 = vector.broadcast %cst_28 : f32 to vector<128x1xf32>
    %49 = arith.addf %47, %48 : vector<128x1xf32>
    %50 = math.rsqrt %49 : vector<128x1xf32>
    %51 = vector.broadcast %50 : vector<128x1xf32> to vector<128x16xf32>
    %52 = arith.mulf %42, %51 : vector<128x16xf32>
    %53 = vector.broadcast %35 : vector<1x16xf32> to vector<128x16xf32>
    %54 = arith.mulf %52, %53 : vector<128x16xf32>
    %55 = vector.broadcast %36 : vector<1x16xf32> to vector<128x16xf32>
    %56 = arith.addf %54, %55 : vector<128x16xf32>
    %cst_29 = arith.constant 0.000000e+00 : f32
    %57 = vector.broadcast %cst_29 : f32 to vector<128x16xf32>
    %58 = arith.maximumf %56, %57 : vector<128x16xf32>
    %c0_30 = arith.constant 0 : index
    %c0_31 = arith.constant 0 : index
    %59 = vector.load %arg2[%c0_30, %c0_31] : memref<128x27xf32, #tpu.memory_space<vmem>>, vector<128x27xf32>
    %c0_32 = arith.constant 0 : index
    %c0_33 = arith.constant 0 : index
    %c0_34 = arith.constant 0 : index
    %60 = vector.load %arg11[%c0_32, %c0_33, %c0_34] : memref<3x16x144xf32, #tpu.memory_space<vmem>>, vector<1x16x144xf32>
    %61 = vector.shape_cast %60 : vector<1x16x144xf32> to vector<16x144xf32>
    %cst_35 = arith.constant dense<0.000000e+00> : vector<128x144xf32>
    %62 = tpu.matmul %58, %61, %cst_35 {dimension_numbers = #tpu.dot_dimension_numbers<[1], [0], [0], [1], [0, 0, 1, 1], [], []>} : vector<128x16xf32>, vector<16x144xf32>, vector<128x144xf32> -> vector<128x144xf32>
    %c0_36 = arith.constant 0 : index
    %c0_37 = arith.constant 0 : index
    %c0_38 = arith.constant 0 : index
    %63 = vector.load %arg12[%c0_36, %c0_37, %c0_38] : memref<3x1x144xf32, #tpu.memory_space<vmem>>, vector<1x1x144xf32>
    %64 = vector.shape_cast %63 : vector<1x1x144xf32> to vector<1x144xf32>
    %65 = vector.broadcast %64 : vector<1x144xf32> to vector<128x144xf32>
    %66 = arith.addf %62, %65 : vector<128x144xf32>
    %67 = vector.extract_strided_slice %59 {offsets = [0, 0], sizes = [128, 9], strides = [1, 1]} : vector<128x27xf32> to vector<128x9xf32>
    %68 = tpu.concatenate %67, %67 in 1 : vector<128x9xf32>, vector<128x9xf32> -> vector<128x18xf32>
    %69 = tpu.concatenate %68, %68 in 1 : vector<128x18xf32>, vector<128x18xf32> -> vector<128x36xf32>
    %70 = tpu.concatenate %69, %69 in 1 : vector<128x36xf32>, vector<128x36xf32> -> vector<128x72xf32>
    %71 = tpu.concatenate %70, %70 in 1 : vector<128x72xf32>, vector<128x72xf32> -> vector<128x144xf32>
    %72 = arith.mulf %66, %71 : vector<128x144xf32>
    %c1 = arith.constant 1 : index
    %c0_39 = arith.constant 0 : index
    %c0_40 = arith.constant 0 : index
    %73 = vector.load %arg11[%c1, %c0_39, %c0_40] : memref<3x16x144xf32, #tpu.memory_space<vmem>>, vector<1x16x144xf32>
    %74 = vector.shape_cast %73 : vector<1x16x144xf32> to vector<16x144xf32>
    %cst_41 = arith.constant dense<0.000000e+00> : vector<128x144xf32>
    %75 = tpu.matmul %58, %74, %cst_41 {dimension_numbers = #tpu.dot_dimension_numbers<[1], [0], [0], [1], [0, 0, 1, 1], [], []>} : vector<128x16xf32>, vector<16x144xf32>, vector<128x144xf32> -> vector<128x144xf32>
    %c1_42 = arith.constant 1 : index
    %c0_43 = arith.constant 0 : index
    %c0_44 = arith.constant 0 : index
    %76 = vector.load %arg12[%c1_42, %c0_43, %c0_44] : memref<3x1x144xf32, #tpu.memory_space<vmem>>, vector<1x1x144xf32>
    %77 = vector.shape_cast %76 : vector<1x1x144xf32> to vector<1x144xf32>
    %78 = vector.broadcast %77 : vector<1x144xf32> to vector<128x144xf32>
    %79 = arith.addf %75, %78 : vector<128x144xf32>
    %80 = vector.extract_strided_slice %59 {offsets = [0, 9], sizes = [128, 9], strides = [1, 1]} : vector<128x27xf32> to vector<128x9xf32>
    %81 = tpu.concatenate %80, %80 in 1 : vector<128x9xf32>, vector<128x9xf32> -> vector<128x18xf32>
    %82 = tpu.concatenate %81, %81 in 1 : vector<128x18xf32>, vector<128x18xf32> -> vector<128x36xf32>
    %83 = tpu.concatenate %82, %82 in 1 : vector<128x36xf32>, vector<128x36xf32> -> vector<128x72xf32>
    %84 = tpu.concatenate %83, %83 in 1 : vector<128x72xf32>, vector<128x72xf32> -> vector<128x144xf32>
    %85 = arith.mulf %79, %84 : vector<128x144xf32>
    %86 = arith.addf %72, %85 : vector<128x144xf32>
    %c2 = arith.constant 2 : index
    %c0_45 = arith.constant 0 : index
    %c0_46 = arith.constant 0 : index
    %87 = vector.load %arg11[%c2, %c0_45, %c0_46] : memref<3x16x144xf32, #tpu.memory_space<vmem>>, vector<1x16x144xf32>
    %88 = vector.shape_cast %87 : vector<1x16x144xf32> to vector<16x144xf32>
    %cst_47 = arith.constant dense<0.000000e+00> : vector<128x144xf32>
    %89 = tpu.matmul %58, %88, %cst_47 {dimension_numbers = #tpu.dot_dimension_numbers<[1], [0], [0], [1], [0, 0, 1, 1], [], []>} : vector<128x16xf32>, vector<16x144xf32>, vector<128x144xf32> -> vector<128x144xf32>
    %c2_48 = arith.constant 2 : index
    %c0_49 = arith.constant 0 : index
    %c0_50 = arith.constant 0 : index
    %90 = vector.load %arg12[%c2_48, %c0_49, %c0_50] : memref<3x1x144xf32, #tpu.memory_space<vmem>>, vector<1x1x144xf32>
    %91 = vector.shape_cast %90 : vector<1x1x144xf32> to vector<1x144xf32>
    %92 = vector.broadcast %91 : vector<1x144xf32> to vector<128x144xf32>
    %93 = arith.addf %89, %92 : vector<128x144xf32>
    %94 = vector.extract_strided_slice %59 {offsets = [0, 18], sizes = [128, 9], strides = [1, 1]} : vector<128x27xf32> to vector<128x9xf32>
    %95 = tpu.concatenate %94, %94 in 1 : vector<128x9xf32>, vector<128x9xf32> -> vector<128x18xf32>
    %96 = tpu.concatenate %95, %95 in 1 : vector<128x18xf32>, vector<128x18xf32> -> vector<128x36xf32>
    %97 = tpu.concatenate %96, %96 in 1 : vector<128x36xf32>, vector<128x36xf32> -> vector<128x72xf32>
    %98 = tpu.concatenate %97, %97 in 1 : vector<128x72xf32>, vector<128x72xf32> -> vector<128x144xf32>
    %99 = arith.mulf %93, %98 : vector<128x144xf32>
    %100 = arith.addf %86, %99 : vector<128x144xf32>
    %c0_51 = arith.constant 0 : index
    %c0_52 = arith.constant 0 : index
    %101 = vector.load %arg13[%c0_51, %c0_52] : memref<128x144xf32, #tpu.memory_space<vmem>>, vector<128x144xf32>
    tpu.vector_store %arg13[%c0_51, %c0_52], %100 {strides = array<i32>} : memref<128x144xf32, #tpu.memory_space<vmem>>, vector<128x144xf32>,
    return
  }
  func.func @transform_0(%arg0: i32) -> (i32, i32) {
    %c0_i32 = arith.constant 0 : i32
    %c0_i32_0 = arith.constant 0 : i32
    return %arg0, %c0_i32 : i32, i32
  }
  func.func @transform_1(%arg0: i32) -> (i32, i32) {
    %c0_i32 = arith.constant 0 : i32
    %c0_i32_0 = arith.constant 0 : i32
    return %arg0, %c0_i32 : i32, i32
  }
  func.func @transform_2(%arg0: i32) -> (i32, i32) {
    %c0_i32 = arith.constant 0 : i32
    %c0_i32_0 = arith.constant 0 : i32
    %c0_i32_1 = arith.constant 0 : i32
    return %c0_i32, %c0_i32_0 : i32, i32
  }
  func.func @transform_3(%arg0: i32) -> (i32, i32) {
    %c0_i32 = arith.constant 0 : i32
    %c0_i32_0 = arith.constant 0 : i32
    %c0_i32_1 = arith.constant 0 : i32
    return %c0_i32, %c0_i32_0 : i32, i32
  }
  func.func @transform_4(%arg0: i32) -> (i32, i32) {
    %c0_i32 = arith.constant 0 : i32
    %c0_i32_0 = arith.constant 0 : i32
    %c0_i32_1 = arith.constant 0 : i32
    return %c0_i32, %c0_i32_0 : i32, i32
  }
  func.func @transform_5(%arg0: i32) -> (i32, i32) {
    %c0_i32 = arith.constant 0 : i32
    %c0_i32_0 = arith.constant 0 : i32
    %c0_i32_1 = arith.constant 0 : i32
    return %c0_i32, %c0_i32_0 : i32, i32
  }
  func.func @transform_6(%arg0: i32) -> (i32, i32) {
    %c0_i32 = arith.constant 0 : i32
    %c0_i32_0 = arith.constant 0 : i32
    %c0_i32_1 = arith.constant 0 : i32
    return %c0_i32, %c0_i32_0 : i32, i32
  }
  func.func @transform_7(%arg0: i32) -> (i32, i32) {
    %c0_i32 = arith.constant 0 : i32
    %c0_i32_0 = arith.constant 0 : i32
    %c0_i32_1 = arith.constant 0 : i32
    return %c0_i32, %c0_i32_0 : i32, i32
  }
  func.func @transform_8(%arg0: i32) -> (i32, i32) {
    %c0_i32 = arith.constant 0 : i32
    %c0_i32_0 = arith.constant 0 : i32
    %c0_i32_1 = arith.constant 0 : i32
    return %c0_i32, %c0_i32_0 : i32, i32
  }
  func.func @transform_9(%arg0: i32) -> (i32, i32) {
    %c0_i32 = arith.constant 0 : i32
    %c0_i32_0 = arith.constant 0 : i32
    %c0_i32_1 = arith.constant 0 : i32
    return %c0_i32, %c0_i32_0 : i32, i32
  }
  func.func @transform_10(%arg0: i32) -> (i32, i32, i32) {
    %c0_i32 = arith.constant 0 : i32
    %c0_i32_0 = arith.constant 0 : i32
    %c0_i32_1 = arith.constant 0 : i32
    %c0_i32_2 = arith.constant 0 : i32
    return %c0_i32, %c0_i32_0, %c0_i32_1 : i32, i32, i32
  }
  func.func @transform_11(%arg0: i32) -> (i32, i32, i32) {
    %c0_i32 = arith.constant 0 : i32
    %c0_i32_0 = arith.constant 0 : i32
    %c0_i32_1 = arith.constant 0 : i32
    %c0_i32_2 = arith.constant 0 : i32
    return %c0_i32, %c0_i32_0, %c0_i32_1 : i32, i32, i32
  }
  func.func @transform_12(%arg0: i32) -> (i32, i32) {
    %c0_i32 = arith.constant 0 : i32
    %c0_i32_0 = arith.constant 0 : i32
    return %arg0, %c0_i32 : i32, i32
  }
}

</mosaic_0001>

<bundles_post_ra>
// kernel: tpu_custom_call.1
= control target key start
LH: loop header
LB: loop body
LE: loop exit
PB: predicated region body
PF: predicated region fallthrough
CT: control target
= control target key end

     0   :  { %vm114_vm0 = vcmask 1044480   ;;  %vm65_vm1 = vcmask 39936   ;;  %vm265_vm2 = vcmask 130048   ;;  %s3007_s25 = smov 9   ;;  %vm1312_vm3 = vcmask 72704   ;;  %s3010_s16 = smov 72   ;;  %s6005_s2 = inlined_call_operand.vmem [shape: f32[5,16], index: 2, kind: input, shape index: {}]   ;;  %s6006_s0 = inlined_call_operand.vmem [shape: f32[128,5], index: 0, kind: input, shape index: {}]   ;;  %s6007_s3 = inlined_call_operand.vmem [shape: f32[1,16], index: 3, kind: input, shape index: {}]   ;;  %s6008_s6 = inlined_call_operand.vmem [shape: f32[16,16], index: 6, kind: input, shape index: {}]   ;;  %s6009_s1 = inlined_call_operand.vmem [shape: f32[128,27], index: 1, kind: input, shape index: {}]   ;;  %s6010_s4 = inlined_call_operand.vmem [shape: f32[1,16], index: 4, kind: input, shape index: {}]   ;;  %s6011_s5 = inlined_call_operand.vmem [shape: f32[1,16], index: 5, kind: input, shape index: {}]   ;;  %s6012_s7 = inlined_call_operand.vmem [shape: f32[1,16], index: 7, kind: input, shape index: {}]   ;;  %s6013_s10 = inlined_call_operand.vmem [shape: f32[3,16,144], index: 10, kind: input, shape index: {}]   ;;  %s6014_s8 = inlined_call_operand.vmem [shape: f32[1,16], index: 8, kind: input, shape index: {}]   ;;  %s6015_s9 = inlined_call_operand.vmem [shape: f32[1,16], index: 9, kind: input, shape index: {}]   ;;  %s6016_s11 = inlined_call_operand.vmem [shape: f32[3,1,144], index: 11, kind: input, shape index: {}]   ;;  %s6017_s12 = inlined_call_operand.vmem [shape: f32[128,144], index: 12, kind: output, shape index: {}]  }
   0x1   :  { %v57_v0 = vld [vmem:[%s6005_s2] sm:$0x1f]  ;;  %v42_v2 = vld [vmem:[%s6006_s0 + $0x8] sm:$0xff]  ;;  %v43_v3 = vld [vmem:[%s6006_s0 + $0x10] sm:$0xff]  ;;  %vm1393_vm4 = vcmask 146432   ;;  %vm1474_vm5 = vcmask 293888  }
   0x2   :  { %v41_v1 = vld [vmem:[%s6006_s0] sm:$0xff]  ;;  %2866 = vmatprep.subr.msk.mxu1 %vm114_vm0, %v57_v0  ;;  %v44_v4 = vld [vmem:[%s6006_s0 + $0x18] sm:$0xff]  ;;  %v46_v6 = vld [vmem:[%s6006_s0 + $0x28] sm:$0xff]  ;;  %s3012_s17 = smov 119   ;;  %s3013_s27 = smov 110   ;;  %vm1555_vm6 = vcmask 588800  }
   0x3   :  { %2868 = vmatprep.mubr.msk.f32.mxu1 %vm65_vm1, %v41_v1  ;;  %2867 = vmatpush3.msk.msra.mxu1 %vm114_vm0, %v57_v0  ;;  %v45_v5 = vld [vmem:[%s6006_s0 + $0x20] sm:$0xff]  ;;  %v47_v7 = vld [vmem:[%s6006_s0 + $0x30] sm:$0xff]  ;;  %v48_v8 = vld [vmem:[%s6006_s0 + $0x38] sm:$0xff] }
   0x4   :  { %2869 = vmatmul.mubr.msk.f32.vlgmr.msra.gmra.mxu1 %vm65_vm1, %v42_v2  ;;  %v49_v9 = vld [vmem:[%s6006_s0 + $0x40] sm:$0xff]  ;;  %v50_v10 = vld [vmem:[%s6006_s0 + $0x48] sm:$0xff]  ;;  %v51_v11 = vld [vmem:[%s6006_s0 + $0x50] sm:$0xff] }
   0x5   :  { %2871 = vmatprep.mubr.msk.f32.mxu1 %vm65_vm1, %v43_v3  ;;  %v52_v12 = vld [vmem:[%s6006_s0 + $0x58] sm:$0xff]  ;;  %v53_v13 = vld [vmem:[%s6006_s0 + $0x60] sm:$0xff]  ;;  %v54_v14 = vld [vmem:[%s6006_s0 + $0x68] sm:$0xff] }
   0x6   :  { %v55_v15 = vld [vmem:[%s6006_s0 + $0x70] sm:$0xff]  ;;  %v56_v16 = vld [vmem:[%s6006_s0 + $0x78] sm:$0xff]  ;;  %v2734_v18 = vld [vmem:[%s6007_s3] ss:$0 sm:$0xff] }
   0x8   :  { %2872 = vmatmul.mubr.msk.f32.gmra.mxu1 %vm65_vm1, %v44_v4 }
   0x9   :  { %2874 = vmatprep.mubr.msk.f32.mxu1 %vm65_vm1, %v45_v5 }
   0xc   :  { %2875 = vmatmul.mubr.msk.f32.gmra.mxu1 %vm65_vm1, %v46_v6 }
   0xd   :  { %2877 = vmatprep.mubr.msk.f32.mxu1 %vm65_vm1, %v47_v7 }
  0x10   :  { %2878 = vmatmul.mubr.msk.f32.gmra.mxu1 %vm65_vm1, %v48_v8 }
  0x11   :  { %2880 = vmatprep.mubr.msk.f32.mxu1 %vm65_vm1, %v49_v9 }
  0x14   :  { %2881 = vmatmul.mubr.msk.f32.gmra.mxu1 %vm65_vm1, %v50_v10 }
  0x15   :  { %2883 = vmatprep.mubr.msk.f32.mxu1 %vm65_vm1, %v51_v11 }
  0x18   :  { %2884 = vmatmul.mubr.msk.f32.gmra.mxu1 %vm65_vm1, %v52_v12 }
  0x19   :  { %2886 = vmatprep.mubr.msk.f32.mxu1 %vm65_vm1, %v53_v13 }
  0x1c   :  { %2887 = vmatmul.mubr.msk.f32.gmra.mxu1 %vm65_vm1, %v54_v14 }
  0x1d   :  { %2889 = vmatprep.mubr.msk.f32.mxu1 %vm65_vm1, %v55_v15 }
  0x20   :  { %2890 = vmatmul.mubr.msk.f32.gmra.mxu1 %vm65_vm1, %v56_v16 }
  0xc4   :  { %v2870_v17 = vpop.f32.mrf.mxu1 }
  0xc5   :  { %v3151_v22 = vadd.f32 %v2870_v17, %v2734_v18 }
  0xc6   :  { %v184_v19 = vpop.f32.mrf.mxu1 }
  0xc7   :  { %v3149_v20 = vadd.f32 %v2734_v18, %v184_v19  ;;  %v269_v29 = vsel %vm265_vm2, %v3151_v22, 0.0 }
  0xc8   :  { %v2873_v21 = vpop.f32.mrf.mxu1 }
  0xc9   :  { %v266_v23 = vsel %vm265_vm2, %v3149_v20, 0.0  ;;  %v3157_v27 = vadd.f32 %v2873_v21, %v2734_v18 }
  0xca   :  { %v194_v24 = vpop.f32.mrf.mxu1  ;;  %267 = vadd.xlane.f32.xlu0 %v266_v23 }
  0xcb   :  { %v3155_v25 = vadd.f32 %v2734_v18, %v194_v24  ;;  %v275_v34 = vsel %vm265_vm2, %v3157_v27, 0.0 }
  0xcc   :  { %v2876_v26 = vpop.f32.mrf.mxu1 }
  0xcd   :  { %v272_v28 = vsel %vm265_vm2, %v3155_v25, 0.0  ;;  %v3163_v31 = vadd.f32 %v2876_v26, %v2734_v18 }
  0xce   :  { %v204_v30 = vpop.f32.mrf.mxu1  ;;  %273 = vadd.xlane.f32.xlu1 %v272_v28  ;;  %270 = vadd.xlane.f32.xlu0 %v269_v29 }
  0xcf   :  { %v3165_v32 = vadd.f32 %v2734_v18, %v204_v30  ;;  %v281_v39 = vsel %vm265_vm2, %v3163_v31, 0.0 }
  0xd0   :  { %v2879_v33 = vpop.f32.mrf.mxu1 }
  0xd1   :  { %v278_v35 = vsel %vm265_vm2, %v3165_v32, 0.0  ;;  %v3171_v37 = vadd.f32 %v2879_v33, %v2734_v18 }
  0xd2   :  { %v214_v36 = vpop.f32.mrf.mxu1  ;;  %276 = vadd.xlane.f32.xlu1 %v275_v34  ;;  %279 = vadd.xlane.f32.xlu0 %v278_v35 }
  0xd3   :  { %v3173_v38 = vadd.f32 %v2734_v18, %v214_v36  ;;  %v287_v45 = vsel %vm265_vm2, %v3171_v37, 0.0 }
  0xd4   :  { %v2882_v40 = vpop.f32.mrf.mxu1 }
  0xd5   :  { %v284_v41 = vsel %vm265_vm2, %v3173_v38, 0.0  ;;  %v3179_v43 = vadd.f32 %v2882_v40, %v2734_v18 }
  0xd6   :  { %v224_v42 = vpop.f32.mrf.mxu1  ;;  %282 = vadd.xlane.f32.xlu1 %v281_v39  ;;  %285 = vadd.xlane.f32.xlu0 %v284_v41 }
  0xd7   :  { %v3181_v44 = vadd.f32 %v2734_v18, %v224_v42  ;;  %v293_v51 = vsel %vm265_vm2, %v3179_v43, 0.0 }
  0xd8   :  { %v2885_v46 = vpop.f32.mrf.mxu1 }
  0xd9   :  { %v290_v47 = vsel %vm265_vm2, %v3181_v44, 0.0  ;;  %v3187_v49 = vadd.f32 %v2885_v46, %v2734_v18 }
  0xda   :  { %v234_v48 = vpop.f32.mrf.mxu1  ;;  %288 = vadd.xlane.f32.xlu1 %v287_v45  ;;  %291 = vadd.xlane.f32.xlu0 %v290_v47 }
  0xdb   :  { %v3189_v50 = vadd.f32 %v2734_v18, %v234_v48  ;;  %v299_v57 = vsel %vm265_vm2, %v3187_v49, 0.0 }
  0xdc   :  { %v2888_v52 = vpop.f32.mrf.mxu1 }
  0xdd   :  { %v296_v53 = vsel %vm265_vm2, %v3189_v50, 0.0  ;;  %v3195_v55 = vadd.f32 %v2888_v52, %v2734_v18 }
  0xde   :  { %v244_v54 = vpop.f32.mrf.mxu1  ;;  %294 = vadd.xlane.f32.xlu1 %v293_v51  ;;  %297 = vadd.xlane.f32.xlu0 %v296_v53 }
  0xdf   :  { %v3197_v56 = vadd.f32 %v2734_v18, %v244_v54  ;;  %v305_v63 = vsel %vm265_vm2, %v3195_v55, 0.0 }
  0xe0   :  { %v2891_v58 = vpop.f32.mrf.mxu1 }
  0xe1   :  { %v302_v59 = vsel %vm265_vm2, %v3197_v56, 0.0  ;;  %v3203_v61 = vadd.f32 %v2891_v58, %v2734_v18 }
  0xe2   :  { %v254_v60 = vpop.f32.mrf.mxu1  ;;  %300 = vadd.xlane.f32.xlu1 %v299_v57  ;;  %303 = vadd.xlane.f32.xlu0 %v302_v59 }
  0xe3   :  { %v3205_v62 = vadd.f32 %v2734_v18, %v254_v60  ;;  %v311_v1 = vsel %vm265_vm2, %v3203_v61, 0.0 }
  0xe5   :  { %v308_v0 = vsel %vm265_vm2, %v3205_v62, 0.0 }
  0xe6   :  { %306 = vadd.xlane.f32.xlu1 %v305_v63  ;;  %309 = vadd.xlane.f32.xlu0 %v308_v0 }
  0xea   :  { %312 = vadd.xlane.f32.xlu1 %v311_v1 }
 0x153   :  { %v268_v2 = vpop.xlane.xlu0 %267 }
 0x154   :  { %v315_v3 = vmul.f32 0.0625, %v268_v2 }
 0x156   :  { %v3214_v4 = vsub.f32 %v3149_v20, %v315_v3 }
 0x157   :  { %v274_v5 = vpop.xlane.xlu1 %273  ;;  %v271_v6 = vpop.xlane.xlu0 %270 }
 0x158   :  { %v317_v7 = vmul.f32 0.0625, %v274_v5  ;;  %v316_v8 = vmul.f32 0.0625, %v271_v6  ;;  %v347_v9 = vmul.f32 %v3214_v4, %v3214_v4 }
 0x15a   :  { %v3219_v10 = vsub.f32 %v3155_v25, %v317_v7  ;;  %v3222_v11 = vsub.f32 %v3151_v22, %v316_v8  ;;  %v363_v12 = vsel %vm265_vm2, %v347_v9, 0.0 }
 0x15b   :  { %v277_v13 = vpop.xlane.xlu1 %276  ;;  %364 = vadd.xlane.f32.xlu0 %v363_v12  ;;  %v280_v14 = vpop.xlane.xlu0 %279 }
 0x15c   :  { %v318_v15 = vmul.f32 0.0625, %v277_v13  ;;  %v319_v16 = vmul.f32 0.0625, %v280_v14  ;;  %v349_v17 = vmul.f32 %v3219_v10, %v3219_v10  ;;  %v348_v18 = vmul.f32 %v3222_v11, %v3222_v11 }
 0x15e   :  { %v3230_v19 = vsub.f32 %v3157_v27, %v318_v15  ;;  %v3233_v20 = vsub.f32 %v3165_v32, %v319_v16  ;;  %v369_v21 = vsel %vm265_vm2, %v349_v17, 0.0  ;;  %v366_v22 = vsel %vm265_vm2, %v348_v18, 0.0 }
 0x15f   :  { %v283_v23 = vpop.xlane.xlu1 %282  ;;  %370 = vadd.xlane.f32.xlu0 %v369_v21  ;;  %367 = vadd.xlane.f32.xlu1 %v366_v22  ;;  %v286_v24 = vpop.xlane.xlu0 %285 }
 0x160   :  { %v320_v25 = vmul.f32 0.0625, %v283_v23  ;;  %v321_v26 = vmul.f32 0.0625, %v286_v24  ;;  %v350_v28 = vmul.f32 %v3230_v19, %v3230_v19  ;;  %v351_v27 = vmul.f32 %v3233_v20, %v3233_v20  ;;  %v536_v24 = vld [vmem:[%s6008_s6 + $0x8] sm:$0xff] }
 0x161   :  { %2892 = vmatprep.subr.mxu1 %v536_v24 }
 0x162   :  { %v3242_v29 = vsub.f32 %v3163_v31, %v320_v25  ;;  %v3245_v30 = vsub.f32 %v3173_v38, %v321_v26  ;;  %v372_v32 = vsel %vm265_vm2, %v350_v28, 0.0  ;;  %v375_v33 = vsel %vm265_vm2, %v351_v27, 0.0  ;;  %2893 = vmatpush3.msra.mxu1 %v536_v24  ;;  %v3318_v25 = vld [vmem:[%s6009_s1 + $0x8] sm:$0xff]  ;;  %v3323_v26 = vld [vmem:[%s6009_s1] sm:$0xff]  ;;  %v3332_v28 = vld [vmem:[%s6009_s1 + $0x10] sm:$0xff] }
 0x163   :  { %v289_v34 = vpop.xlane.xlu1 %288  ;;  %373 = vadd.xlane.f32.xlu1 %v372_v32  ;;  %376 = vadd.xlane.f32.xlu0 %v375_v33  ;;  %v292_v35 = vpop.xlane.xlu0 %291  ;;  %v3337_v27 = vld [vmem:[%s6009_s1 + $0x20] sm:$0xff]  ;;  %v3344_v32 = vld [vmem:[%s6009_s1 + $0x18] sm:$0xff]  ;;  %v3351_v33 = vld [vmem:[%s6009_s1 + $0x30] sm:$0xff] }
 0x164   :  { %v322_v36 = vmul.f32 0.0625, %v289_v34  ;;  %v323_v39 = vmul.f32 0.0625, %v292_v35  ;;  %v352_v40 = vmul.f32 %v3242_v29, %v3242_v29  ;;  %v353_v31 = vmul.f32 %v3245_v30, %v3245_v30  ;;  %v3358_v34 = vld [vmem:[%s6009_s1 + $0x28] sm:$0xff]  ;;  %v3365_v35 = vld [vmem:[%s6009_s1 + $0x40] sm:$0xff] }
 0x166   :  { %v3254_v41 = vsub.f32 %v3171_v37, %v322_v36  ;;  %v3257_v38 = vsub.f32 %v3181_v44, %v323_v39  ;;  %v378_v42 = vsel %vm265_vm2, %v352_v40, 0.0  ;;  %v381_v45 = vsel %vm265_vm2, %v353_v31, 0.0  ;;  %v3372_v36 = vld [vmem:[%s6009_s1 + $0x38] sm:$0xff]  ;;  %v3379_v39 = vld [vmem:[%s6009_s1 + $0x50] sm:$0xff]  ;;  %v3386_v40 = vld [vmem:[%s6009_s1 + $0x48] sm:$0xff] }
 0x167   :  { %v295_v46 = vpop.xlane.xlu1 %294  ;;  %379 = vadd.xlane.f32.xlu1 %v378_v42  ;;  %382 = vadd.xlane.f32.xlu0 %v381_v45  ;;  %v298_v47 = vpop.xlane.xlu0 %297  ;;  %v3393_v31 = vld [vmem:[%s6009_s1 + $0x60] sm:$0xff]  ;;  %v3400_v42 = vld [vmem:[%s6009_s1 + $0x58] sm:$0xff]  ;;  %v3407_v45 = vld [vmem:[%s6009_s1 + $0x70] sm:$0xff] }
 0x168   :  { %v324_v48 = vmul.f32 0.0625, %v295_v46  ;;  %v325_v51 = vmul.f32 0.0625, %v298_v47  ;;  %v354_v52 = vmul.f32 %v3254_v41, %v3254_v41  ;;  %v355_v37 = vmul.f32 %v3257_v38, %v3257_v38  ;;  %v3414_v46 = vld [vmem:[%s6009_s1 + $0x68] sm:$0xff]  ;;  %v3423_v47 = vld [vmem:[%s6009_s1 + $0x78] sm:$0xff] }
 0x16a   :  { %v3266_v53 = vsub.f32 %v3179_v43, %v324_v48  ;;  %v3269_v44 = vsub.f32 %v3189_v50, %v325_v51  ;;  %v384_v54 = vsel %vm265_vm2, %v354_v52, 0.0  ;;  %v387_v57 = vsel %vm265_vm2, %v355_v37, 0.0 }
 0x16b   :  { %v301_v58 = vpop.xlane.xlu1 %300  ;;  %385 = vadd.xlane.f32.xlu1 %v384_v54  ;;  %388 = vadd.xlane.f32.xlu0 %v387_v57  ;;  %v304_v59 = vpop.xlane.xlu0 %303 }
 0x16c   :  { %v326_v60 = vmul.f32 0.0625, %v301_v58  ;;  %v327_v63 = vmul.f32 0.0625, %v304_v59  ;;  %v356_v0 = vmul.f32 %v3266_v53, %v3266_v53  ;;  %v357_v43 = vmul.f32 %v3269_v44, %v3269_v44 }
 0x16e   :  { %v3278_v1 = vsub.f32 %v3187_v49, %v326_v60  ;;  %v3281_v50 = vsub.f32 %v3197_v56, %v327_v63  ;;  %v390_v2 = vsel %vm265_vm2, %v356_v0, 0.0  ;;  %v393_v3 = vsel %vm265_vm2, %v357_v43, 0.0 }
 0x16f   :  { %v307_v5 = vpop.xlane.xlu1 %306  ;;  %391 = vadd.xlane.f32.xlu1 %v390_v2  ;;  %394 = vadd.xlane.f32.xlu0 %v393_v3  ;;  %v310_v6 = vpop.xlane.xlu0 %309 }
 0x170   :  { %v328_v7 = vmul.f32 0.0625, %v307_v5  ;;  %v329_v8 = vmul.f32 0.0625, %v310_v6  ;;  %v358_v9 = vmul.f32 %v3278_v1, %v3278_v1  ;;  %v359_v49 = vmul.f32 %v3281_v50, %v3281_v50 }
 0x172   :  { %v3290_v12 = vsub.f32 %v3195_v55, %v328_v7  ;;  %v3293_v56 = vsub.f32 %v3205_v62, %v329_v8  ;;  %v396_v13 = vsel %vm265_vm2, %v358_v9, 0.0  ;;  %v399_v14 = vsel %vm265_vm2, %v359_v49, 0.0 }
 0x173   :  { %v313_v15 = vpop.xlane.xlu1 %312  ;;  %397 = vadd.xlane.f32.xlu1 %v396_v13  ;;  %400 = vadd.xlane.f32.xlu0 %v399_v14 }
 0x174   :  { %v330_v16 = vmul.f32 0.0625, %v313_v15  ;;  %v360_v17 = vmul.f32 %v3290_v12, %v3290_v12  ;;  %v361_v18 = vmul.f32 %v3293_v56, %v3293_v56 }
 0x176   :  { %v3302_v55 = vsub.f32 %v3203_v61, %v330_v16  ;;  %v402_v62 = vsel %vm265_vm2, %v360_v17, 0.0  ;;  %v405_v21 = vsel %vm265_vm2, %v361_v18, 0.0  ;;  %v535_v61 = vld [vmem:[%s6008_s6] sm:$0xff] }
 0x177   :  { %403 = vadd.xlane.f32.xlu1 %v402_v62  ;;  %406 = vadd.xlane.f32.xlu0 %v405_v21  ;;  %v3430_v62 = vld [vmem:[%s6010_s4] ss:$0 sm:$0xff]  ;;  %s3008_s4 = smov 18  }
 0x178   :  { %v362_v22 = vmul.f32 %v3302_v55, %v3302_v55  ;;  %2894 = vmatprep.subr.mxu1 %v535_v61 }
 0x179   :  { %2895 = vmatpush3.msra.mxu1 %v535_v61 }
 0x17a   :  { %v408_v23 = vsel %vm265_vm2, %v362_v22, 0.0 }
 0x17b   :  { %409 = vadd.xlane.f32.xlu1 %v408_v23 }
 0x18c   :  { %1266 = vrot.lane.b32.xlu1 %v3318_v25, %s3007_s25 }
 0x18d   :  { %1264 = vrot.lane.b32.xlu0 %v3323_v26, %s3007_s25 }
 0x190   :  { %1268 = vrot.lane.b32.xlu1 %v3332_v28, %s3007_s25 }
 0x191   :  { %1272 = vrot.lane.b32.xlu0 %v3337_v27, %s3007_s25 }
 0x194   :  { %1270 = vrot.lane.b32.xlu1 %v3344_v32, %s3007_s25 }
 0x195   :  { %1276 = vrot.lane.b32.xlu0 %v3351_v33, %s3007_s25 }
 0x198   :  { %1274 = vrot.lane.b32.xlu1 %v3358_v34, %s3007_s25 }
 0x199   :  { %1280 = vrot.lane.b32.xlu0 %v3365_v35, %s3007_s25 }
 0x19c   :  { %1278 = vrot.lane.b32.xlu1 %v3372_v36, %s3007_s25 }
 0x19d   :  { %1284 = vrot.lane.b32.xlu0 %v3379_v39, %s3007_s25 }
 0x1a0   :  { %1282 = vrot.lane.b32.xlu1 %v3386_v40, %s3007_s25 }
 0x1a1   :  { %1288 = vrot.lane.b32.xlu0 %v3393_v31, %s3007_s25 }
 0x1a4   :  { %1286 = vrot.lane.b32.xlu1 %v3400_v42, %s3007_s25 }
 0x1a5   :  { %1292 = vrot.lane.b32.xlu0 %v3407_v45, %s3007_s25 }
 0x1a8   :  { %1290 = vrot.lane.b32.xlu1 %v3414_v46, %s3007_s25 }
 0x1ac   :  { %1294 = vrot.lane.b32.xlu1 %v3423_v47, %s3007_s25 }
 0x1e4   :  { %v365_v48 = vpop.xlane.xlu0 %364 }
 0x1e5   :  { %v411_v51 = vmul.f32 0.0625, %v365_v48  ;;  %v3436_v48 = vld [vmem:[%s6011_s5] ss:$0 sm:$0xff]  ;;  %s3009_s5 = smov 36  }
 0x1e7   :  { %v427_v52 = vadd.f32 1e-05, %v411_v51 }
 0x1e8   :  { %v368_v37 = vpop.xlane.xlu1 %367  ;;  %v371_v54 = vpop.xlane.xlu0 %370 }
 0x1e9   :  { %2927 = vrsqrt.f32 %v427_v52  ;;  %v412_v57 = vmul.f32 0.0625, %v368_v37  ;;  %v413_v58 = vmul.f32 0.0625, %v371_v54 }
 0x1eb   :  { %v428_v59 = vadd.f32 1e-05, %v412_v57  ;;  %v429_v60 = vadd.f32 1e-05, %v413_v58 }
 0x1ec   :  { %v374_v63 = vpop.xlane.xlu1 %373  ;;  %v377_v0 = vpop.xlane.xlu0 %376 }
 0x1ed   :  { %2929 = vrsqrt.f32 %v428_v59  ;;  %v414_v43 = vmul.f32 0.0625, %v374_v63  ;;  %v415_v2 = vmul.f32 0.0625, %v377_v0 }
 0x1ee   :  { %2931 = vrsqrt.f32 %v429_v60 }
 0x1ef   :  { %v430_v3 = vadd.f32 1e-05, %v414_v43  ;;  %v431_v5 = vadd.f32 1e-05, %v415_v2 }
 0x1f0   :  { %v380_v6 = vpop.xlane.xlu1 %379  ;;  %v383_v7 = vpop.xlane.xlu0 %382 }
 0x1f1   :  { %2933 = vrsqrt.f32 %v430_v3  ;;  %v416_v8 = vmul.f32 0.0625, %v380_v6  ;;  %v417_v9 = vmul.f32 0.0625, %v383_v7 }
 0x1f2   :  { %2935 = vrsqrt.f32 %v431_v5 }
 0x1f3   :  { %v432_v49 = vadd.f32 1e-05, %v416_v8  ;;  %v433_v13 = vadd.f32 1e-05, %v417_v9 }
 0x1f4   :  { %v386_v14 = vpop.xlane.xlu1 %385  ;;  %v389_v15 = vpop.xlane.xlu0 %388 }
 0x1f5   :  { %2937 = vrsqrt.f32 %v432_v49  ;;  %v418_v16 = vmul.f32 0.0625, %v386_v14  ;;  %v419_v17 = vmul.f32 0.0625, %v389_v15 }
 0x1f6   :  { %v2928_v18 = vpop.eup %2927  ;;  %2939 = vrsqrt.f32 %v433_v13 }
 0x1f7   :  { %v434_v21 = vadd.f32 1e-05, %v418_v16  ;;  %v435_v22 = vadd.f32 1e-05, %v419_v17  ;;  %v459_v23 = vmul.f32 %v2928_v18, %v3214_v4 }
 0x1f8   :  { %v392_v24 = vpop.xlane.xlu1 %391  ;;  %v395_v61 = vpop.xlane.xlu0 %394 }
 0x1f9   :  { %2941 = vrsqrt.f32 %v434_v21  ;;  %v420_v51 = vmul.f32 0.0625, %v392_v24  ;;  %v421_v52 = vmul.f32 0.0625, %v395_v61  ;;  %v481_v37 = vmul.f32 %v3430_v62, %v459_v23 }
 0x1fa   :  { %v2930_v54 = vpop.eup %2929  ;;  %2943 = vrsqrt.f32 %v435_v22 }
 0x1fb   :  { %v2932_v57 = vpop.eup %2931  ;;  %v460_v58 = vmul.f32 %v2930_v54, %v3222_v11  ;;  %v436_v59 = vadd.f32 1e-05, %v420_v51  ;;  %v437_v60 = vadd.f32 1e-05, %v421_v52  ;;  %v503_v4 = vadd.f32 %v3436_v48, %v481_v37 }
 0x1fc   :  { %v398_v63 = vpop.xlane.xlu1 %397  ;;  %v401_v0 = vpop.xlane.xlu0 %400  ;;  %v461_v43 = vmul.f32 %v2932_v57, %v3219_v10 }
 0x1fd   :  { %v482_v2 = vmul.f32 %v3430_v62, %v460_v58  ;;  %2945 = vrsqrt.f32 %v436_v59  ;;  %v422_v3 = vmul.f32 0.0625, %v398_v63  ;;  %v423_v5 = vmul.f32 0.0625, %v401_v0 }
 0x1fe   :  { %v2934_v6 = vpop.eup %2933  ;;  %2947 = vrsqrt.f32 %v437_v60  ;;  %v519_v7 = vmax.f32 %v503_v4, 0.0  ;;  %v483_v8 = vmul.f32 %v3430_v62, %v461_v43 }
 0x1ff   :  { %v2936_v9 = vpop.eup %2935  ;;  %v438_v11 = vadd.f32 1e-05, %v422_v3  ;;  %v439_v49 = vadd.f32 1e-05, %v423_v5  ;;  %v504_v13 = vadd.f32 %v3436_v48, %v482_v2  ;;  %v462_v14 = vmul.f32 %v2934_v6, %v3230_v19 }
 0x200   :  { %2896 = vmatprep.mubr.msk.f32.mxu1 %vm265_vm2, %v519_v7  ;;  %v404_v10 = vpop.xlane.xlu1 %403  ;;  %v407_v15 = vpop.xlane.xlu0 %406  ;;  %v505_v16 = vadd.f32 %v3436_v48, %v483_v8  ;;  %v463_v17 = vmul.f32 %v2936_v9, %v3233_v20 }
 0x201   :  { %2949 = vrsqrt.f32 %v438_v11  ;;  %v424_v18 = vmul.f32 0.0625, %v404_v10  ;;  %v425_v21 = vmul.f32 0.0625, %v407_v15  ;;  %v520_v22 = vmax.f32 %v504_v13, 0.0 }
 0x202   :  { %v2938_v23 = vpop.eup %2937  ;;  %2951 = vrsqrt.f32 %v439_v49  ;;  %v521_v24 = vmax.f32 %v505_v16, 0.0  ;;  %v484_v61 = vmul.f32 %v3430_v62, %v462_v14  ;;  %v485_v19 = vmul.f32 %v3430_v62, %v463_v17 }
 0x203   :  { %v2940_v51 = vpop.eup %2939  ;;  %v440_v52 = vadd.f32 1e-05, %v424_v18  ;;  %v441_v37 = vadd.f32 1e-05, %v425_v21  ;;  %2897 = vmatmul.mubr.msk.f32.vlgmr.msra.gmra.mxu1 %vm265_vm2, %v520_v22  ;;  %v464_v54 = vmul.f32 %v2938_v23, %v3242_v29 }
 0x204   :  { %v410_v57 = vpop.xlane.xlu1 %409  ;;  %2899 = vmatprep.mubr.msk.f32.mxu1 %vm265_vm2, %v521_v24  ;;  %v1265_v20 = vpop.permute.xlu0 %1264  ;;  %v506_v58 = vadd.f32 %v3436_v48, %v484_v61  ;;  %v507_v59 = vadd.f32 %v3436_v48, %v485_v19  ;;  %v465_v60 = vmul.f32 %v2940_v51, %v3245_v30 }
 0x205   :  { %2953 = vrsqrt.f32 %v440_v52  ;;  %v426_v4 = vmul.f32 0.0625, %v410_v57  ;;  %v3459_v63 = vsel %vm1312_vm3, %v3323_v26, %v1265_v20  ;;  %v486_v0 = vmul.f32 %v3430_v62, %v464_v54 }
 0x206   :  { %v2942_v43 = vpop.eup %2941  ;;  %2955 = vrsqrt.f32 %v441_v37  ;;  %1345 = vrot.lane.b32.xlu0 %v3459_v63, %s3008_s4  ;;  %v522_v29 = vmax.f32 %v506_v58, 0.0  ;;  %v523_v2 = vmax.f32 %v507_v59, 0.0  ;;  %v487_v3 = vmul.f32 %v3430_v62, %v465_v60 }
 0x207   :  { %v2944_v5 = vpop.eup %2943  ;;  %v442_v30 = vadd.f32 1e-05, %v426_v4  ;;  %v508_v6 = vadd.f32 %v3436_v48, %v486_v0  ;;  %v466_v7 = vmul.f32 %v2942_v43, %v3254_v41 }
 0x208   :  { %2900 = vmatmul.mubr.msk.f32.gmra.mxu1 %vm265_vm2, %v522_v29  ;;  %v1267_v26 = vpop.permute.xlu1 %1266  ;;  %v509_v8 = vadd.f32 %v3436_v48, %v487_v3  ;;  %v467_v9 = vmul.f32 %v2944_v5, %v3257_v38  ;;  %v1273_v11 = vpop.permute.xlu0 %1272 }
 0x209   :  { %2957 = vrsqrt.f32 %v442_v30  ;;  %2902 = vmatprep.mubr.msk.f32.mxu1 %vm265_vm2, %v523_v2  ;;  %v3473_v49 = vsel %vm1312_vm3, %v3318_v25, %v1267_v26  ;;  %v524_v13 = vmax.f32 %v508_v6, 0.0  ;;  %v488_v14 = vmul.f32 %v3430_v62, %v466_v7 }
 0x20a   :  { %v2946_v10 = vpop.eup %2945  ;;  %1347 = vrot.lane.b32.xlu1 %v3473_v49, %s3008_s4  ;;  %v525_v41 = vmax.f32 %v509_v8, 0.0  ;;  %v489_v15 = vmul.f32 %v3430_v62, %v467_v9 }
 0x20b   :  { %v2948_v16 = vpop.eup %2947  ;;  %v510_v38 = vadd.f32 %v3436_v48, %v488_v14  ;;  %v468_v17 = vmul.f32 %v2946_v10, %v3266_v53 }
 0x20c   :  { %2903 = vmatmul.mubr.msk.f32.gmra.mxu1 %vm265_vm2, %v524_v13  ;;  %v1269_v18 = vpop.permute.xlu1 %1268  ;;  %v511_v25 = vadd.f32 %v3436_v48, %v489_v15  ;;  %v469_v21 = vmul.f32 %v2948_v16, %v3269_v44  ;;  %v1277_v22 = vpop.permute.xlu0 %1276  ;;  %v3495_v44 = vsel %vm1312_vm3, %v3337_v27, %v1273_v11 }
 0x20d   :  { %2905 = vmatprep.mubr.msk.f32.mxu1 %vm265_vm2, %v525_v41  ;;  %v3487_v23 = vsel %vm1312_vm3, %v3332_v28, %v1269_v18  ;;  %v526_v24 = vmax.f32 %v510_v38, 0.0  ;;  %v490_v61 = vmul.f32 %v3430_v62, %v468_v17  ;;  %v3515_v43 = vsel %vm1312_vm3, %v3351_v33, %v1277_v22 }
 0x20e   :  { %v2950_v19 = vpop.eup %2949  ;;  %1349 = vrot.lane.b32.xlu0 %v3487_v23, %s3008_s4  ;;  %v527_v53 = vmax.f32 %v511_v25, 0.0  ;;  %v491_v51 = vmul.f32 %v3430_v62, %v469_v21 }
 0x20f   :  { %v2952_v52 = vpop.eup %2951  ;;  %v512_v37 = vadd.f32 %v3436_v48, %v490_v61  ;;  %v470_v28 = vmul.f32 %v2950_v19, %v3278_v1 }
 0x210   :  { %2906 = vmatmul.mubr.msk.f32.gmra.mxu1 %vm265_vm2, %v526_v24  ;;  %v1271_v54 = vpop.permute.xlu1 %1270  ;;  %v513_v57 = vadd.f32 %v3436_v48, %v491_v51  ;;  %v471_v20 = vmul.f32 %v2952_v52, %v3281_v50  ;;  %v1281_v58 = vpop.permute.xlu0 %1280 }
 0x211   :  { %2908 = vmatprep.mubr.msk.f32.mxu1 %vm265_vm2, %v527_v53  ;;  %v3505_v59 = vsel %vm1312_vm3, %v3344_v32, %v1271_v54  ;;  %v528_v27 = vmax.f32 %v512_v37, 0.0  ;;  %v492_v60 = vmul.f32 %v3430_v62, %v470_v28  ;;  %v3535_v8 = vsel %vm1312_vm3, %v3365_v35, %v1281_v58 }
 0x212   :  { %v2954_v4 = vpop.eup %2953  ;;  %1351 = vrot.lane.b32.xlu1 %v3505_v59, %s3008_s4  ;;  %1353 = vrot.lane.b32.xlu0 %v3495_v44, %s3008_s4  ;;  %v529_v1 = vmax.f32 %v513_v57, 0.0  ;;  %v493_v50 = vmul.f32 %v3430_v62, %v471_v20 }
 0x213   :  { %v2956_v0 = vpop.eup %2955  ;;  %v514_v32 = vadd.f32 %v3436_v48, %v492_v60  ;;  %v472_v29 = vmul.f32 %v2954_v4, %v3290_v12 }
 0x214   :  { %2909 = vmatmul.mubr.msk.f32.gmra.mxu1 %vm265_vm2, %v528_v27  ;;  %v1275_v2 = vpop.permute.xlu1 %1274  ;;  %v515_v3 = vadd.f32 %v3436_v48, %v493_v50  ;;  %v473_v5 = vmul.f32 %v2956_v0, %v3293_v56  ;;  %v1285_v30 = vpop.permute.xlu0 %1284 }
 0x215   :  { %2911 = vmatprep.mubr.msk.f32.mxu1 %vm265_vm2, %v529_v1  ;;  %v3525_v6 = vsel %vm1312_vm3, %v3358_v34, %v1275_v2  ;;  %v530_v33 = vmax.f32 %v514_v32, 0.0  ;;  %v494_v7 = vmul.f32 %v3430_v62, %v472_v29  ;;  %v1323_v15 = vsel %vm1312_vm3, %v3379_v39, %v1285_v30 }
 0x216   :  { %v2958_v26 = vpop.eup %2957  ;;  %1355 = vrot.lane.b32.xlu1 %v3525_v6, %s3008_s4  ;;  %1357 = vrot.lane.b32.xlu0 %v3515_v43, %s3008_s4  ;;  %v531_v12 = vmax.f32 %v515_v3, 0.0  ;;  %v495_v56 = vmul.f32 %v3430_v62, %v473_v5 }
 0x217   :  { %v516_v34 = vadd.f32 %v3436_v48, %v494_v7  ;;  %v474_v9 = vmul.f32 %v2958_v26, %v3302_v55 }
 0x218   :  { %2912 = vmatmul.mubr.msk.f32.gmra.mxu1 %vm265_vm2, %v530_v33  ;;  %v1279_v11 = vpop.permute.xlu1 %1278  ;;  %v517_v13 = vadd.f32 %v3436_v48, %v495_v56  ;;  %v1289_v55 = vpop.permute.xlu0 %1288 }
 0x219   :  { %2914 = vmatprep.mubr.msk.f32.mxu1 %vm265_vm2, %v531_v12  ;;  %v1320_v14 = vsel %vm1312_vm3, %v3372_v36, %v1279_v11  ;;  %v532_v10 = vmax.f32 %v516_v34, 0.0  ;;  %v496_v41 = vmul.f32 %v3430_v62, %v474_v9  ;;  %v1325_v17 = vsel %vm1312_vm3, %v3393_v31, %v1289_v55  ;;  %v2754_v11 = vld [vmem:[%s6012_s7] ss:$0 sm:$0xff] }
 0x21a   :  { %1359 = vrot.lane.b32.xlu1 %v1320_v14, %s3008_s4  ;;  %1361 = vrot.lane.b32.xlu0 %v3535_v8, %s3008_s4  ;;  %v533_v35 = vmax.f32 %v517_v13, 0.0 }
 0x21b   :  { %v518_v16 = vadd.f32 %v3436_v48, %v496_v41 }
 0x21c   :  { %2915 = vmatmul.mubr.msk.f32.gmra.mxu1 %vm265_vm2, %v532_v10  ;;  %v1283_v38 = vpop.permute.xlu1 %1282  ;;  %v1293_v48 = vpop.permute.xlu0 %1292 }
 0x21d   :  { %2917 = vmatprep.mubr.msk.f32.mxu1 %vm265_vm2, %v533_v35  ;;  %v1322_v36 = vsel %vm1312_vm3, %v3386_v40, %v1283_v38  ;;  %v534_v62 = vmax.f32 %v518_v16, 0.0  ;;  %v1327_v40 = vsel %vm1312_vm3, %v3407_v45, %v1293_v48 }
 0x21e   :  { %1363 = vrot.lane.b32.xlu1 %v1322_v36, %s3008_s4  ;;  %1365 = vrot.lane.b32.xlu0 %v1323_v15, %s3008_s4 }
 0x220   :  { %2918 = vmatmul.mubr.msk.f32.gmra.mxu1 %vm265_vm2, %v534_v62  ;;  %v1287_v39 = vpop.permute.xlu1 %1286 }
 0x221   :  { %v1324_v18 = vsel %vm1312_vm3, %v3400_v42, %v1287_v39 }
 0x222   :  { %1367 = vrot.lane.b32.xlu1 %v1324_v18, %s3008_s4  ;;  %1369 = vrot.lane.b32.xlu0 %v1325_v17, %s3008_s4 }
 0x224   :  { %v1291_v25 = vpop.permute.xlu1 %1290 }
 0x225   :  { %v1326_v21 = vsel %vm1312_vm3, %v3414_v46, %v1291_v25 }
 0x226   :  { %1371 = vrot.lane.b32.xlu1 %v1326_v21, %s3008_s4  ;;  %1373 = vrot.lane.b32.xlu0 %v1327_v40, %s3008_s4 }
 0x228   :  { %v1295_v31 = vpop.permute.xlu1 %1294 }
 0x229   :  { %v1328_v22 = vsel %vm1312_vm3, %v3423_v47, %v1295_v31 }
 0x22a   :  { %1375 = vrot.lane.b32.xlu1 %v1328_v22, %s3008_s4 }
 0x278   :  { %v1346_v42 = vpop.permute.xlu0 %1345 }
 0x279   :  { %v1394_v24 = vsel %vm1393_vm4, %v3459_v63, %v1346_v42 }
 0x27a   :  { %1426 = vrot.lane.b32.xlu0 %v1394_v24, %s3009_s5 }
 0x27c   :  { %v1348_v45 = vpop.permute.xlu1 %1347 }
 0x27d   :  { %v1395_v46 = vsel %vm1393_vm4, %v3473_v49, %v1348_v45 }
 0x27e   :  { %1428 = vrot.lane.b32.xlu1 %v1395_v46, %s3009_s5 }
 0x280   :  { %v1350_v61 = vpop.permute.xlu0 %1349 }
 0x281   :  { %v3581_v47 = vsel %vm1393_vm4, %v3487_v23, %v1350_v61 }
 0x282   :  { %1430 = vrot.lane.b32.xlu0 %v3581_v47, %s3009_s5 }
 0x284   :  { %v1352_v19 = vpop.permute.xlu1 %1351  ;;  %v1354_v53 = vpop.permute.xlu0 %1353 }
 0x285   :  { %v3587_v63 = vsel %vm1393_vm4, %v3505_v59, %v1352_v19  ;;  %v3591_v51 = vsel %vm1393_vm4, %v3495_v44, %v1354_v53 }
 0x286   :  { %1432 = vrot.lane.b32.xlu1 %v3587_v63, %s3009_s5  ;;  %1434 = vrot.lane.b32.xlu0 %v3591_v51, %s3009_s5 }
 0x288   :  { %v1356_v49 = vpop.permute.xlu1 %1355  ;;  %v1358_v23 = vpop.permute.xlu0 %1357 }
 0x289   :  { %v3599_v52 = vsel %vm1393_vm4, %v3525_v6, %v1356_v49  ;;  %v3603_v37 = vsel %vm1393_vm4, %v3515_v43, %v1358_v23 }
 0x28a   :  { %1436 = vrot.lane.b32.xlu1 %v3599_v52, %s3009_s5  ;;  %1438 = vrot.lane.b32.xlu0 %v3603_v37, %s3009_s5 }
 0x28c   :  { %v1360_v44 = vpop.permute.xlu1 %1359  ;;  %v1362_v28 = vpop.permute.xlu0 %1361 }
 0x28d   :  { %v3610_v54 = vsel %vm1393_vm4, %v1320_v14, %v1360_v44  ;;  %v3614_v57 = vsel %vm1393_vm4, %v3535_v8, %v1362_v28 }
 0x28e   :  { %1440 = vrot.lane.b32.xlu1 %v3610_v54, %s3009_s5  ;;  %1442 = vrot.lane.b32.xlu0 %v3614_v57, %s3009_s5 }
 0x290   :  { %v1364_v20 = vpop.permute.xlu1 %1363  ;;  %v1366_v58 = vpop.permute.xlu0 %1365 }
 0x291   :  { %v3621_v59 = vsel %vm1393_vm4, %v1322_v36, %v1364_v20  ;;  %v3624_v27 = vsel %vm1393_vm4, %v1323_v15, %v1366_v58 }
 0x292   :  { %1444 = vrot.lane.b32.xlu1 %v3621_v59, %s3009_s5  ;;  %1446 = vrot.lane.b32.xlu0 %v3624_v27, %s3009_s5 }
 0x294   :  { %v1368_v60 = vpop.permute.xlu1 %1367  ;;  %v1370_v4 = vpop.permute.xlu0 %1369 }
 0x295   :  { %v3631_v1 = vsel %vm1393_vm4, %v1324_v18, %v1368_v60  ;;  %v3634_v50 = vsel %vm1393_vm4, %v1325_v17, %v1370_v4 }
 0x296   :  { %1448 = vrot.lane.b32.xlu1 %v3631_v1, %s3009_s5  ;;  %1450 = vrot.lane.b32.xlu0 %v3634_v50, %s3009_s5 }
 0x298   :  { %v1372_v0 = vpop.permute.xlu1 %1371  ;;  %v1374_v43 = vpop.permute.xlu0 %1373 }
 0x299   :  { %v3641_v32 = vsel %vm1393_vm4, %v1326_v21, %v1372_v0  ;;  %v3644_v29 = vsel %vm1393_vm4, %v1327_v40, %v1374_v43 }
 0x29a   :  { %1452 = vrot.lane.b32.xlu1 %v3641_v32, %s3009_s5  ;;  %1454 = vrot.lane.b32.xlu0 %v3644_v29, %s3009_s5 }
 0x29c   :  { %v1376_v2 = vpop.permute.xlu1 %1375 }
 0x29d   :  { %v3651_v3 = vsel %vm1393_vm4, %v1328_v22, %v1376_v2 }
 0x29e   :  { %1456 = vrot.lane.b32.xlu1 %v3651_v3, %s3009_s5 }
 0x2c3   :  { %v2898_v30 = vpop.f32.mrf.mxu1 }
 0x2c4   :  { %v3678_v16 = vadd.f32 %v2898_v30, %v2754_v11 }
 0x2c5   :  { %v658_v7 = vpop.f32.mrf.mxu1 }
 0x2c6   :  { %v3668_v13 = vadd.f32 %v2754_v11, %v658_v7  ;;  %v742_v48 = vsel %vm265_vm2, %v3678_v16, 0.0 }
 0x2c8   :  { %v2901_v12 = vpop.f32.mrf.mxu1  ;;  %v739_v41 = vsel %vm265_vm2, %v3668_v13, 0.0 }
 0x2c9   :  { %v3684_v17 = vadd.f32 %v2901_v12, %v2754_v11 }
 0x2ca   :  { %v668_v56 = vpop.f32.mrf.mxu1 }
 0x2cb   :  { %v3670_v10 = vadd.f32 %v2754_v11, %v668_v56  ;;  %v748_v31 = vsel %vm265_vm2, %v3684_v17, 0.0 }
 0x2cc   :  { %v2904_v8 = vpop.f32.mrf.mxu1 }
 0x2cd   :  { %v745_v15 = vsel %vm265_vm2, %v3670_v10, 0.0  ;;  %v3692_v25 = vadd.f32 %v2904_v8, %v2754_v11 }
 0x2ce   :  { %v678_v34 = vpop.f32.mrf.mxu1 }
 0x2cf   :  { %v3674_v55 = vadd.f32 %v2754_v11, %v678_v34  ;;  %v754_v45 = vsel %vm265_vm2, %v3692_v25, 0.0 }
 0x2d0   :  { %v2907_v9 = vpop.f32.mrf.mxu1 }
 0x2d1   :  { %v751_v62 = vsel %vm265_vm2, %v3674_v55, 0.0 }
 0x2d2   :  { %v688_v14 = vpop.f32.mrf.mxu1 }
 0x2d3   :  { %v3680_v36 = vadd.f32 %v2754_v11, %v688_v14 }
 0x2d4   :  { %v2910_v35 = vpop.f32.mrf.mxu1 }
 0x2d5   :  { %v757_v40 = vsel %vm265_vm2, %v3680_v36, 0.0  ;;  %v3706_v61 = vadd.f32 %v2910_v35, %v2754_v11 }
 0x2d6   :  { %v698_v38 = vpop.f32.mrf.mxu1 }
 0x2d7   :  { %v3688_v18 = vadd.f32 %v2754_v11, %v698_v38  ;;  %v766_v49 = vsel %vm265_vm2, %v3706_v61, 0.0 }
 0x2d8   :  { %v2913_v39 = vpop.f32.mrf.mxu1 }
 0x2d9   :  { %v763_v42 = vsel %vm265_vm2, %v3688_v18, 0.0  ;;  %v3710_v53 = vadd.f32 %v2913_v39, %v2754_v11 }
 0x2da   :  { %v708_v21 = vpop.f32.mrf.mxu1 }
 0x2db   :  { %v3696_v22 = vadd.f32 %v2754_v11, %v708_v21  ;;  %v772_v23 = vsel %vm265_vm2, %v3710_v53, 0.0 }
 0x2dc   :  { %v2916_v60 = vpop.f32.mrf.mxu1 }
 0x2de   :  { %v718_v4 = vpop.f32.mrf.mxu1 }
 0x2df   :  { %v3728_v43 = vadd.f32 %v2754_v11, %v718_v4 }
 0x2e0   :  { %v2919_v0 = vpop.f32.mrf.mxu1 }
 0x2e2   :  { %v728_v2 = vpop.f32.mrf.mxu1 }
 0x2ec   :  { %v1427_v5 = vpop.permute.xlu0 %1426 }
 0x2ed   :  { %v3656_v6 = vsel %vm1474_vm5, %v1394_v24, %v1427_v5  ;;  %v3700_v24 = vadd.f32 %v2907_v9, %v2754_v11  ;;  %v3730_v5 = vadd.f32 %v2754_v11, %v728_v2 }
 0x2ee   :  { %1507 = vrot.lane.b32.xlu0 %v3656_v6, %s3010_s16 }
 0x2ef   :  { %v760_v19 = vsel %vm265_vm2, %v3700_v24, 0.0  ;;  %v781_v30 = vsel %vm265_vm2, %v3730_v5, 0.0 }
 0x2f0   :  { %v1429_v33 = vpop.permute.xlu1 %1428 }
 0x2f1   :  { %v3661_v26 = vsel %vm1474_vm5, %v1395_v46, %v1429_v33  ;;  %v769_v46 = vsel %vm265_vm2, %v3696_v22, 0.0  ;;  %v3738_v33 = vadd.f32 %v2919_v0, %v2754_v11 }
 0x2f2   :  { %1509 = vrot.lane.b32.xlu1 %v3661_v26, %s3010_s16 }
 0x2f3   :  { %v784_v12 = vsel %vm265_vm2, %v3738_v33, 0.0 }
 0x2f4   :  { %v1431_v44 = vpop.permute.xlu0 %1430 }
 0x2f5   :  { %v3718_v28 = vsel %vm1474_vm5, %v3581_v47, %v1431_v44  ;;  %v775_v47 = vsel %vm265_vm2, %v3728_v43, 0.0 }
 0x2f8   :  { %v1433_v20 = vpop.permute.xlu1 %1432  ;;  %v3744_v56 = vpop.permute.xlu0 %1434 }
 0x2f9   :  { %v3724_v58 = vsel %vm1474_vm5, %v3587_v63, %v1433_v20  ;;  %v3736_v63 = vadd.f32 %v2916_v60, %v2754_v11 }
 0x2fb   :  { %v778_v7 = vsel %vm265_vm2, %v3736_v63, 0.0 }
 0x2fc   :  { %v3746_v8 = vpop.permute.xlu0 %1438  ;;  %v3748_v34 = vpop.permute.xlu1 %1436 }
 0x300   :  { %v3750_v9 = vpop.permute.xlu0 %1442  ;;  %v3752_v14 = vpop.permute.xlu1 %1440 }
 0x304   :  { %v3754_v11 = vpop.permute.xlu0 %1446 }
 0x308   :  { %v3758_v35 = vpop.permute.xlu0 %1450 }
 0x30c   :  { %v3762_v38 = vpop.permute.xlu0 %1454 }
 0x30d   :  { %740 = vadd.xlane.f32.xlu0 %v739_v41  ;;  %v3756_v41 = vpop.permute.xlu1 %1444 }
 0x311   :  { %746 = vadd.xlane.f32.xlu0 %v745_v15  ;;  %v3760_v15 = vpop.permute.xlu1 %1448 }
 0x315   :  { %752 = vadd.xlane.f32.xlu0 %v751_v62  ;;  %v3764_v62 = vpop.permute.xlu1 %1452 }
 0x316   :  { %743 = vadd.xlane.f32.xlu1 %v742_v48 }
 0x319   :  { %758 = vadd.xlane.f32.xlu0 %v757_v40  ;;  %v3768_v40 = vpop.permute.xlu1 %1456 }
 0x31a   :  { %749 = vadd.xlane.f32.xlu1 %v748_v31 }
 0x31d   :  { %764 = vadd.xlane.f32.xlu0 %v763_v42 }
 0x31e   :  { %755 = vadd.xlane.f32.xlu1 %v754_v45 }
 0x321   :  { %770 = vadd.xlane.f32.xlu0 %v769_v46 }
 0x322   :  { %761 = vadd.xlane.f32.xlu1 %v760_v19 }
 0x326   :  { %767 = vadd.xlane.f32.xlu1 %v766_v49 }
 0x32a   :  { %773 = vadd.xlane.f32.xlu1 %v772_v23 }
 0x337   :  { %1511 = vrot.lane.b32.xlu0 %v3718_v28, %s3010_s16 }
 0x33b   :  { %1513 = vrot.lane.b32.xlu1 %v3724_v58, %s3010_s16 }
 0x356   :  { %776 = vadd.xlane.f32.xlu0 %v775_v47 }
 0x35a   :  { %782 = vadd.xlane.f32.xlu0 %v781_v30 }
 0x35f   :  { %779 = vadd.xlane.f32.xlu1 %v778_v7 }
 0x360   :  { %v3766_v39 = vpop.permute.xlu0 %1507 }
 0x363   :  { %785 = vadd.xlane.f32.xlu1 %v784_v12 }
 0x364   :  { %v3773_v45 = vpop.permute.xlu1 %1509 }
 0x396   :  { %v741_v48 = vpop.xlane.xlu0 %740 }
 0x397   :  { %v787_v21 = vmul.f32 0.0625, %v741_v48 }
 0x399   :  { %v3771_v31 = vsub.f32 %v3668_v13, %v787_v21 }
 0x39a   :  { %v747_v42 = vpop.xlane.xlu0 %746 }
 0x39b   :  { %v789_v46 = vmul.f32 0.0625, %v747_v42  ;;  %v819_v19 = vmul.f32 %v3771_v31, %v3771_v31 }
 0x39d   :  { %v3778_v49 = vsub.f32 %v3670_v10, %v789_v46  ;;  %v835_v23 = vsel %vm265_vm2, %v819_v19, 0.0 }
 0x39e   :  { %836 = vadd.xlane.f32.xlu0 %v835_v23  ;;  %v753_v44 = vpop.xlane.xlu0 %752 }
 0x39f   :  { %v791_v20 = vmul.f32 0.0625, %v753_v44  ;;  %v744_v60 = vpop.xlane.xlu1 %743  ;;  %v821_v13 = vmul.f32 %v3778_v49, %v3778_v49 }
 0x3a0   :  { %v788_v4 = vmul.f32 0.0625, %v744_v60 }
 0x3a1   :  { %v3784_v0 = vsub.f32 %v3674_v55, %v791_v20  ;;  %v841_v2 = vsel %vm265_vm2, %v821_v13, 0.0 }
 0x3a2   :  { %v3788_v47 = vsub.f32 %v3678_v16, %v788_v4  ;;  %842 = vadd.xlane.f32.xlu0 %v841_v2  ;;  %v759_v10 = vpop.xlane.xlu0 %758 }
 0x3a3   :  { %v793_v30 = vmul.f32 0.0625, %v759_v10  ;;  %v750_v7 = vpop.xlane.xlu1 %749  ;;  %v823_v12 = vmul.f32 %v3784_v0, %v3784_v0 }
 0x3a4   :  { %v790_v48 = vmul.f32 0.0625, %v750_v7  ;;  %v820_v21 = vmul.f32 %v3788_v47, %v3788_v47 }
 0x3a5   :  { %v3795_v42 = vsub.f32 %v3680_v36, %v793_v30  ;;  %v847_v55 = vsel %vm265_vm2, %v823_v12, 0.0 }
 0x3a6   :  { %v3799_v46 = vsub.f32 %v3684_v17, %v790_v48  ;;  %848 = vadd.xlane.f32.xlu0 %v847_v55  ;;  %v765_v16 = vpop.xlane.xlu0 %764  ;;  %v838_v19 = vsel %vm265_vm2, %v820_v21, 0.0 }
 0x3a7   :  { %v795_v23 = vmul.f32 0.0625, %v765_v16  ;;  %v756_v44 = vpop.xlane.xlu1 %755  ;;  %839 = vadd.xlane.f32.xlu1 %v838_v19  ;;  %v825_v20 = vmul.f32 %v3795_v42, %v3795_v42 }
 0x3a8   :  { %v792_v60 = vmul.f32 0.0625, %v756_v44  ;;  %v822_v36 = vmul.f32 %v3799_v46, %v3799_v46 }
 0x3a9   :  { %v3807_v13 = vsub.f32 %v3688_v18, %v795_v23  ;;  %v853_v17 = vsel %vm265_vm2, %v825_v20, 0.0 }
 0x3aa   :  { %v3811_v4 = vsub.f32 %v3692_v25, %v792_v60  ;;  %854 = vadd.xlane.f32.xlu0 %v853_v17  ;;  %v771_v2 = vpop.xlane.xlu0 %770  ;;  %v844_v10 = vsel %vm265_vm2, %v822_v36, 0.0 }
 0x3ab   :  { %v797_v30 = vmul.f32 0.0625, %v771_v2  ;;  %v762_v7 = vpop.xlane.xlu1 %761  ;;  %845 = vadd.xlane.f32.xlu1 %v844_v10  ;;  %v827_v12 = vmul.f32 %v3807_v13, %v3807_v13 }
 0x3ac   :  { %v794_v48 = vmul.f32 0.0625, %v762_v7  ;;  %v824_v18 = vmul.f32 %v3811_v4, %v3811_v4 }
 0x3ad   :  { %v3819_v21 = vsub.f32 %v3696_v22, %v797_v30  ;;  %v859_v25 = vsel %vm265_vm2, %v827_v12, 0.0  ;;  %v1026_v12 = vld [vmem:[%s6013_s10 + $0x18] sm:$0xff] }
 0x3ae   :  { %v3823_v55 = vsub.f32 %v3700_v24, %v794_v48  ;;  %860 = vadd.xlane.f32.xlu0 %v859_v25  ;;  %v850_v16 = vsel %vm265_vm2, %v824_v18, 0.0  ;;  %v2792_v48 = vld [vmem:[%s6013_s10 + $0x38] sm:$0xff]  ;;  %1115 = vmatprep.subr.mxu0 %v1026_v12  ;;  %v2791_v18 = vld [vmem:[%s6013_s10 + $0x30] sm:$0xff]  ;;  %v1024_v25 = vld [vmem:[%s6013_s10 + $0x8] sm:$0xff] }
 0x3af   :  { %v768_v19 = vpop.xlane.xlu1 %767  ;;  %851 = vadd.xlane.f32.xlu1 %v850_v16  ;;  %v829_v23 = vmul.f32 %v3819_v21, %v3819_v21  ;;  %1650 = vmatprep.subr.mxu1 %v2792_v48  ;;  %v2790_v16 = vld [vmem:[%s6013_s10 + $0x28] sm:$0xff] }
 0x3b0   :  { %v796_v44 = vmul.f32 0.0625, %v768_v19  ;;  %v826_v20 = vmul.f32 %v3823_v55, %v3823_v55  ;;  %1651 = vmatpush1.msra.mxu1 %v2791_v18  ;;  %v1023_v19 = vld [vmem:[%s6013_s10] sm:$0xff]  ;;  %v3896_v18 = vsel %vm1474_vm5, %v3599_v52, %v3748_v34 }
 0x3b1   :  { %v865_v22 = vsel %vm265_vm2, %v829_v23, 0.0  ;;  %1652 = vmatprep.subr.mxu1 %v2790_v16  ;;  %v2789_v23 = vld [vmem:[%s6013_s10 + $0x20] sm:$0xff] }
 0x3b2   :  { %v3832_v60 = vsub.f32 %v3706_v61, %v796_v44  ;;  %866 = vadd.xlane.f32.xlu0 %v865_v22  ;;  %v856_v24 = vsel %vm265_vm2, %v826_v20, 0.0  ;;  %v6021_v44 = vmov 0.0   ;;  %1653 = vmatpush1.msra.mxu1 %v2789_v23  ;;  %v3870_v20 = vpop.permute.xlu0 %1511 }
 0x3b3   :  { %v774_v36 = vpop.xlane.xlu1 %773  ;;  %857 = vadd.xlane.f32.xlu1 %v856_v24  ;;  %1151 = vmatprep.mubr.f32.mxu0 %v6021_v44 }
 0x3b4   :  { %v798_v17 = vmul.f32 0.0625, %v774_v36  ;;  %v828_v2 = vmul.f32 %v3832_v60, %v3832_v60  ;;  %1686 = vmatprep.mubr.f32.mxu1 %v6021_v44 }
 0x3b6   :  { %v3838_v10 = vsub.f32 %v3710_v53, %v798_v17  ;;  %v862_v30 = vsel %vm265_vm2, %v828_v2, 0.0  ;;  %v1025_v53 = vld [vmem:[%s6013_s10 + $0x10] sm:$0xff] }
 0x3b7   :  { %863 = vadd.xlane.f32.xlu1 %v862_v30  ;;  %1116 = vmatpush1.msra.mxu0 %v1025_v53  ;;  %v3875_v17 = vpop.permute.xlu1 %1513 }
 0x3b8   :  { %v830_v7 = vmul.f32 %v3838_v10, %v3838_v10  ;;  %1117 = vmatprep.subr.mxu0 %v1024_v25 }
 0x3b9   :  { %1118 = vmatpush1.msra.mxu0 %v1023_v19 }
 0x3ba   :  { %v868_v61 = vsel %vm265_vm2, %v830_v7, 0.0 }
 0x3bb   :  { %869 = vadd.xlane.f32.xlu1 %v868_v61 }
 0x3df   :  { %v777_v22 = vpop.xlane.xlu0 %776 }
 0x3e0   :  { %v799_v24 = vmul.f32 0.0625, %v777_v22 }
 0x3e2   :  { %v3873_v36 = vsub.f32 %v3728_v43, %v799_v24  ;;  %v3889_v43 = vsel %vm1474_vm5, %v3591_v51, %v3744_v56 }
 0x3e4   :  { %v831_v2 = vmul.f32 %v3873_v36, %v3873_v36 }
 0x3e6   :  { %v871_v30 = vsel %vm265_vm2, %v831_v2, 0.0 }
 0x3e7   :  { %872 = vadd.xlane.f32.xlu0 %v871_v30 }
 0x3e8   :  { %v780_v7 = vpop.xlane.xlu1 %779 }
 0x3e9   :  { %v800_v61 = vmul.f32 0.0625, %v780_v7 }
 0x3eb   :  { %v3881_v12 = vsub.f32 %v3736_v63, %v800_v61  ;;  %v783_v63 = vpop.xlane.xlu0 %782 }
 0x3ec   :  { %v801_v25 = vmul.f32 0.0625, %v783_v63  ;;  %v786_v19 = vpop.xlane.xlu1 %785 }
 0x3ed   :  { %v832_v48 = vmul.f32 %v3881_v12, %v3881_v12  ;;  %v802_v56 = vmul.f32 0.0625, %v786_v19 }
 0x3ee   :  { %v3901_v16 = vsub.f32 %v3730_v5, %v801_v25 }
 0x3ef   :  { %v874_v53 = vsel %vm265_vm2, %v832_v48, 0.0  ;;  %v3907_v22 = vsub.f32 %v3738_v33, %v802_v56  ;;  %v3915_v33 = vsel %vm1474_vm5, %v3603_v37, %v3746_v8 }
 0x3f0   :  { %875 = vadd.xlane.f32.xlu1 %v874_v53  ;;  %v833_v51 = vmul.f32 %v3901_v16, %v3901_v16 }
 0x3f1   :  { %v834_v52 = vmul.f32 %v3907_v22, %v3907_v22 }
 0x3f2   :  { %v877_v23 = vsel %vm265_vm2, %v833_v51, 0.0 }
 0x3f3   :  { %v880_v34 = vsel %vm265_vm2, %v834_v52, 0.0  ;;  %v3927_v52 = vsel %vm1474_vm5, %v3614_v57, %v3750_v9  ;;  %v3941_v57 = vsel %vm1474_vm5, %v3624_v27, %v3754_v11  ;;  %v3956_v27 = vld [vmem:[%s6015_s9] ss:$0 sm:$0xff]  ;;  %v3961_v11 = vsel %vm1474_vm5, %v3631_v1, %v3760_v15 }
 0x3f4   :  { %6072 = vst [vmem:[#allocation2_spill] sm:$0xff] %v3927_v52  ;;  %6074 = vst [vmem:[#allocation4_spill] sm:$0xff] %v3941_v57  ;;  %v3977_v15 = vsel %vm1474_vm5, %v3641_v32, %v3764_v62 }
 0x3f5   :  { %6075 = vst [vmem:[#allocation5_spill] sm:$0xff] %v3961_v11  ;;  %6077 = vst [vmem:[#allocation7_spill] sm:$0xff] %v3977_v15 }
 0x3fd   :  { %1515 = vrot.lane.b32.xlu0 %v3889_v43, %s3010_s16 }
 0x401   :  { %1517 = vrot.lane.b32.xlu1 %v3896_v18, %s3010_s16 }
 0x41c   :  { %878 = vadd.xlane.f32.xlu0 %v877_v23  ;;  %v3922_v23 = vsel %vm1474_vm5, %v3610_v54, %v3752_v14  ;;  %v3936_v54 = vsel %vm1474_vm5, %v3621_v59, %v3756_v41 }
 0x41d   :  { %6073 = vst [vmem:[#allocation3_spill] sm:$0xff] %v3936_v54 }
 0x425   :  { %881 = vadd.xlane.f32.xlu1 %v880_v34 }
 0x427   :  { %v837_v24 = vpop.xlane.xlu0 %836 }
 0x428   :  { %v883_v5 = vmul.f32 0.0625, %v837_v24 }
 0x42a   :  { %v899_v2 = vadd.f32 1e-05, %v883_v5 }
 0x42b   :  { %v843_v30 = vpop.xlane.xlu0 %842 }
 0x42c   :  { %2959 = vrsqrt.f32 %v899_v2  ;;  %v885_v7 = vmul.f32 0.0625, %v843_v30  ;;  %v3946_v2 = vld [vmem:[%s6014_s8] ss:$0 sm:$0xff] }
 0x42e   :  { %v901_v61 = vadd.f32 1e-05, %v885_v7 }
 0x42f   :  { %v849_v48 = vpop.xlane.xlu0 %848 }
 0x430   :  { %2961 = vrsqrt.f32 %v901_v61  ;;  %v887_v53 = vmul.f32 0.0625, %v849_v48  ;;  %v840_v63 = vpop.xlane.xlu1 %839  ;;  %v3967_v48 = vsel %vm1474_vm5, %v3634_v50, %v3758_v35  ;;  %v3985_v35 = vsel %vm1474_vm5, %v3644_v29, %v3762_v38 }
 0x431   :  { %v884_v25 = vmul.f32 0.0625, %v840_v63  ;;  %6076 = vst [vmem:[#allocation6_spill] sm:$0xff] %v3967_v48  ;;  %6078 = vst [vmem:[#allocation8_spill] sm:$0xff] %v3985_v35  ;;  %v3999_v29 = vsel %vm1474_vm5, %v3651_v3, %v3768_v40  ;;  %v4010_v3 = vld [vmem:[%s6009_s1] sm:$0xff] }
 0x432   :  { %1519 = vrot.lane.b32.xlu0 %v3915_v33, %s3010_s16  ;;  %v903_v51 = vadd.f32 1e-05, %v887_v53  ;;  %6079 = vst [vmem:[#allocation9_spill] sm:$0xff] %v3999_v29 }
 0x433   :  { %v900_v19 = vadd.f32 1e-05, %v884_v25  ;;  %v855_v8 = vpop.xlane.xlu0 %854 }
 0x434   :  { %v846_v56 = vpop.xlane.xlu1 %845  ;;  %v889_v9 = vmul.f32 0.0625, %v855_v8 }
 0x435   :  { %2963 = vrsqrt.f32 %v900_v19  ;;  %v886_v37 = vmul.f32 0.0625, %v846_v56 }
 0x436   :  { %1521 = vrot.lane.b32.xlu1 %v3922_v23, %s3010_s16  ;;  %1523 = vrot.lane.b32.xlu0 %v3927_v52, %s3010_s16  ;;  %2965 = vrsqrt.f32 %v903_v51 }
 0x437   :  { %v902_v34 = vadd.f32 1e-05, %v886_v37  ;;  %v861_v63 = vpop.xlane.xlu0 %860 }
 0x438   :  { %v852_v14 = vpop.xlane.xlu1 %851  ;;  %v891_v19 = vmul.f32 0.0625, %v861_v63 }
 0x439   :  { %v2960_v24 = vpop.eup %2959  ;;  %2967 = vrsqrt.f32 %v902_v34  ;;  %v888_v5 = vmul.f32 0.0625, %v852_v14 }
 0x43a   :  { %1525 = vrot.lane.b32.xlu1 %v3936_v54, %s3010_s16  ;;  %1527 = vrot.lane.b32.xlu0 %v3941_v57, %s3010_s16  ;;  %v931_v59 = vmul.f32 %v2960_v24, %v3771_v31  ;;  %v905_v31 = vadd.f32 1e-05, %v889_v9 }
 0x43b   :  { %v904_v41 = vadd.f32 1e-05, %v888_v5  ;;  %v867_v8 = vpop.xlane.xlu0 %866 }
 0x43c   :  { %v858_v30 = vpop.xlane.xlu1 %857  ;;  %v953_v7 = vmul.f32 %v3946_v2, %v931_v59  ;;  %v893_v9 = vmul.f32 0.0625, %v867_v8 }
 0x43d   :  { %v2962_v61 = vpop.eup %2961  ;;  %2969 = vrsqrt.f32 %v904_v41  ;;  %v890_v53 = vmul.f32 0.0625, %v858_v30 }
 0x43e   :  { %1529 = vrot.lane.b32.xlu1 %v3961_v11, %s3010_s16  ;;  %1531 = vrot.lane.b32.xlu0 %v3967_v48, %s3010_s16  ;;  %v975_v1 = vadd.f32 %v3956_v27, %v953_v7  ;;  %v933_v50 = vmul.f32 %v2962_v61, %v3778_v49  ;;  %2971 = vrsqrt.f32 %v905_v31  ;;  %v907_v49 = vadd.f32 1e-05, %v891_v19 }
 0x43f   :  { %v906_v51 = vadd.f32 1e-05, %v890_v53  ;;  %v4024_v53 = vld [vmem:[%s6009_s1 + $0x10] sm:$0xff]  ;;  %v909_v63 = vadd.f32 1e-05, %v893_v9 }
 0x440   :  { %v3979_v25 = vmax.f32 %v975_v1, 0.0  ;;  %v864_v37 = vpop.xlane.xlu1 %863  ;;  %v955_v38 = vmul.f32 %v3946_v2, %v933_v50 }
 0x441   :  { %2973 = vrsqrt.f32 %v906_v51  ;;  %v892_v34 = vmul.f32 0.0625, %v864_v37 }
 0x442   :  { %v2964_v56 = vpop.eup %2963  ;;  %1533 = vrot.lane.b32.xlu1 %v3977_v15, %s3010_s16  ;;  %1535 = vrot.lane.b32.xlu0 %v3985_v35, %s3010_s16  ;;  %v977_v5 = vadd.f32 %v3956_v27, %v955_v38  ;;  %2975 = vrsqrt.f32 %v907_v49  ;;  %v4059_v38 = vld [vmem:[%s6009_s1 + $0x18] sm:$0xff] }
 0x443   :  { %2773 = vmatmul.mubr.msk.f32.vlgmr.msra.gmra.mxu0 %vm265_vm2, %v3979_v25  ;;  %2794 = vmatmul.mubr.msk.f32.vlgmr.msra.gmra.mxu1 %vm265_vm2, %v3979_v25  ;;  %v932_v32 = vmul.f32 %v2964_v56, %v3788_v47  ;;  %v2966_v62 = vpop.eup %2965  ;;  %v908_v41 = vadd.f32 1e-05, %v892_v34 }
 0x444   :  { %1157 = vmatprep.mubr.f32.mxu0 %v6021_v44  ;;  %1692 = vmatprep.mubr.f32.mxu1 %v6021_v44  ;;  %v935_v59 = vmul.f32 %v2966_v62, %v3784_v0  ;;  %v870_v31 = vpop.xlane.xlu1 %869  ;;  %v4031_v0 = vld [vmem:[%s6009_s1 + $0x8] sm:$0xff]  ;;  %v4044_v1 = vmax.f32 %v977_v5, 0.0 }
 0x445   :  { %v954_v14 = vmul.f32 %v3946_v2, %v932_v32  ;;  %2977 = vrsqrt.f32 %v908_v41  ;;  %v894_v19 = vmul.f32 0.0625, %v870_v31  ;;  %v4052_v32 = vld [vmem:[%s6009_s1 + $0x20] sm:$0xff]  ;;  %v4115_v31 = vld [vmem:[%s6009_s1 + $0x38] sm:$0xff] }
 0x446   :  { %v2968_v24 = vpop.eup %2967  ;;  %1537 = vrot.lane.b32.xlu1 %v3999_v29, %s3010_s16  ;;  %1783 = vrot.lane.b32.xlu0 %v4010_v3, %s3012_s17  ;;  %v957_v50 = vmul.f32 %v3946_v2, %v935_v59  ;;  %2979 = vrsqrt.f32 %v909_v63 }
 0x447   :  { %v976_v40 = vadd.f32 %v3956_v27, %v954_v14  ;;  %v934_v47 = vmul.f32 %v2968_v24, %v3799_v46  ;;  %v2813_v46 = vld [vmem:[%s6013_s10 + $0x58] sm:$0xff]  ;;  %v910_v49 = vadd.f32 1e-05, %v894_v19 }
 0x448   :  { %2197 = vmatprep.subr.mxu0 %v2813_v46  ;;  %v979_v62 = vadd.f32 %v3956_v27, %v957_v50 }
 0x449   :  { %v4018_v30 = vmax.f32 %v976_v40, 0.0  ;;  %v956_v7 = vmul.f32 %v3946_v2, %v934_v47  ;;  %v4080_v40 = vld [vmem:[%s6009_s1 + $0x30] sm:$0xff]  ;;  %v4087_v47 = vld [vmem:[%s6009_s1 + $0x28] sm:$0xff]  ;;  %2981 = vrsqrt.f32 %v910_v49 }
 0x44a   :  { %v2970_v61 = vpop.eup %2969  ;;  %1787 = vrot.lane.b32.xlu0 %v4024_v53, %s3012_s17  ;;  %1785 = vrot.lane.b32.xlu1 %v4031_v0, %s3012_s17  ;;  %v4100_v9 = vmax.f32 %v979_v62, 0.0 }
 0x44b   :  { %2774 = vmatmul.mubr.msk.f32.gmra.mxu0 %vm265_vm2, %v4018_v30  ;;  %2795 = vmatmul.mubr.msk.f32.gmra.mxu1 %vm265_vm2, %v4018_v30  ;;  %v978_v51 = vadd.f32 %v3956_v27, %v956_v7  ;;  %v936_v56 = vmul.f32 %v2970_v61, %v3811_v4  ;;  %v2972_v37 = vpop.eup %2971  ;;  %v2812_v4 = vld [vmem:[%s6013_s10 + $0x50] sm:$0xff]  ;;  %v4108_v61 = vld [vmem:[%s6009_s1 + $0x40] sm:$0xff] }
 0x44c   :  { %1163 = vmatprep.mubr.f32.mxu0 %v6021_v44  ;;  %1698 = vmatprep.mubr.f32.mxu1 %v6021_v44  ;;  %v937_v14 = vmul.f32 %v2972_v37, %v3795_v42  ;;  %v2811_v42 = vld [vmem:[%s6013_s10 + $0x48] sm:$0xff] }
 0x44d   :  { %v4073_v8 = vmax.f32 %v978_v51, 0.0  ;;  %v958_v34 = vmul.f32 %v3946_v2, %v936_v56  ;;  %2198 = vmatpush1.msra.mxu0 %v2812_v4  ;;  %v4136_v56 = vld [vmem:[%s6009_s1 + $0x50] sm:$0xff]  ;;  %v4143_v37 = vld [vmem:[%s6009_s1 + $0x48] sm:$0xff] }
 0x44e   :  { %1791 = vrot.lane.b32.xlu0 %v4052_v32, %s3012_s17  ;;  %1789 = vrot.lane.b32.xlu1 %v4059_v38, %s3012_s17  ;;  %v2974_v24 = vpop.eup %2973  ;;  %v959_v59 = vmul.f32 %v3946_v2, %v937_v14  ;;  %v4161_v14 = vld [vmem:[%s6009_s1 + $0x60] sm:$0xff] }
 0x44f   :  { %2775 = vmatmul.mubr.msk.f32.gmra.mxu0 %vm265_vm2, %v4044_v1  ;;  %2796 = vmatmul.mubr.msk.f32.gmra.mxu1 %vm265_vm2, %v4044_v1  ;;  %v980_v5 = vadd.f32 %v3956_v27, %v958_v34  ;;  %v938_v41 = vmul.f32 %v2974_v24, %v3823_v55  ;;  %v2976_v7 = vpop.eup %2975  ;;  %v2810_v55 = vld [vmem:[%s6013_s10 + $0x40] sm:$0xff]  ;;  %v4168_v24 = vld [vmem:[%s6009_s1 + $0x58] sm:$0xff] }
 0x450   :  { %1169 = vmatprep.mubr.f32.mxu0 %v6021_v44  ;;  %1704 = vmatprep.mubr.f32.mxu1 %v6021_v44  ;;  %v981_v63 = vadd.f32 %v3956_v27, %v959_v59  ;;  %v939_v19 = vmul.f32 %v2976_v7, %v3807_v13  ;;  %v4186_v7 = vld [vmem:[%s6009_s1 + $0x70] sm:$0xff] }
 0x451   :  { %2199 = vmatprep.subr.mxu0 %v2811_v42  ;;  %v4128_v46 = vmax.f32 %v980_v5, 0.0  ;;  %v960_v50 = vmul.f32 %v3946_v2, %v938_v41 }
 0x452   :  { %1795 = vrot.lane.b32.xlu0 %v4080_v40, %s3012_s17  ;;  %1793 = vrot.lane.b32.xlu1 %v4087_v47, %s3012_s17  ;;  %v2978_v51 = vpop.eup %2977  ;;  %v4153_v4 = vmax.f32 %v981_v63, 0.0  ;;  %v961_v49 = vmul.f32 %v3946_v2, %v939_v19 }
 0x453   :  { %2776 = vmatmul.mubr.msk.f32.gmra.mxu0 %vm265_vm2, %v4073_v8  ;;  %2797 = vmatmul.mubr.msk.f32.gmra.mxu1 %vm265_vm2, %v4073_v8  ;;  %v2980_v13 = vpop.eup %2979  ;;  %v982_v62 = vadd.f32 %v3956_v27, %v960_v50  ;;  %v940_v34 = vmul.f32 %v2978_v51, %v3832_v60  ;;  %v4213_v51 = vld [vmem:[%s6009_s1 + $0x78] sm:$0xff] }
 0x454   :  { %1175 = vmatprep.mubr.f32.mxu0 %v6021_v44  ;;  %1710 = vmatprep.mubr.f32.mxu1 %v6021_v44  ;;  %v983_v42 = vadd.f32 %v3956_v27, %v961_v49  ;;  %v941_v59 = vmul.f32 %v2980_v13, %v3819_v21 }
 0x455   :  { %2200 = vmatpush1.msra.mxu0 %v2810_v55  ;;  %v4178_v60 = vmax.f32 %v982_v62, 0.0  ;;  %v962_v5 = vmul.f32 %v3946_v2, %v940_v34  ;;  %v4193_v55 = vld [vmem:[%s6009_s1 + $0x68] sm:$0xff] }
 0x456   :  { %1799 = vrot.lane.b32.xlu0 %v4108_v61, %s3012_s17  ;;  %1797 = vrot.lane.b32.xlu1 %v4115_v31, %s3012_s17  ;;  %v2982_v41 = vpop.eup %2981  ;;  %v4203_v21 = vmax.f32 %v983_v42, 0.0  ;;  %v963_v50 = vmul.f32 %v3946_v2, %v941_v59 }
 0x457   :  { %2777 = vmatmul.mubr.msk.f32.gmra.mxu0 %vm265_vm2, %v4100_v9  ;;  %2798 = vmatmul.mubr.msk.f32.gmra.mxu1 %vm265_vm2, %v4100_v9  ;;  %v984_v63 = vadd.f32 %v3956_v27, %v962_v5  ;;  %v942_v19 = vmul.f32 %v2982_v41, %v3838_v10 }
 0x458   :  { %1181 = vmatprep.mubr.f32.mxu0 %v6021_v44  ;;  %1716 = vmatprep.mubr.f32.mxu1 %v6021_v44  ;;  %v985_v13 = vadd.f32 %v3956_v27, %v963_v50 }
 0x459   :  { %v4223_v10 = vmax.f32 %v984_v63, 0.0  ;;  %v964_v62 = vmul.f32 %v3946_v2, %v942_v19 }
 0x45a   :  { %1803 = vrot.lane.b32.xlu0 %v4136_v56, %s3012_s17  ;;  %1801 = vrot.lane.b32.xlu1 %v4143_v37, %s3012_s17  ;;  %v4237_v49 = vmax.f32 %v985_v13, 0.0 }
 0x45b   :  { %2778 = vmatmul.mubr.msk.f32.gmra.mxu0 %vm265_vm2, %v4128_v46  ;;  %2799 = vmatmul.mubr.msk.f32.gmra.mxu1 %vm265_vm2, %v4128_v46  ;;  %v986_v34 = vadd.f32 %v3956_v27, %v964_v62 }
 0x45c   :  { %1187 = vmatprep.mubr.f32.mxu0 %v6021_v44  ;;  %1722 = vmatprep.mubr.f32.mxu1 %v6021_v44 }
 0x45d   :  { %v4250_v59 = vmax.f32 %v986_v34, 0.0 }
 0x45e   :  { %1807 = vrot.lane.b32.xlu0 %v4161_v14, %s3012_s17  ;;  %1805 = vrot.lane.b32.xlu1 %v4168_v24, %s3012_s17 }
 0x45f   :  { %2779 = vmatmul.mubr.msk.f32.gmra.mxu0 %vm265_vm2, %v4153_v4  ;;  %2800 = vmatmul.mubr.msk.f32.gmra.mxu1 %vm265_vm2, %v4153_v4 }
 0x460   :  { %1193 = vmatprep.mubr.f32.mxu0 %v6021_v44  ;;  %1728 = vmatprep.mubr.f32.mxu1 %v6021_v44 }
 0x462   :  { %1811 = vrot.lane.b32.xlu0 %v4186_v7, %s3012_s17  ;;  %1809 = vrot.lane.b32.xlu1 %v4193_v55, %s3012_s17 }
 0x463   :  { %2780 = vmatmul.mubr.msk.f32.gmra.mxu0 %vm265_vm2, %v4178_v60  ;;  %2801 = vmatmul.mubr.msk.f32.gmra.mxu1 %vm265_vm2, %v4178_v60 }
 0x464   :  { %1199 = vmatprep.mubr.f32.mxu0 %v6021_v44  ;;  %1734 = vmatprep.mubr.f32.mxu1 %v6021_v44 }
 0x466   :  { %2330 = vrot.lane.b32.xlu0 %v4010_v3, %s3013_s27  ;;  %1813 = vrot.lane.b32.xlu1 %v4213_v51, %s3012_s17 }
 0x467   :  { %2781 = vmatmul.mubr.msk.f32.gmra.mxu0 %vm265_vm2, %v4203_v21  ;;  %2802 = vmatmul.mubr.msk.f32.gmra.mxu1 %vm265_vm2, %v4203_v21 }
 0x468   :  { %1205 = vmatprep.mubr.f32.mxu0 %v6021_v44  ;;  %1740 = vmatprep.mubr.f32.mxu1 %v6021_v44 }
 0x46a   :  { %2334 = vrot.lane.b32.xlu0 %v4024_v53, %s3013_s27  ;;  %2332 = vrot.lane.b32.xlu1 %v4031_v0, %s3013_s27 }
 0x46b   :  { %2782 = vmatmul.mubr.msk.f32.gmra.mxu0 %vm265_vm2, %v4223_v10  ;;  %2803 = vmatmul.mubr.msk.f32.gmra.mxu1 %vm265_vm2, %v4223_v10 }
 0x46c   :  { %1211 = vmatprep.mubr.f32.mxu0 %v6021_v44  ;;  %1746 = vmatprep.mubr.f32.mxu1 %v6021_v44 }
 0x46e   :  { %2338 = vrot.lane.b32.xlu0 %v4052_v32, %s3013_s27  ;;  %2336 = vrot.lane.b32.xlu1 %v4059_v38, %s3013_s27 }
 0x46f   :  { %2783 = vmatmul.mubr.msk.f32.gmra.mxu0 %vm265_vm2, %v4237_v49  ;;  %2804 = vmatmul.mubr.msk.f32.gmra.mxu1 %vm265_vm2, %v4237_v49 }
 0x470   :  { %v873_v42 = vpop.xlane.xlu0 %872  ;;  %1217 = vmatprep.mubr.f32.mxu0 %v6021_v44  ;;  %1752 = vmatprep.mubr.f32.mxu1 %v6021_v44 }
 0x471   :  { %v895_v5 = vmul.f32 0.0625, %v873_v42 }
 0x472   :  { %2342 = vrot.lane.b32.xlu0 %v4080_v40, %s3013_s27  ;;  %2340 = vrot.lane.b32.xlu1 %v4087_v47, %s3013_s27 }
 0x473   :  { %v911_v41 = vadd.f32 1e-05, %v895_v5  ;;  %2784 = vmatmul.mubr.msk.f32.gmra.mxu0 %vm265_vm2, %v4250_v59  ;;  %2805 = vmatmul.mubr.msk.f32.gmra.mxu1 %vm265_vm2, %v4250_v59 }
 0x474   :  { %1223 = vmatprep.mubr.f32.mxu0 %v6021_v44  ;;  %1758 = vmatprep.mubr.f32.mxu1 %v6021_v44 }
 0x475   :  { %2983 = vrsqrt.f32 %v911_v41 }
 0x476   :  { %2346 = vrot.lane.b32.xlu0 %v4108_v61, %s3013_s27  ;;  %2344 = vrot.lane.b32.xlu1 %v4115_v31, %s3013_s27 }
 0x479   :  { %v876_v63 = vpop.xlane.xlu1 %875 }
 0x47a   :  { %v896_v50 = vmul.f32 0.0625, %v876_v63  ;;  %2350 = vrot.lane.b32.xlu0 %v4136_v56, %s3013_s27  ;;  %2348 = vrot.lane.b32.xlu1 %v4143_v37, %s3013_s27 }
 0x47c   :  { %v912_v19 = vadd.f32 1e-05, %v896_v50 }
 0x47e   :  { %2985 = vrsqrt.f32 %v912_v19  ;;  %2354 = vrot.lane.b32.xlu0 %v4161_v14, %s3013_s27  ;;  %2352 = vrot.lane.b32.xlu1 %v4168_v24, %s3013_s27 }
 0x482   :  { %v2984_v13 = vpop.eup %2983  ;;  %2358 = vrot.lane.b32.xlu0 %v4186_v7, %s3013_s27  ;;  %2356 = vrot.lane.b32.xlu1 %v4193_v55, %s3013_s27 }
 0x483   :  { %v943_v62 = vmul.f32 %v2984_v13, %v3873_v36  ;;  %v4302_v13 = vpop.permute.xlu0 %1515 }
 0x485   :  { %v965_v34 = vmul.f32 %v3946_v2, %v943_v62 }
 0x486   :  { %2360 = vrot.lane.b32.xlu1 %v4213_v51, %s3013_s27 }
 0x487   :  { %v987_v42 = vadd.f32 %v3956_v27, %v965_v34 }
 0x489   :  { %v4283_v5 = vmax.f32 %v987_v42, 0.0 }
 0x48b   :  { %v2986_v41 = vpop.eup %2985  ;;  %2785 = vmatmul.mubr.msk.f32.gmra.mxu0 %vm265_vm2, %v4283_v5  ;;  %2806 = vmatmul.mubr.msk.f32.gmra.mxu1 %vm265_vm2, %v4283_v5 }
 0x48c   :  { %1229 = vmatprep.mubr.f32.mxu0 %v6021_v44  ;;  %1764 = vmatprep.mubr.f32.mxu1 %v6021_v44  ;;  %v944_v36 = vmul.f32 %v2986_v41, %v3881_v12  ;;  %v4306_v41 = vpop.permute.xlu1 %1517 }
 0x48e   :  { %v966_v63 = vmul.f32 %v3946_v2, %v944_v36 }
 0x490   :  { %v988_v50 = vadd.f32 %v3956_v27, %v966_v63 }
 0x492   :  { %v4294_v19 = vmax.f32 %v988_v50, 0.0 }
 0x494   :  { %2786 = vmatmul.mubr.msk.f32.gmra.mxu0 %vm265_vm2, %v4294_v19  ;;  %2807 = vmatmul.mubr.msk.f32.gmra.mxu1 %vm265_vm2, %v4294_v19 }
 0x495   :  { %1235 = vmatprep.mubr.f32.mxu0 %v6021_v44  ;;  %1770 = vmatprep.mubr.f32.mxu1 %v6021_v44 }
 0x4a5   :  { %v879_v62 = vpop.xlane.xlu0 %878 }
 0x4a6   :  { %v897_v12 = vmul.f32 0.0625, %v879_v62 }
 0x4a8   :  { %v913_v34 = vadd.f32 1e-05, %v897_v12 }
 0x4a9   :  { %v4304_v42 = vpop.permute.xlu0 %1519 }
 0x4aa   :  { %2987 = vrsqrt.f32 %v913_v34 }
 0x4ad   :  { %v4308_v36 = vpop.permute.xlu0 %1523 }
 0x4ae   :  { %6080 = vst [vmem:[#allocation10_spill] sm:$0xff] %v4308_v36  ;;  %v882_v63 = vpop.xlane.xlu1 %881 }
 0x4af   :  { %v898_v50 = vmul.f32 0.0625, %v882_v63 }
 0x4b1   :  { %v914_v29 = vadd.f32 1e-05, %v898_v50  ;;  %v4310_v15 = vpop.permute.xlu0 %1527 }
 0x4b2   :  { %6081 = vst [vmem:[#allocation11_spill] sm:$0xff] %v4310_v15  ;;  %v4312_v35 = vpop.permute.xlu1 %1521 }
 0x4b3   :  { %2989 = vrsqrt.f32 %v914_v29 }
 0x4b5   :  { %v4314_v44 = vpop.permute.xlu0 %1531 }
 0x4b6   :  { %6082 = vst [vmem:[#allocation12_spill] sm:$0xff] %v4314_v44  ;;  %v4316_v48 = vpop.permute.xlu1 %1525 }
 0x4b7   :  { %6083 = vst [vmem:[#allocation13_spill] sm:$0xff] %v4316_v48  ;;  %v2988_v62 = vpop.eup %2987 }
 0x4b8   :  { %v945_v12 = vmul.f32 %v2988_v62, %v3901_v16  ;;  %v6087_v62 = vmov 0.0  }
 0x4b9   :  { %v4319_v11 = vpop.permute.xlu0 %1535 }
 0x4ba   :  { %6084 = vst [vmem:[#allocation14_spill] sm:$0xff] %v4319_v11  ;;  %v4321_v34 = vpop.permute.xlu1 %1529  ;;  %v967_v54 = vmul.f32 %v3946_v2, %v945_v12 }
 0x4bb   :  { %6085 = vst [vmem:[#allocation15_spill] sm:$0xff] %v4321_v34 }
 0x4bc   :  { %v989_v63 = vadd.f32 %v3956_v27, %v967_v54 }
 0x4bd   :  { %v4325_v50 = vpop.permute.xlu0 %1783 }
 0x4be   :  { %v4327_v57 = vpop.permute.xlu1 %1533  ;;  %v4332_v29 = vsel %vm1312_vm3, %v4325_v50, %v4010_v3  ;;  %v4334_v44 = vmax.f32 %v989_v63, 0.0 }
 0x4bf   :  { %6086 = vst [vmem:[#allocation16_spill] sm:$0xff] %v4327_v57  ;;  %1863 = vrot.lane.b32.xlu0 %v4332_v29, %s3008_s4 }
 0x4c0   :  { %v2990_v16 = vpop.eup %2989  ;;  %2787 = vmatmul.mubr.msk.f32.gmra.mxu0 %vm265_vm2, %v4334_v44  ;;  %2808 = vmatmul.mubr.msk.f32.gmra.mxu1 %vm265_vm2, %v4334_v44 }
 0x4c1   :  { %v4342_v54 = vpop.permute.xlu0 %1787  ;;  %1241 = vmatprep.mubr.f32.mxu0 %v6087_v62  ;;  %1776 = vmatprep.mubr.f32.mxu1 %v6087_v62  ;;  %v946_v3 = vmul.f32 %v2990_v16, %v3907_v22 }
 0x4c2   :  { %v4347_v12 = vpop.permute.xlu1 %1537  ;;  %v4352_v63 = vsel %vm1312_vm3, %v4342_v54, %v4024_v53 }
 0x4c3   :  { %6088 = vst [vmem:[#allocation17_spill] sm:$0xff] %v4347_v12  ;;  %1867 = vrot.lane.b32.xlu0 %v4352_v63, %s3008_s4  ;;  %v968_v57 = vmul.f32 %v3946_v2, %v946_v3 }
 0x4c5   :  { %v4357_v11 = vpop.permute.xlu0 %1791  ;;  %v990_v34 = vadd.f32 %v3956_v27, %v968_v57 }
 0x4c6   :  { %v4360_v48 = vpop.permute.xlu1 %1785  ;;  %v4365_v22 = vsel %vm1312_vm3, %v4357_v11, %v4052_v32 }
 0x4c7   :  { %1871 = vrot.lane.b32.xlu0 %v4365_v22, %s3008_s4  ;;  %v4372_v53 = vsel %vm1312_vm3, %v4360_v48, %v4031_v0  ;;  %v4374_v2 = vmax.f32 %v990_v34, 0.0 }
 0x4c8   :  { %1865 = vrot.lane.b32.xlu1 %v4372_v53, %s3008_s4 }
 0x4c9   :  { %2788 = vmatmul.mubr.msk.f32.gmra.mxu0 %vm265_vm2, %v4374_v2  ;;  %2809 = vmatmul.mubr.msk.f32.gmra.mxu1 %vm265_vm2, %v4374_v2  ;;  %v4382_v57 = vpop.permute.xlu0 %1795 }
 0x4ca   :  { %v4384_v27 = vpop.permute.xlu1 %1789  ;;  %v4389_v0 = vsel %vm1312_vm3, %v4382_v57, %v4080_v40  ;;  %2233 = vmatprep.mubr.f32.mxu0 %v6087_v62 }
 0x4cb   :  { %1875 = vrot.lane.b32.xlu0 %v4389_v0, %s3008_s4  ;;  %v4397_v32 = vsel %vm1312_vm3, %v4384_v27, %v4059_v38 }
 0x4cc   :  { %1869 = vrot.lane.b32.xlu1 %v4397_v32, %s3008_s4 }
 0x4cd   :  { %2815 = vmatmul.mubr.msk.f32.vlgmr.msra.gmra.mxu0 %vm265_vm2, %v3979_v25  ;;  %v4403_v34 = vpop.permute.xlu0 %1799 }
 0x4ce   :  { %v4405_v40 = vpop.permute.xlu1 %1793  ;;  %v4410_v16 = vsel %vm1312_vm3, %v4403_v34, %v4108_v61  ;;  %2239 = vmatprep.mubr.f32.mxu0 %v6087_v62 }
 0x4cf   :  { %1879 = vrot.lane.b32.xlu0 %v4410_v16, %s3008_s4  ;;  %v4418_v38 = vsel %vm1312_vm3, %v4405_v40, %v4087_v47 }
 0x4d0   :  { %1873 = vrot.lane.b32.xlu1 %v4418_v38, %s3008_s4 }
 0x4d1   :  { %2816 = vmatmul.mubr.msk.f32.gmra.mxu0 %vm265_vm2, %v4018_v30  ;;  %v4424_v25 = vpop.permute.xlu0 %1803 }
 0x4d2   :  { %v4426_v61 = vpop.permute.xlu1 %1797  ;;  %v4431_v3 = vsel %vm1312_vm3, %v4424_v25, %v4136_v56  ;;  %2245 = vmatprep.mubr.f32.mxu0 %v6087_v62 }
 0x4d3   :  { %1883 = vrot.lane.b32.xlu0 %v4431_v3, %s3008_s4  ;;  %v4439_v47 = vsel %vm1312_vm3, %v4426_v61, %v4115_v31 }
 0x4d4   :  { %1877 = vrot.lane.b32.xlu1 %v4439_v47, %s3008_s4 }
 0x4d5   :  { %2817 = vmatmul.mubr.msk.f32.gmra.mxu0 %vm265_vm2, %v4044_v1  ;;  %v4445_v30 = vpop.permute.xlu0 %1807 }
 0x4d6   :  { %v4447_v56 = vpop.permute.xlu1 %1801  ;;  %v4452_v12 = vsel %vm1312_vm3, %v4445_v30, %v4161_v14  ;;  %2251 = vmatprep.mubr.f32.mxu0 %v6087_v62 }
 0x4d7   :  { %1887 = vrot.lane.b32.xlu0 %v4452_v12, %s3008_s4  ;;  %v4460_v31 = vsel %vm1312_vm3, %v4447_v56, %v4143_v37 }
 0x4d8   :  { %1881 = vrot.lane.b32.xlu1 %v4460_v31, %s3008_s4 }
 0x4d9   :  { %2818 = vmatmul.mubr.msk.f32.gmra.mxu0 %vm265_vm2, %v4073_v8  ;;  %v4466_v1 = vpop.permute.xlu0 %1811 }
 0x4da   :  { %v4468_v14 = vpop.permute.xlu1 %1805  ;;  %v4473_v15 = vsel %vm1312_vm3, %v4466_v1, %v4186_v7  ;;  %2257 = vmatprep.mubr.f32.mxu0 %v6087_v62 }
 0x4db   :  { %1891 = vrot.lane.b32.xlu0 %v4473_v15, %s3008_s4  ;;  %v4481_v37 = vsel %vm1312_vm3, %v4468_v14, %v4168_v24 }
 0x4dc   :  { %1885 = vrot.lane.b32.xlu1 %v4481_v37, %s3008_s4 }
 0x4dd   :  { %2819 = vmatmul.mubr.msk.f32.gmra.mxu0 %vm265_vm2, %v4100_v9  ;;  %v2331_v8 = vpop.permute.xlu0 %2330 }
 0x4de   :  { %v4489_v7 = vsel %vm1312_vm3, %v2331_v8, %v4325_v50  ;;  %v4491_v52 = vpop.permute.xlu1 %1809  ;;  %2263 = vmatprep.mubr.f32.mxu0 %v6087_v62 }
 0x4df   :  { %2410 = vrot.lane.b32.xlu0 %v4489_v7, %s3008_s4  ;;  %v4499_v24 = vsel %vm1312_vm3, %v4491_v52, %v4193_v55 }
 0x4e0   :  { %1889 = vrot.lane.b32.xlu1 %v4499_v24, %s3008_s4 }
 0x4e1   :  { %2820 = vmatmul.mubr.msk.f32.gmra.mxu0 %vm265_vm2, %v4128_v46  ;;  %v2335_v9 = vpop.permute.xlu0 %2334 }
 0x4e2   :  { %v4507_v50 = vsel %vm1312_vm3, %v2335_v9, %v4342_v54  ;;  %v1814_v8 = vpop.permute.xlu1 %1813  ;;  %2269 = vmatprep.mubr.f32.mxu0 %v6087_v62 }
 0x4e3   :  { %2414 = vrot.lane.b32.xlu0 %v4507_v50, %s3008_s4  ;;  %v4514_v55 = vsel %vm1312_vm3, %v1814_v8, %v4213_v51 }
 0x4e4   :  { %1893 = vrot.lane.b32.xlu1 %v4514_v55, %s3008_s4 }
 0x4e5   :  { %2821 = vmatmul.mubr.msk.f32.gmra.mxu0 %vm265_vm2, %v4153_v4  ;;  %v2339_v46 = vpop.permute.xlu0 %2338 }
 0x4e6   :  { %v4522_v54 = vsel %vm1312_vm3, %v2339_v46, %v4357_v11  ;;  %v2333_v9 = vpop.permute.xlu1 %2332  ;;  %2275 = vmatprep.mubr.f32.mxu0 %v6087_v62 }
 0x4e7   :  { %v4527_v36 = vsel %vm1312_vm3, %v2333_v9, %v4360_v48  ;;  %2418 = vrot.lane.b32.xlu0 %v4522_v54, %s3008_s4 }
 0x4e8   :  { %2412 = vrot.lane.b32.xlu1 %v4527_v36, %s3008_s4 }
 0x4e9   :  { %2822 = vmatmul.mubr.msk.f32.gmra.mxu0 %vm265_vm2, %v4178_v60  ;;  %v2343_v4 = vpop.permute.xlu0 %2342 }
 0x4ea   :  { %v4537_v11 = vsel %vm1312_vm3, %v2343_v4, %v4382_v57  ;;  %v2337_v51 = vpop.permute.xlu1 %2336  ;;  %2281 = vmatprep.mubr.f32.mxu0 %v6087_v62 }
 0x4eb   :  { %v4542_v48 = vsel %vm1312_vm3, %v2337_v51, %v4384_v27  ;;  %2422 = vrot.lane.b32.xlu0 %v4537_v11, %s3008_s4 }
 0x4ec   :  { %2416 = vrot.lane.b32.xlu1 %v4542_v48, %s3008_s4 }
 0x4ed   :  { %2823 = vmatmul.mubr.msk.f32.gmra.mxu0 %vm265_vm2, %v4203_v21  ;;  %v2347_v60 = vpop.permute.xlu0 %2346 }
 0x4ee   :  { %v4552_v57 = vsel %vm1312_vm3, %v2347_v60, %v4403_v34  ;;  %v2341_v46 = vpop.permute.xlu1 %2340  ;;  %2287 = vmatprep.mubr.f32.mxu0 %v6087_v62 }
 0x4ef   :  { %v4557_v27 = vsel %vm1312_vm3, %v2341_v46, %v4405_v40  ;;  %2426 = vrot.lane.b32.xlu0 %v4552_v57, %s3008_s4 }
 0x4f0   :  { %2420 = vrot.lane.b32.xlu1 %v4557_v27, %s3008_s4 }
 0x4f1   :  { %2824 = vmatmul.mubr.msk.f32.gmra.mxu0 %vm265_vm2, %v4223_v10  ;;  %v2351_v21 = vpop.permute.xlu0 %2350 }
 0x4f2   :  { %v4567_v34 = vsel %vm1312_vm3, %v2351_v21, %v4424_v25  ;;  %v2345_v9 = vpop.permute.xlu1 %2344  ;;  %2293 = vmatprep.mubr.f32.mxu0 %v6087_v62 }
 0x4f3   :  { %v4572_v40 = vsel %vm1312_vm3, %v2345_v9, %v4426_v61  ;;  %2430 = vrot.lane.b32.xlu0 %v4567_v34, %s3008_s4 }
 0x4f4   :  { %2424 = vrot.lane.b32.xlu1 %v4572_v40, %s3008_s4 }
 0x4f5   :  { %2825 = vmatmul.mubr.msk.f32.gmra.mxu0 %vm265_vm2, %v4237_v49  ;;  %v2355_v10 = vpop.permute.xlu0 %2354 }
 0x4f6   :  { %v4582_v25 = vsel %vm1312_vm3, %v2355_v10, %v4445_v30  ;;  %v2349_v4 = vpop.permute.xlu1 %2348  ;;  %2299 = vmatprep.mubr.f32.mxu0 %v6087_v62 }
 0x4f7   :  { %v4587_v61 = vsel %vm1312_vm3, %v2349_v4, %v4447_v56  ;;  %2434 = vrot.lane.b32.xlu0 %v4582_v25, %s3008_s4 }
 0x4f8   :  { %2428 = vrot.lane.b32.xlu1 %v4587_v61, %s3008_s4 }
 0x4f9   :  { %2826 = vmatmul.mubr.msk.f32.gmra.mxu0 %vm265_vm2, %v4250_v59  ;;  %v2359_v49 = vpop.permute.xlu0 %2358 }
 0x4fa   :  { %v4597_v30 = vsel %vm1312_vm3, %v2359_v49, %v4466_v1  ;;  %v2353_v51 = vpop.permute.xlu1 %2352  ;;  %2305 = vmatprep.mubr.f32.mxu0 %v6087_v62 }
 0x4fb   :  { %v4602_v56 = vsel %vm1312_vm3, %v2353_v51, %v4468_v14  ;;  %2438 = vrot.lane.b32.xlu0 %v4597_v30, %s3008_s4 }
 0x4fc   :  { %2432 = vrot.lane.b32.xlu1 %v4602_v56, %s3008_s4 }
 0x4fd   :  { %2827 = vmatmul.mubr.msk.f32.gmra.mxu0 %vm265_vm2, %v4283_v5 }
 0x4fe   :  { %v2357_v59 = vpop.permute.xlu1 %2356  ;;  %2311 = vmatprep.mubr.f32.mxu0 %v6087_v62 }
 0x4ff   :  { %v4613_v1 = vsel %vm1312_vm3, %v2357_v59, %v4491_v52 }
 0x500   :  { %2436 = vrot.lane.b32.xlu1 %v4613_v1, %s3008_s4 }
 0x501   :  { %2828 = vmatmul.mubr.msk.f32.gmra.mxu0 %vm265_vm2, %v4294_v19 }
 0x502   :  { %v2361_v14 = vpop.permute.xlu1 %2360  ;;  %2317 = vmatprep.mubr.f32.mxu0 %v6087_v62 }
 0x503   :  { %v4621_v60 = vsel %vm1312_vm3, %v2361_v14, %v1814_v8  ;;  %v4690_v59 = vpop.f32.mrf.mxu0 }
 0x504   :  { %2440 = vrot.lane.b32.xlu1 %v4621_v60, %s3008_s4 }
 0x505   :  { %2829 = vmatmul.mubr.msk.f32.gmra.mxu0 %vm265_vm2, %v4334_v44 }
 0x506   :  { %2323 = vmatprep.mubr.f32.mxu0 %v6087_v62 }
 0x509   :  { %2830 = vmatmul.mubr.msk.f32.gmra.mxu0 %vm265_vm2, %v4374_v2 }
 0x531   :  { %v1864_v52 = vpop.permute.xlu0 %1863 }
 0x532   :  { %v4632_v5 = vsel %vm1393_vm4, %v4332_v29, %v1864_v52 }
 0x533   :  { %1943 = vrot.lane.b32.xlu0 %v4632_v5, %s3009_s5 }
 0x535   :  { %v1868_v19 = vpop.permute.xlu0 %1867 }
 0x536   :  { %v4638_v8 = vsel %vm1393_vm4, %v4352_v63, %v1868_v19  ;;  %v4704_v19 = vpop.f32.mrf.mxu0 }
 0x537   :  { %1947 = vrot.lane.b32.xlu0 %v4638_v8, %s3009_s5 }
 0x539   :  { %v1872_v44 = vpop.permute.xlu0 %1871 }
 0x53a   :  { %v1866_v62 = vpop.permute.xlu1 %1865  ;;  %v4644_v2 = vsel %vm1393_vm4, %v4365_v22, %v1872_v44 }
 0x53b   :  { %v4648_v29 = vsel %vm1393_vm4, %v4372_v53, %v1866_v62  ;;  %1951 = vrot.lane.b32.xlu0 %v4644_v2, %s3009_s5 }
 0x53c   :  { %1945 = vrot.lane.b32.xlu1 %v4648_v29, %s3009_s5 }
 0x53d   :  { %v1876_v63 = vpop.permute.xlu0 %1875 }
 0x53e   :  { %v1870_v46 = vpop.permute.xlu1 %1869  ;;  %v4656_v21 = vsel %vm1393_vm4, %v4389_v0, %v1876_v63 }
 0x53f   :  { %v4660_v22 = vsel %vm1393_vm4, %v4397_v32, %v1870_v46  ;;  %1955 = vrot.lane.b32.xlu0 %v4656_v21, %s3009_s5 }
 0x540   :  { %1949 = vrot.lane.b32.xlu1 %v4660_v22, %s3009_s5 }
 0x541   :  { %v1880_v53 = vpop.permute.xlu0 %1879 }
 0x542   :  { %v1874_v9 = vpop.permute.xlu1 %1873  ;;  %v4668_v10 = vsel %vm1393_vm4, %v4410_v16, %v1880_v53 }
 0x543   :  { %v4672_v0 = vsel %vm1393_vm4, %v4418_v38, %v1874_v9  ;;  %1959 = vrot.lane.b32.xlu0 %v4668_v10, %s3009_s5 }
 0x544   :  { %1953 = vrot.lane.b32.xlu1 %v4672_v0, %s3009_s5 }
 0x545   :  { %v1884_v32 = vpop.permute.xlu0 %1883 }
 0x546   :  { %v1878_v4 = vpop.permute.xlu1 %1877  ;;  %v4680_v49 = vsel %vm1393_vm4, %v4431_v3, %v1884_v32 }
 0x547   :  { %v4684_v16 = vsel %vm1393_vm4, %v4439_v47, %v1878_v4  ;;  %1963 = vrot.lane.b32.xlu0 %v4680_v49, %s3009_s5 }
 0x548   :  { %1957 = vrot.lane.b32.xlu1 %v4684_v16, %s3009_s5 }
 0x549   :  { %v1888_v38 = vpop.permute.xlu0 %1887 }
 0x54a   :  { %v1882_v51 = vpop.permute.xlu1 %1881  ;;  %v4694_v14 = vsel %vm1393_vm4, %v4452_v12, %v1888_v38 }
 0x54b   :  { %v4698_v3 = vsel %vm1393_vm4, %v4460_v31, %v1882_v51  ;;  %1967 = vrot.lane.b32.xlu0 %v4694_v14, %s3009_s5  ;;  %v4718_v31 = vpop.f32.mrf.mxu0 }
 0x54c   :  { %1961 = vrot.lane.b32.xlu1 %v4698_v3, %s3009_s5 }
 0x54d   :  { %v1892_v47 = vpop.permute.xlu0 %1891 }
 0x54e   :  { %v1886_v52 = vpop.permute.xlu1 %1885  ;;  %v4708_v44 = vsel %vm1393_vm4, %v4473_v15, %v1892_v47 }
 0x54f   :  { %v4712_v12 = vsel %vm1393_vm4, %v4481_v37, %v1886_v52  ;;  %1971 = vrot.lane.b32.xlu0 %v4708_v44, %s3009_s5  ;;  %v4732_v37 = vpop.f32.mrf.mxu0 }
 0x550   :  { %1965 = vrot.lane.b32.xlu1 %v4712_v12, %s3009_s5 }
 0x551   :  { %v2411_v62 = vpop.permute.xlu0 %2410 }
 0x552   :  { %v1890_v63 = vpop.permute.xlu1 %1889  ;;  %v4722_v46 = vsel %vm1393_vm4, %v4489_v7, %v2411_v62 }
 0x553   :  { %v4726_v15 = vsel %vm1393_vm4, %v4499_v24, %v1890_v63  ;;  %2490 = vrot.lane.b32.xlu0 %v4722_v46, %s3009_s5  ;;  %v4746_v24 = vpop.f32.mrf.mxu0 }
 0x554   :  { %1969 = vrot.lane.b32.xlu1 %v4726_v15, %s3009_s5 }
 0x555   :  { %v2415_v53 = vpop.permute.xlu0 %2414 }
 0x556   :  { %v1894_v9 = vpop.permute.xlu1 %1893  ;;  %v4736_v32 = vsel %vm1393_vm4, %v4507_v50, %v2415_v53 }
 0x557   :  { %v4740_v7 = vsel %vm1393_vm4, %v4514_v55, %v1894_v9  ;;  %2494 = vrot.lane.b32.xlu0 %v4736_v32, %s3009_s5  ;;  %v4760_v55 = vpop.f32.mrf.mxu0 }
 0x558   :  { %1973 = vrot.lane.b32.xlu1 %v4740_v7, %s3009_s5  ;;  %6089 = vst [vmem:[#allocation18_spill] sm:$0xff] %v4760_v55 }
 0x559   :  { %v2419_v4 = vpop.permute.xlu0 %2418 }
 0x55a   :  { %v2413_v38 = vpop.permute.xlu1 %2412  ;;  %v4750_v51 = vsel %vm1393_vm4, %v4522_v54, %v2419_v4 }
 0x55b   :  { %v4754_v50 = vsel %vm1393_vm4, %v4527_v36, %v2413_v38  ;;  %2498 = vrot.lane.b32.xlu0 %v4750_v51, %s3009_s5  ;;  %v4774_v36 = vpop.f32.mrf.mxu0 }
 0x55c   :  { %2492 = vrot.lane.b32.xlu1 %v4754_v50, %s3009_s5  ;;  %6090 = vst [vmem:[#allocation19_spill] sm:$0xff] %v4774_v36 }
 0x55d   :  { %v2423_v47 = vpop.permute.xlu0 %2422 }
 0x55e   :  { %v2417_v52 = vpop.permute.xlu1 %2416  ;;  %v4764_v62 = vsel %vm1393_vm4, %v4537_v11, %v2423_v47 }
 0x55f   :  { %v4768_v54 = vsel %vm1393_vm4, %v4542_v48, %v2417_v52  ;;  %2502 = vrot.lane.b32.xlu0 %v4764_v62, %s3009_s5  ;;  %v4788_v48 = vpop.f32.mrf.mxu0 }
 0x560   :  { %2496 = vrot.lane.b32.xlu1 %v4768_v54, %s3009_s5  ;;  %6091 = vst [vmem:[#allocation20_spill] sm:$0xff] %v4788_v48 }
 0x561   :  { %v2427_v63 = vpop.permute.xlu0 %2426 }
 0x562   :  { %v2421_v53 = vpop.permute.xlu1 %2420  ;;  %v4778_v9 = vsel %vm1393_vm4, %v4552_v57, %v2427_v63 }
 0x563   :  { %v4782_v11 = vsel %vm1393_vm4, %v4557_v27, %v2421_v53  ;;  %2506 = vrot.lane.b32.xlu0 %v4778_v9, %s3009_s5  ;;  %v4802_v27 = vpop.f32.mrf.mxu0 }
 0x564   :  { %2500 = vrot.lane.b32.xlu1 %v4782_v11, %s3009_s5  ;;  %6092 = vst [vmem:[#allocation21_spill] sm:$0xff] %v4802_v27 }
 0x565   :  { %v2431_v4 = vpop.permute.xlu0 %2430 }
 0x566   :  { %v2425_v38 = vpop.permute.xlu1 %2424  ;;  %v4792_v47 = vsel %vm1393_vm4, %v4567_v34, %v2431_v4 }
 0x567   :  { %v4796_v57 = vsel %vm1393_vm4, %v4572_v40, %v2425_v38  ;;  %2510 = vrot.lane.b32.xlu0 %v4792_v47, %s3009_s5  ;;  %v4816_v40 = vpop.f32.mrf.mxu0 }
 0x568   :  { %2504 = vrot.lane.b32.xlu1 %v4796_v57, %s3009_s5  ;;  %6093 = vst [vmem:[#allocation22_spill] sm:$0xff] %v4816_v40 }
 0x569   :  { %v2435_v52 = vpop.permute.xlu0 %2434 }
 0x56a   :  { %v2429_v63 = vpop.permute.xlu1 %2428  ;;  %v4806_v53 = vsel %vm1393_vm4, %v4582_v25, %v2435_v52 }
 0x56b   :  { %v4810_v34 = vsel %vm1393_vm4, %v4587_v61, %v2429_v63  ;;  %2514 = vrot.lane.b32.xlu0 %v4806_v53, %s3009_s5  ;;  %v4830_v61 = vpop.f32.mrf.mxu0 }
 0x56c   :  { %2508 = vrot.lane.b32.xlu1 %v4810_v34, %s3009_s5  ;;  %6094 = vst [vmem:[#allocation23_spill] sm:$0xff] %v4830_v61 }
 0x56d   :  { %v2439_v4 = vpop.permute.xlu0 %2438 }
 0x56e   :  { %v2433_v38 = vpop.permute.xlu1 %2432  ;;  %v4820_v27 = vsel %vm1393_vm4, %v4597_v30, %v2439_v4  ;;  %v4838_v30 = vpop.f32.mrf.mxu0 }
 0x56f   :  { %v4824_v25 = vsel %vm1393_vm4, %v4602_v56, %v2433_v38  ;;  %2518 = vrot.lane.b32.xlu0 %v4820_v27, %s3009_s5  ;;  %6095 = vst [vmem:[#allocation24_spill] sm:$0xff] %v4838_v30 }
 0x570   :  { %2512 = vrot.lane.b32.xlu1 %v4824_v25, %s3009_s5  ;;  %v4846_v38 = vpop.f32.mrf.mxu0 }
 0x571   :  { %6096 = vst [vmem:[#allocation25_spill] sm:$0xff] %v4846_v38 }
 0x572   :  { %v2437_v52 = vpop.permute.xlu1 %2436  ;;  %v4848_v61 = vpop.f32.mrf.mxu0 }
 0x573   :  { %v4834_v63 = vsel %vm1393_vm4, %v4613_v1, %v2437_v52  ;;  %6097 = vst [vmem:[#allocation26_spill] sm:$0xff] %v4848_v61 }
 0x574   :  { %2516 = vrot.lane.b32.xlu1 %v4834_v63, %s3009_s5  ;;  %v4850_v40 = vpop.f32.mrf.mxu0 }
 0x575   :  { %6098 = vst [vmem:[#allocation27_spill] sm:$0xff] %v4850_v40 }
 0x576   :  { %v2441_v56 = vpop.permute.xlu1 %2440  ;;  %v4852_v1 = vpop.f32.mrf.mxu0 }
 0x577   :  { %v4842_v4 = vsel %vm1393_vm4, %v4621_v60, %v2441_v56 }
 0x578   :  { %2520 = vrot.lane.b32.xlu1 %v4842_v4, %s3009_s5  ;;  %v4854_v52 = vpop.f32.mrf.mxu0 }
 0x579   :  { %6099 = vst [vmem:[#allocation28_spill] sm:$0xff] %v4854_v52 }
 0x57a   :  { %v4856_v48 = vpop.f32.mrf.mxu0 }
 0x57c   :  { %v4858_v30 = vpop.f32.mrf.mxu0 }
 0x57d   :  { %6100 = vst [vmem:[#allocation29_spill] sm:$0xff] %v4858_v30 }
 0x57e   :  { %v4860_v36 = vpop.f32.mrf.mxu0 }
 0x57f   :  { %6101 = vst [vmem:[#allocation30_spill] sm:$0xff] %v4860_v36 }
 0x580   :  { %v4862_v60 = vpop.f32.mrf.mxu0 }
 0x582   :  { %v4864_v56 = vpop.f32.mrf.mxu0 }
 0x583   :  { %6102 = vst [vmem:[#allocation31_spill] sm:$0xff] %v4864_v56 }
 0x584   :  { %v4866_v55 = vpop.f32.mrf.mxu0 }
 0x585   :  { %6103 = vst [vmem:[#allocation32_spill] sm:$0xff] %v4866_v55 }
 0x586   :  { %v4868_v38 = vpop.f32.mrf.mxu0 }
 0x587   :  { %6104 = vst [vmem:[#allocation33_spill] sm:$0xff] %v4868_v38 }
 0x588   :  { %v4870_v40 = vpop.f32.mrf.mxu0 }
 0x589   :  { %6105 = vst [vmem:[#allocation34_spill] sm:$0xff] %v4870_v40 }
 0x58a   :  { %v4878_v36 = vpop.f32.mrf.mxu0 }
 0x58b   :  { %6107 = vst [vmem:[#allocation36_spill] sm:$0xff] %v4878_v36  ;;  %v6184_v36 = vld [vmem:[#allocation12_spill] sm:$0xff] }
 0x58c   :  { %v4886_v38 = vpop.f32.mrf.mxu0 }
 0x58d   :  { %6109 = vst [vmem:[#allocation38_spill] sm:$0xff] %v4886_v38  ;;  %v6182_v38 = vld [vmem:[#allocation5_spill] sm:$0xff] }
 0x5a5   :  { %v1944_v61 = vpop.permute.xlu0 %1943 }
 0x5a6   :  { %v4874_v52 = vsel %vm1474_vm5, %v4632_v5, %v1944_v61 }
 0x5a7   :  { %6106 = vst [vmem:[#allocation35_spill] sm:$0xff] %v4874_v52  ;;  %2023 = vrot.lane.b32.xlu0 %v4874_v52, %s3010_s16 }
 0x5a9   :  { %v1948_v30 = vpop.permute.xlu0 %1947 }
 0x5aa   :  { %v4882_v56 = vsel %vm1474_vm5, %v4638_v8, %v1948_v30  ;;  %v4900_v8 = vpop.f32.mrf.mxu0 }
 0x5ab   :  { %6108 = vst [vmem:[#allocation37_spill] sm:$0xff] %v4882_v56  ;;  %2027 = vrot.lane.b32.xlu0 %v4882_v56, %s3010_s16  ;;  %6112 = vst [vmem:[#allocation41_spill] sm:$0xff] %v4900_v8  ;;  %v6178_v8 = vld [vmem:[#allocation4_spill] sm:$0xff] }
 0x5ac   :  { %v4902_v52 = vpop.f32.mrf.mxu0 }
 0x5ad   :  { %v1952_v40 = vpop.permute.xlu0 %1951  ;;  %6113 = vst [vmem:[#allocation42_spill] sm:$0xff] %v4902_v52  ;;  %v6177_v52 = vld [vmem:[#allocation11_spill] sm:$0xff] }
 0x5ae   :  { %v1946_v55 = vpop.permute.xlu1 %1945  ;;  %v4890_v5 = vsel %vm1474_vm5, %v4644_v2, %v1952_v40 }
 0x5af   :  { %6110 = vst [vmem:[#allocation39_spill] sm:$0xff] %v4890_v5  ;;  %v4894_v61 = vsel %vm1474_vm5, %v4648_v29, %v1946_v55  ;;  %2031 = vrot.lane.b32.xlu0 %v4890_v5, %s3010_s16 }
 0x5b0   :  { %6111 = vst [vmem:[#allocation40_spill] sm:$0xff] %v4894_v61  ;;  %2025 = vrot.lane.b32.xlu1 %v4894_v61, %s3010_s16  ;;  %v4916_v61 = vpop.f32.mrf.mxu0 }
 0x5b1   :  { %v1956_v30 = vpop.permute.xlu0 %1955  ;;  %6116 = vst [vmem:[#allocation45_spill] sm:$0xff] %v4916_v61 }
 0x5b2   :  { %v1950_v56 = vpop.permute.xlu1 %1949  ;;  %v4906_v2 = vsel %vm1474_vm5, %v4656_v21, %v1956_v30 }
 0x5b3   :  { %6114 = vst [vmem:[#allocation43_spill] sm:$0xff] %v4906_v2  ;;  %v4910_v29 = vsel %vm1474_vm5, %v4660_v22, %v1950_v56  ;;  %2035 = vrot.lane.b32.xlu0 %v4906_v2, %s3010_s16  ;;  %v4930_v22 = vpop.f32.mrf.mxu1  ;;  %v4932_v56 = vpop.f32.mrf.mxu0 }
 0x5b4   :  { %6115 = vst [vmem:[#allocation44_spill] sm:$0xff] %v4910_v29  ;;  %2029 = vrot.lane.b32.xlu1 %v4910_v29, %s3010_s16  ;;  %6119 = vst [vmem:[#allocation48_spill] sm:$0xff] %v4932_v56 }
 0x5b5   :  { %v1960_v55 = vpop.permute.xlu0 %1959 }
 0x5b6   :  { %v1954_v40 = vpop.permute.xlu1 %1953  ;;  %v4920_v5 = vsel %vm1474_vm5, %v4668_v10, %v1960_v55  ;;  %v4946_v55 = vpop.f32.mrf.mxu1 }
 0x5b7   :  { %6117 = vst [vmem:[#allocation46_spill] sm:$0xff] %v4920_v5  ;;  %v4924_v21 = vsel %vm1474_vm5, %v4672_v0, %v1954_v40  ;;  %2039 = vrot.lane.b32.xlu0 %v4920_v5, %s3010_s16  ;;  %v4948_v40 = vpop.f32.mrf.mxu0 }
 0x5b8   :  { %6118 = vst [vmem:[#allocation47_spill] sm:$0xff] %v4924_v21  ;;  %2033 = vrot.lane.b32.xlu1 %v4924_v21, %s3010_s16  ;;  %6122 = vst [vmem:[#allocation51_spill] sm:$0xff] %v4948_v40  ;;  %v4950_v2 = vpop.f32.mrf.mxu1 }
 0x5b9   :  { %v1964_v30 = vpop.permute.xlu0 %1963 }
 0x5ba   :  { %v1958_v29 = vpop.permute.xlu1 %1957  ;;  %v4936_v10 = vsel %vm1474_vm5, %v4680_v49, %v1964_v30 }
 0x5bb   :  { %6120 = vst [vmem:[#allocation49_spill] sm:$0xff] %v4936_v10  ;;  %v4940_v0 = vsel %vm1474_vm5, %v4684_v16, %v1958_v29  ;;  %2043 = vrot.lane.b32.xlu0 %v4936_v10, %s3010_s16  ;;  %v4964_v29 = vpop.f32.mrf.mxu0  ;;  %v4966_v10 = vpop.f32.mrf.mxu1 }
 0x5bc   :  { %6121 = vst [vmem:[#allocation50_spill] sm:$0xff] %v4940_v0  ;;  %2037 = vrot.lane.b32.xlu1 %v4940_v0, %s3010_s16  ;;  %6125 = vst [vmem:[#allocation54_spill] sm:$0xff] %v4964_v29  ;;  %v1558_v29 = vsel %vm1555_vm6, %v3718_v28, %v3870_v20 }
 0x5bd   :  { %v1968_v21 = vpop.permute.xlu0 %1967 }
 0x5be   :  { %v1962_v5 = vpop.permute.xlu1 %1961  ;;  %v4954_v49 = vsel %vm1474_vm5, %v4694_v14, %v1968_v21 }
 0x5bf   :  { %6123 = vst [vmem:[#allocation52_spill] sm:$0xff] %v4954_v49  ;;  %v4958_v16 = vsel %vm1474_vm5, %v4698_v3, %v1962_v5  ;;  %2047 = vrot.lane.b32.xlu0 %v4954_v49, %s3010_s16  ;;  %v4980_v5 = vpop.f32.mrf.mxu0  ;;  %v4982_v49 = vpop.f32.mrf.mxu1 }
 0x5c0   :  { %6124 = vst [vmem:[#allocation53_spill] sm:$0xff] %v4958_v16  ;;  %2041 = vrot.lane.b32.xlu1 %v4958_v16, %s3010_s16  ;;  %6128 = vst [vmem:[#allocation57_spill] sm:$0xff] %v4980_v5 }
 0x5c1   :  { %v1972_v30 = vpop.permute.xlu0 %1971 }
 0x5c2   :  { %v1966_v0 = vpop.permute.xlu1 %1965  ;;  %v4970_v14 = vsel %vm1474_vm5, %v4708_v44, %v1972_v30 }
 0x5c3   :  { %6126 = vst [vmem:[#allocation55_spill] sm:$0xff] %v4970_v14  ;;  %v4974_v3 = vsel %vm1474_vm5, %v4712_v12, %v1966_v0  ;;  %2051 = vrot.lane.b32.xlu0 %v4970_v14, %s3010_s16  ;;  %v4996_v0 = vpop.f32.mrf.mxu0  ;;  %v4998_v14 = vpop.f32.mrf.mxu1 }
 0x5c4   :  { %6127 = vst [vmem:[#allocation56_spill] sm:$0xff] %v4974_v3  ;;  %2045 = vrot.lane.b32.xlu1 %v4974_v3, %s3010_s16  ;;  %6131 = vst [vmem:[#allocation60_spill] sm:$0xff] %v4996_v0 }
 0x5c5   :  { %v2491_v21 = vpop.permute.xlu0 %2490 }
 0x5c6   :  { %v1970_v16 = vpop.permute.xlu1 %1969  ;;  %v4986_v44 = vsel %vm1474_vm5, %v4722_v46, %v2491_v21 }
 0x5c7   :  { %6129 = vst [vmem:[#allocation58_spill] sm:$0xff] %v4986_v44  ;;  %v4990_v12 = vsel %vm1474_vm5, %v4726_v15, %v1970_v16  ;;  %2570 = vrot.lane.b32.xlu0 %v4986_v44, %s3010_s16  ;;  %v5012_v16 = vpop.f32.mrf.mxu0  ;;  %v5014_v44 = vpop.f32.mrf.mxu1 }
 0x5c8   :  { %6130 = vst [vmem:[#allocation59_spill] sm:$0xff] %v4990_v12  ;;  %2049 = vrot.lane.b32.xlu1 %v4990_v12, %s3010_s16  ;;  %6134 = vst [vmem:[#allocation63_spill] sm:$0xff] %v5012_v16 }
 0x5c9   :  { %v2495_v30 = vpop.permute.xlu0 %2494 }
 0x5ca   :  { %v1974_v3 = vpop.permute.xlu1 %1973  ;;  %v5002_v46 = vsel %vm1474_vm5, %v4736_v32, %v2495_v30 }
 0x5cb   :  { %6132 = vst [vmem:[#allocation61_spill] sm:$0xff] %v5002_v46  ;;  %v5006_v15 = vsel %vm1474_vm5, %v4740_v7, %v1974_v3  ;;  %2574 = vrot.lane.b32.xlu0 %v5002_v46, %s3010_s16  ;;  %v5028_v3 = vpop.f32.mrf.mxu0  ;;  %v5030_v46 = vpop.f32.mrf.mxu1 }
 0x5cc   :  { %6133 = vst [vmem:[#allocation62_spill] sm:$0xff] %v5006_v15  ;;  %2053 = vrot.lane.b32.xlu1 %v5006_v15, %s3010_s16  ;;  %6137 = vst [vmem:[#allocation66_spill] sm:$0xff] %v5028_v3 }
 0x5cd   :  { %v2499_v21 = vpop.permute.xlu0 %2498 }
 0x5ce   :  { %v2493_v12 = vpop.permute.xlu1 %2492  ;;  %v5018_v32 = vsel %vm1474_vm5, %v4750_v51, %v2499_v21 }
 0x5cf   :  { %6135 = vst [vmem:[#allocation64_spill] sm:$0xff] %v5018_v32  ;;  %v5022_v7 = vsel %vm1474_vm5, %v4754_v50, %v2493_v12  ;;  %2578 = vrot.lane.b32.xlu0 %v5018_v32, %s3010_s16  ;;  %v5044_v12 = vpop.f32.mrf.mxu0  ;;  %v5046_v32 = vpop.f32.mrf.mxu1 }
 0x5d0   :  { %6136 = vst [vmem:[#allocation65_spill] sm:$0xff] %v5022_v7  ;;  %2572 = vrot.lane.b32.xlu1 %v5022_v7, %s3010_s16  ;;  %6140 = vst [vmem:[#allocation69_spill] sm:$0xff] %v5044_v12 }
 0x5d1   :  { %v2503_v30 = vpop.permute.xlu0 %2502 }
 0x5d2   :  { %v2497_v15 = vpop.permute.xlu1 %2496  ;;  %v5034_v51 = vsel %vm1474_vm5, %v4764_v62, %v2503_v30 }
 0x5d3   :  { %6138 = vst [vmem:[#allocation67_spill] sm:$0xff] %v5034_v51  ;;  %v5038_v50 = vsel %vm1474_vm5, %v4768_v54, %v2497_v15  ;;  %2582 = vrot.lane.b32.xlu0 %v5034_v51, %s3010_s16  ;;  %v5060_v15 = vpop.f32.mrf.mxu0  ;;  %v5062_v51 = vpop.f32.mrf.mxu1 }
 0x5d4   :  { %6139 = vst [vmem:[#allocation68_spill] sm:$0xff] %v5038_v50  ;;  %2576 = vrot.lane.b32.xlu1 %v5038_v50, %s3010_s16  ;;  %6143 = vst [vmem:[#allocation72_spill] sm:$0xff] %v5060_v15 }
 0x5d5   :  { %v2507_v21 = vpop.permute.xlu0 %2506 }
 0x5d6   :  { %v2501_v7 = vpop.permute.xlu1 %2500  ;;  %v5050_v62 = vsel %vm1474_vm5, %v4778_v9, %v2507_v21 }
 0x5d7   :  { %6141 = vst [vmem:[#allocation70_spill] sm:$0xff] %v5050_v62  ;;  %v5054_v54 = vsel %vm1474_vm5, %v4782_v11, %v2501_v7  ;;  %2586 = vrot.lane.b32.xlu0 %v5050_v62, %s3010_s16  ;;  %v5076_v7 = vpop.f32.mrf.mxu0  ;;  %v5078_v62 = vpop.f32.mrf.mxu1 }
 0x5d8   :  { %6142 = vst [vmem:[#allocation71_spill] sm:$0xff] %v5054_v54  ;;  %2580 = vrot.lane.b32.xlu1 %v5054_v54, %s3010_s16  ;;  %6146 = vst [vmem:[#allocation75_spill] sm:$0xff] %v5076_v7  ;;  %v1029_v7 = vlaneseq }
 0x5d9   :  { %v2511_v30 = vpop.permute.xlu0 %2510 }
 0x5da   :  { %v2505_v50 = vpop.permute.xlu1 %2504  ;;  %v5066_v9 = vsel %vm1474_vm5, %v4792_v47, %v2511_v30 }
 0x5db   :  { %6144 = vst [vmem:[#allocation73_spill] sm:$0xff] %v5066_v9  ;;  %v5070_v11 = vsel %vm1474_vm5, %v4796_v57, %v2505_v50  ;;  %2590 = vrot.lane.b32.xlu0 %v5066_v9, %s3010_s16  ;;  %v5092_v50 = vpop.f32.mrf.mxu0  ;;  %v5094_v9 = vpop.f32.mrf.mxu1 }
 0x5dc   :  { %6145 = vst [vmem:[#allocation74_spill] sm:$0xff] %v5070_v11  ;;  %2584 = vrot.lane.b32.xlu1 %v5070_v11, %s3010_s16  ;;  %6149 = vst [vmem:[#allocation78_spill] sm:$0xff] %v5092_v50 }
 0x5dd   :  { %v2515_v21 = vpop.permute.xlu0 %2514 }
 0x5de   :  { %v2509_v54 = vpop.permute.xlu1 %2508  ;;  %v5082_v47 = vsel %vm1474_vm5, %v4806_v53, %v2515_v21 }
 0x5df   :  { %6147 = vst [vmem:[#allocation76_spill] sm:$0xff] %v5082_v47  ;;  %v5086_v57 = vsel %vm1474_vm5, %v4810_v34, %v2509_v54  ;;  %2594 = vrot.lane.b32.xlu0 %v5082_v47, %s3010_s16  ;;  %v5108_v54 = vpop.f32.mrf.mxu0 }
 0x5e0   :  { %6148 = vst [vmem:[#allocation77_spill] sm:$0xff] %v5086_v57  ;;  %2588 = vrot.lane.b32.xlu1 %v5086_v57, %s3010_s16  ;;  %6152 = vst [vmem:[#allocation81_spill] sm:$0xff] %v5108_v54  ;;  %v5110_v57 = vpop.f32.mrf.mxu1 }
 0x5e1   :  { %v2519_v30 = vpop.permute.xlu0 %2518 }
 0x5e2   :  { %v2513_v11 = vpop.permute.xlu1 %2512  ;;  %v5098_v53 = vsel %vm1474_vm5, %v4820_v27, %v2519_v30  ;;  %v5118_v27 = vpop.f32.mrf.mxu0 }
 0x5e3   :  { %6150 = vst [vmem:[#allocation79_spill] sm:$0xff] %v5098_v53  ;;  %v5102_v34 = vsel %vm1474_vm5, %v4824_v25, %v2513_v11  ;;  %2598 = vrot.lane.b32.xlu0 %v5098_v53, %s3010_s16  ;;  %6154 = vst [vmem:[#allocation83_spill] sm:$0xff] %v5118_v27  ;;  %v5120_v11 = vpop.f32.mrf.mxu1 }
 0x5e4   :  { %6151 = vst [vmem:[#allocation80_spill] sm:$0xff] %v5102_v34  ;;  %2592 = vrot.lane.b32.xlu1 %v5102_v34, %s3010_s16  ;;  %v5128_v34 = vpop.f32.mrf.mxu0 }
 0x5e5   :  { %6156 = vst [vmem:[#allocation85_spill] sm:$0xff] %v5128_v34  ;;  %v5130_v53 = vpop.f32.mrf.mxu1 }
 0x5e6   :  { %v2517_v21 = vpop.permute.xlu1 %2516 }
 0x5e7   :  { %v5114_v47 = vsel %vm1474_vm5, %v4834_v63, %v2517_v21  ;;  %v5132_v63 = vpop.f32.mrf.mxu0  ;;  %v5134_v21 = vpop.f32.mrf.mxu1 }
 0x5e8   :  { %6153 = vst [vmem:[#allocation82_spill] sm:$0xff] %v5114_v47  ;;  %2596 = vrot.lane.b32.xlu1 %v5114_v47, %s3010_s16  ;;  %6157 = vst [vmem:[#allocation86_spill] sm:$0xff] %v5132_v63 }
 0x5e9   :  { %v5136_v47 = vpop.f32.mrf.mxu0  ;;  %v5138_v27 = vpop.f32.mrf.mxu1 }
 0x5ea   :  { %v2521_v25 = vpop.permute.xlu1 %2520  ;;  %6158 = vst [vmem:[#allocation87_spill] sm:$0xff] %v5136_v47  ;;  %v1030_v47 = vshrl.u32 %v1029_v7, 7  ;;  %v2793_v7 = vld [vmem:[%s6016_s11 + $0x2] sm:$0x3] }
 0x5eb   :  { %v5124_v30 = vsel %vm1474_vm5, %v4842_v4, %v2521_v25  ;;  %v5140_v54 = vpop.f32.mrf.mxu0  ;;  %v5142_v50 = vpop.f32.mrf.mxu1 }
 0x5ec   :  { %6155 = vst [vmem:[#allocation84_spill] sm:$0xff] %v5124_v30  ;;  %2600 = vrot.lane.b32.xlu1 %v5124_v30, %s3010_s16  ;;  %6159 = vst [vmem:[#allocation88_spill] sm:$0xff] %v5140_v54  ;;  %v1031_v54 = vsub.s32 0, %v1030_v47  ;;  %v1035_v16 = vsub.s32 1, %v1030_v47  ;;  %v1556_v47 = vsel %vm1555_vm6, %v3656_v6, %v3766_v39  ;;  %v1560_v6 = vsel %vm1555_vm6, %v3889_v43, %v4302_v13 }
 0x5ed   :  { %v5144_v4 = vpop.f32.mrf.mxu0  ;;  %v5146_v25 = vpop.f32.mrf.mxu1 }
 0x5ee   :  { %6160 = vst [vmem:[#allocation89_spill] sm:$0xff] %v5144_v4  ;;  %6161 = vst [vmem:[#allocation90_spill] sm:$0xff] %v5146_v25  ;;  %v5187_v56 = vrot.slane %v2793_v7, %v1031_v54  ;;  %v6188_v25 = vld [vmem:[#allocation8_spill] sm:$0xff] }
 0x5ef   :  { %v5148_v30 = vpop.f32.mrf.mxu0  ;;  %v5150_v34 = vpop.f32.mrf.mxu1 }
 0x5f0   :  { %6162 = vst [vmem:[#allocation91_spill] sm:$0xff] %v5148_v30  ;;  %6163 = vst [vmem:[#allocation92_spill] sm:$0xff] %v5150_v34  ;;  %v1027_v30 = vld [vmem:[%s6016_s11] sm:$0x3] }
 0x5f1   :  { %v5152_v63 = vpop.f32.mrf.mxu0  ;;  %v5154_v15 = vpop.f32.mrf.mxu1  ;;  %v5167_v5 = vrot.slane %v1027_v30, %v1031_v54  ;;  %6172 = vst [vmem:[#allocation101_spill] sm:$0xff] %v5187_v56  ;;  %v6187_v34 = vld [vmem:[#allocation14_spill] sm:$0xff] }
 0x5f2   :  { %6164 = vst [vmem:[#allocation93_spill] sm:$0xff] %v5152_v63  ;;  %6165 = vst [vmem:[#allocation94_spill] sm:$0xff] %v5154_v15  ;;  %v6185_v15 = vld [vmem:[#allocation6_spill] sm:$0xff] }
 0x5f3   :  { %v5156_v12 = vpop.f32.mrf.mxu0  ;;  %v5158_v3 = vpop.f32.mrf.mxu1  ;;  %v1160_v43 = vadd.f32 %v4718_v31, %v5167_v5  ;;  %v6181_v31 = vld [vmem:[#allocation15_spill] sm:$0xff] }
 0x5f4   :  { %6166 = vst [vmem:[#allocation95_spill] sm:$0xff] %v5156_v12  ;;  %6167 = vst [vmem:[#allocation96_spill] sm:$0xff] %v5158_v3  ;;  %v5172_v12 = vrot.slane %v1027_v30, %v1035_v16  ;;  %v1559_v30 = vsel %vm1555_vm6, %v3724_v58, %v3875_v17  ;;  %v1562_v58 = vsel %vm1555_vm6, %v3915_v33, %v4304_v42 }
 0x5f5   :  { %v5160_v0 = vpop.f32.mrf.mxu0  ;;  %v5165_v4 = vpop.f32.mrf.mxu1  ;;  %v5226_v33 = vsel %vm1555_vm6, %v6178_v8, %v6177_v52  ;;  %v5246_v8 = vsel %vm1555_vm6, %v6188_v25, %v6187_v34  ;;  %v5253_v52 = vadd.f32 %v4930_v22, %v5187_v56 }
 0x5f6   :  { %6168 = vst [vmem:[#allocation97_spill] sm:$0xff] %v5160_v0  ;;  %6169 = vst [vmem:[#allocation98_spill] sm:$0xff] %v5165_v4  ;;  %v1557_v0 = vsel %vm1555_vm6, %v3661_v26, %v3773_v45  ;;  %v1561_v26 = vsel %vm1555_vm6, %v3896_v18, %v4306_v41  ;;  %v1156_v28 = vadd.f32 %v4704_v19, %v5172_v12  ;;  %v6176_v19 = vld [vmem:[#allocation2_spill] sm:$0xff] }
 0x5f7   :  { %v5174_v63 = vpop.f32.mrf.mxu0  ;;  %v5185_v40 = vpop.f32.mrf.mxu1  ;;  %v5216_v18 = vsel %vm1555_vm6, %v3922_v23, %v4312_v35  ;;  %v5236_v23 = vsel %vm1555_vm6, %v6182_v38, %v6181_v31  ;;  %6189 = vst [vmem:[#allocation4_spill] sm:$0xff] %v5246_v8  ;;  %v1162_v38 = vadd.f32 %v4732_v37, %v5172_v12 }
 0x5f8   :  { %6170 = vst [vmem:[#allocation99_spill] sm:$0xff] %v5174_v63  ;;  %6171 = vst [vmem:[#allocation100_spill] sm:$0xff] %v5185_v40  ;;  %v1154_v63 = vadd.f32 %v4690_v59, %v5167_v5  ;;  %v5202_v40 = vrot.slane %v2793_v7, %v1035_v16  ;;  %v6175_v59 = vld [vmem:[#allocation10_spill] sm:$0xff]  ;;  %v5267_v34 = vmul.f32 %v3766_v39, %v1156_v28  ;;  %v6197_v39 = vld [vmem:[#allocation19_spill] sm:$0xff] }
 0x5f9   :  { %v5207_v61 = vpop.f32.mrf.mxu1  ;;  %v5209_v4 = vpop.f32.mrf.mxu0  ;;  %v5221_v7 = vsel %vm1555_vm6, %v6176_v19, %v6175_v59  ;;  %6183 = vst [vmem:[#allocation10_spill] sm:$0xff] %v5236_v23  ;;  %v5241_v19 = vsel %vm1555_vm6, %v6185_v15, %v6184_v36  ;;  %v1166_v15 = vadd.f32 %v4746_v24, %v5167_v5  ;;  %v6191_v36 = vld [vmem:[#allocation16_spill] sm:$0xff]  ;;  %v5279_v23 = vmul.f32 %v1557_v0, %v1160_v43  ;;  %v6201_v0 = vld [vmem:[#allocation21_spill] sm:$0xff] }
 0x5fa   :  { %6173 = vst [vmem:[#allocation102_spill] sm:$0xff] %v5207_v61  ;;  %6174 = vst [vmem:[#allocation103_spill] sm:$0xff] %v5209_v4  ;;  %v6179_v61 = vld [vmem:[#allocation13_spill] sm:$0xff]  ;;  %v6180_v4 = vld [vmem:[#allocation3_spill] sm:$0xff]  ;;  %v5264_v25 = vmul.f32 %v1556_v47, %v1154_v63  ;;  %v5271_v22 = vadd.f32 %v4946_v55, %v5202_v40  ;;  %v5283_v63 = vadd.f32 %v4950_v2, %v5187_v56 }
 0x5fb   :  { %v5231_v3 = vsel %vm1555_vm6, %v6180_v4, %v6179_v61  ;;  %6186 = vst [vmem:[#allocation2_spill] sm:$0xff] %v5241_v19  ;;  %v2814_v4 = vld [vmem:[%s6016_s11 + $0x4] sm:$0x3]  ;;  %6190 = vst [vmem:[#allocation13_spill] sm:$0xff] %v5253_v52  ;;  %v6192_v19 = vld [vmem:[#allocation7_spill] sm:$0xff]  ;;  %v5275_v8 = vpop.f32.mrf.mxu1  ;;  %v5277_v24 = vpop.f32.mrf.mxu0  ;;  %v1172_v47 = vadd.f32 %v6197_v39, %v5167_v5  ;;  %v1178_v43 = vadd.f32 %v6201_v0, %v5167_v5 }
 0x5fc   :  { %v5262_v31 = vsel %vm1555_vm6, %v6192_v19, %v6191_v36  ;;  %6193 = vst [vmem:[#allocation3_spill] sm:$0xff] %v5264_v25  ;;  %v6194_v52 = vld [vmem:[#allocation18_spill] sm:$0xff]  ;;  %6195 = vst [vmem:[#allocation5_spill] sm:$0xff] %v5279_v23  ;;  %v5287_v28 = vrot.slane %v2814_v4, %v1031_v54  ;;  %v6200_v19 = vld [vmem:[#allocation20_spill] sm:$0xff]  ;;  %v5301_v2 = vrot.slane %v2814_v4, %v1035_v16 }
 0x5fd   :  { %v1168_v37 = vadd.f32 %v6194_v52, %v5172_v12  ;;  %6196 = vst [vmem:[#allocation6_spill] sm:$0xff] %v5283_v63  ;;  %v5293_v52 = vadd.f32 %v4966_v10, %v5202_v40  ;;  %v1174_v25 = vadd.f32 %v6200_v19, %v5172_v12  ;;  %v5299_v23 = vpop.f32.mrf.mxu1  ;;  %v5304_v39 = vmul.f32 %v3773_v45, %v1162_v38  ;;  %v6202_v10 = vld [vmem:[#allocation22_spill] sm:$0xff]  ;;  %v5327_v4 = vpop.f32.mrf.mxu0 }
 0x5fe   :  { %6198 = vst [vmem:[#allocation8_spill] sm:$0xff] %v5287_v28  ;;  %v5306_v54 = vmul.f32 %v1558_v29, %v1166_v15  ;;  %v5310_v63 = vadd.f32 %v4982_v49, %v5187_v56  ;;  %v5319_v0 = vadd.f32 %v4998_v14, %v5202_v40  ;;  %v5323_v45 = vadd.f32 %v5014_v44, %v5187_v56  ;;  %v6203_v29 = vld [vmem:[#allocation23_spill] sm:$0xff]  ;;  %v6206_v14 = vld [vmem:[#allocation25_spill] sm:$0xff] }
 0x5ff   :  { %6199 = vst [vmem:[#allocation16_spill] sm:$0xff] %v5293_v52  ;;  %v1180_v52 = vadd.f32 %v6202_v10, %v5172_v12  ;;  %v5315_v19 = vmul.f32 %v3870_v20, %v1168_v37  ;;  %v1184_v16 = vadd.f32 %v6203_v29, %v5167_v5  ;;  %v5329_v49 = vmul.f32 %v1559_v30, %v1172_v47  ;;  %v6205_v20 = vld [vmem:[#allocation24_spill] sm:$0xff] }
 0x600   :  { %v5333_v38 = vadd.f32 %v5030_v46, %v5202_v40  ;;  %v1186_v15 = vadd.f32 %v6205_v20, %v5172_v12  ;;  %v1190_v37 = vadd.f32 %v6206_v14, %v5167_v5  ;;  %v5342_v44 = vmul.f32 %v3875_v17, %v1174_v25  ;;  %v6208_v46 = vld [vmem:[#allocation26_spill] sm:$0xff]  ;;  %v6209_v17 = vld [vmem:[#allocation27_spill] sm:$0xff] }
 0x601   :  { %6204 = vst [vmem:[#allocation7_spill] sm:$0xff] %v5329_v49  ;;  %v5344_v29 = vmul.f32 %v1560_v6, %v1178_v43  ;;  %v5348_v30 = vadd.f32 %v5046_v32, %v5187_v56  ;;  %v1192_v47 = vadd.f32 %v6208_v46, %v5172_v12  ;;  %v5352_v49 = vpop.f32.mrf.mxu1  ;;  %v5355_v20 = vmul.f32 %v4302_v13, %v1180_v52  ;;  %v6212_v52 = vld [vmem:[#allocation28_spill] sm:$0xff] }
 0x602   :  { %6207 = vst [vmem:[#allocation18_spill] sm:$0xff] %v5342_v44  ;;  %v5359_v14 = vadd.f32 %v5062_v51, %v5202_v40  ;;  %v1196_v6 = vadd.f32 %v6209_v17, %v5167_v5  ;;  %v1198_v25 = vadd.f32 %v4852_v1, %v5172_v12  ;;  %v5365_v32 = vmul.f32 %v1561_v26, %v1184_v16  ;;  %v5377_v44 = vpop.f32.mrf.mxu0 }
 0x603   :  { %v5369_v43 = vadd.f32 %v5078_v62, %v5187_v56  ;;  %v5373_v13 = vadd.f32 %v5094_v9, %v5202_v40  ;;  %v1202_v51 = vadd.f32 %v6212_v52, %v5167_v5  ;;  %v1772_v46 = vpop.f32.mrf.mxu1  ;;  %v5380_v17 = vmul.f32 %v4306_v41, %v1186_v15 }
 0x604   :  { %6210 = vst [vmem:[#allocation19_spill] sm:$0xff] %v5365_v32  ;;  %v5382_v1 = vmul.f32 %v1562_v58, %v1190_v37  ;;  %v5386_v26 = vadd.f32 %v5110_v57, %v5187_v56  ;;  %v1204_v62 = vadd.f32 %v4856_v48, %v5172_v12  ;;  %v5395_v52 = vmul.f32 %v4304_v42, %v1192_v47  ;;  %v6215_v57 = vld [vmem:[#allocation29_spill] sm:$0xff] }
 0x605   :  { %6211 = vst [vmem:[#allocation20_spill] sm:$0xff] %v5369_v43  ;;  %6213 = vst [vmem:[#allocation21_spill] sm:$0xff] %v5380_v17  ;;  %v5399_v41 = vadd.f32 %v5120_v11, %v5202_v40  ;;  %v5403_v58 = vadd.f32 %v5130_v53, %v5187_v56  ;;  %v1208_v15 = vadd.f32 %v6215_v57, %v5167_v5  ;;  %v6219_v11 = vld [vmem:[#allocation30_spill] sm:$0xff] }
 0x606   :  { %v5408_v48 = vmul.f32 %v5216_v18, %v1196_v6  ;;  %v5411_v37 = vmul.f32 %v4312_v35, %v1198_v25  ;;  %v5415_v42 = vadd.f32 %v5134_v21, %v5202_v40  ;;  %v1210_v47 = vadd.f32 %v6219_v11, %v5172_v12  ;;  %v1774_v6 = vpop.f32.mrf.mxu1  ;;  %v5432_v21 = vpop.f32.mrf.mxu0  ;;  %v6225_v11 = vld [vmem:[#allocation32_spill] sm:$0xff] }
 0x607   :  { %6214 = vst [vmem:[#allocation22_spill] sm:$0xff] %v5403_v58  ;;  %v5420_v32 = vmul.f32 %v5221_v7, %v1202_v51  ;;  %v5424_v53 = vadd.f32 %v5138_v27, %v5187_v56  ;;  %v5428_v18 = vadd.f32 %v5142_v50, %v5202_v40  ;;  %v1214_v35 = vadd.f32 %v4862_v60, %v5167_v5  ;;  %v6222_v7 = vld [vmem:[#allocation90_spill] sm:$0xff]  ;;  %v6224_v27 = vld [vmem:[#allocation31_spill] sm:$0xff] }
 0x608   :  { %6216 = vst [vmem:[#allocation23_spill] sm:$0xff] %v5408_v48  ;;  %6217 = vst [vmem:[#allocation24_spill] sm:$0xff] %v5411_v37  ;;  %v5435_v25 = vmul.f32 %v6175_v59, %v1204_v62  ;;  %v5439_v51 = vadd.f32 %v6222_v7, %v5187_v56  ;;  %v1216_v57 = vadd.f32 %v6224_v27, %v5172_v12  ;;  %v6227_v59 = vld [vmem:[#allocation92_spill] sm:$0xff]  ;;  %v6229_v7 = vld [vmem:[#allocation33_spill] sm:$0xff] }
 0x609   :  { %6218 = vst [vmem:[#allocation25_spill] sm:$0xff] %v5415_v42  ;;  %6220 = vst [vmem:[#allocation26_spill] sm:$0xff] %v5420_v32  ;;  %v1220_v50 = vadd.f32 %v6225_v11, %v5167_v5  ;;  %v5450_v60 = vmul.f32 %v5231_v3, %v1208_v15  ;;  %v5454_v62 = vadd.f32 %v6227_v59, %v5202_v40  ;;  %v6230_v58 = vld [vmem:[#allocation34_spill] sm:$0xff]  ;;  %v6234_v3 = vld [vmem:[#allocation36_spill] sm:$0xff] }
 0x60a   :  { %6221 = vst [vmem:[#allocation27_spill] sm:$0xff] %v5435_v25  ;;  %6223 = vst [vmem:[#allocation28_spill] sm:$0xff] %v5439_v51  ;;  %v1222_v51 = vadd.f32 %v6229_v7, %v5172_v12  ;;  %v1226_v27 = vadd.f32 %v6230_v58, %v5167_v5  ;;  %v5461_v32 = vmul.f32 %v6179_v61, %v1210_v47  ;;  %v6232_v11 = vld [vmem:[#allocation94_spill] sm:$0xff]  ;;  %v6238_v58 = vld [vmem:[#allocation96_spill] sm:$0xff] }
 0x60b   :  { %6226 = vst [vmem:[#allocation29_spill] sm:$0xff] %v5450_v60  ;;  %6228 = vst [vmem:[#allocation30_spill] sm:$0xff] %v5454_v62  ;;  %v5465_v42 = vadd.f32 %v6232_v11, %v5187_v56  ;;  %v1228_v15 = vadd.f32 %v6234_v3, %v5172_v12  ;;  %v6235_v60 = vld [vmem:[#allocation38_spill] sm:$0xff]  ;;  %v5471_v62 = vpop.f32.mrf.mxu1  ;;  %v5474_v7 = vmul.f32 %v5226_v33, %v1214_v35  ;;  %v6240_v61 = vld [vmem:[#allocation41_spill] sm:$0xff] }
 0x60c   :  { %6231 = vst [vmem:[#allocation90_spill] sm:$0xff] %v5461_v32  ;;  %v1232_v59 = vadd.f32 %v6235_v60, %v5167_v5  ;;  %6236 = vst [vmem:[#allocation32_spill] sm:$0xff] %v5471_v62  ;;  %v5478_v17 = vadd.f32 %v6238_v58, %v5202_v40  ;;  %v1234_v47 = vadd.f32 %v6240_v61, %v5172_v12  ;;  %v6241_v11 = vld [vmem:[#allocation42_spill] sm:$0xff]  ;;  %v6243_v3 = vld [vmem:[#allocation11_spill] sm:$0xff] }
 0x60d   :  { %6233 = vst [vmem:[#allocation31_spill] sm:$0xff] %v5465_v42  ;;  %6237 = vst [vmem:[#allocation92_spill] sm:$0xff] %v5474_v7  ;;  %v1238_v32 = vadd.f32 %v6241_v11, %v5167_v5  ;;  %v5484_v42 = vpop.f32.mrf.mxu0  ;;  %v5487_v43 = vmul.f32 %v6243_v3, %v1216_v57  ;;  %v6244_v60 = vld [vmem:[#allocation10_spill] sm:$0xff]  ;;  %v6248_v58 = vld [vmem:[#allocation45_spill] sm:$0xff] }
 0x60e   :  { %6239 = vst [vmem:[#allocation33_spill] sm:$0xff] %v5478_v17  ;;  %6242 = vst [vmem:[#allocation34_spill] sm:$0xff] %v5484_v42  ;;  %v5490_v62 = vmul.f32 %v6244_v60, %v1220_v50  ;;  %v6246_v33 = vld [vmem:[#allocation98_spill] sm:$0xff]  ;;  %v1240_v7 = vadd.f32 %v6248_v58, %v5172_v12  ;;  %v6249_v11 = vld [vmem:[#allocation15_spill] sm:$0xff] }
 0x60f   :  { %v5494_v35 = vadd.f32 %v6246_v33, %v5187_v56  ;;  %v5503_v25 = vmul.f32 %v6249_v11, %v1222_v51  ;;  %v6251_v57 = vld [vmem:[#allocation100_spill] sm:$0xff]  ;;  %v6253_v50 = vld [vmem:[#allocation2_spill] sm:$0xff]  ;;  %v5524_v51 = vmul.f32 %v5262_v31, %v1232_v59  ;;  %v5528_v11 = vadd.f32 %v5299_v23, %v5187_v56  ;;  %v5543_v31 = vpop.f32.mrf.mxu0 }
 0x610   :  { %6245 = vst [vmem:[#allocation94_spill] sm:$0xff] %v5490_v62  ;;  %v5507_v3 = vadd.f32 %v6251_v57, %v5202_v40  ;;  %v5510_v60 = vmul.f32 %v6253_v50, %v1226_v27  ;;  %v6255_v33 = vld [vmem:[#allocation102_spill] sm:$0xff]  ;;  %v6257_v62 = vld [vmem:[#allocation12_spill] sm:$0xff]  ;;  %v1780_v27 = vpop.f32.mrf.mxu1  ;;  %v5531_v57 = vmul.f32 %v6191_v36, %v1234_v47  ;;  %v5535_v50 = vadd.f32 %v5352_v49, %v5202_v40  ;;  %v6273_v49 = vld [vmem:[#allocation51_spill] sm:$0xff] }
 0x611   :  { %6247 = vst [vmem:[#allocation36_spill] sm:$0xff] %v5494_v35  ;;  %6250 = vst [vmem:[#allocation38_spill] sm:$0xff] %v5503_v25  ;;  %v5514_v42 = vadd.f32 %v6255_v33, %v5187_v56  ;;  %v5517_v58 = vmul.f32 %v6257_v62, %v1228_v15  ;;  %v5521_v35 = vadd.f32 %v5275_v8, %v5202_v40  ;;  %v6264_v62 = vld [vmem:[#allocation4_spill] sm:$0xff]  ;;  %v6268_v59 = vld [vmem:[#allocation14_spill] sm:$0xff] }
 0x612   :  { %6252 = vst [vmem:[#allocation96_spill] sm:$0xff] %v5507_v3  ;;  %6254 = vst [vmem:[#allocation41_spill] sm:$0xff] %v5510_v60  ;;  %v5538_v15 = vmul.f32 %v6264_v62, %v1238_v32  ;;  %v5541_v8 = vadd.f32 %v1772_v46, %v5187_v56  ;;  %v5546_v33 = vmul.f32 %v6268_v59, %v1240_v7  ;;  %v6271_v36 = vld [vmem:[#allocation48_spill] sm:$0xff]  ;;  %v6276_v7 = vld [vmem:[#allocation54_spill] sm:$0xff] }
 0x613   :  { %6256 = vst [vmem:[#allocation42_spill] sm:$0xff] %v5514_v42  ;;  %6258 = vst [vmem:[#allocation11_spill] sm:$0xff] %v5517_v58  ;;  %v5549_v23 = vadd.f32 %v1774_v6, %v5202_v40  ;;  %v5553_v47 = vadd.f32 %v6271_v36, %v5167_v5  ;;  %v5564_v62 = vadd.f32 %v1780_v27, %v5202_v40  ;;  %v6277_v6 = vld [vmem:[#allocation57_spill] sm:$0xff]  ;;  %v6278_v5 = vld [vmem:[#allocation60_spill] sm:$0xff] }
 0x614   :  { %6259 = vst [vmem:[#allocation10_spill] sm:$0xff] %v5521_v35  ;;  %6260 = vst [vmem:[#allocation98_spill] sm:$0xff] %v5524_v51  ;;  %v5557_v51 = vadd.f32 %v6273_v49, %v5172_v12  ;;  %v5568_v59 = vadd.f32 %v6276_v7, %v5287_v28  ;;  %v5574_v36 = vadd.f32 %v6278_v5, %v5287_v28  ;;  %v6279_v12 = vld [vmem:[#allocation63_spill] sm:$0xff]  ;;  %v6281_v40 = vld [vmem:[#allocation69_spill] sm:$0xff] }
 0x615   :  { %6261 = vst [vmem:[#allocation45_spill] sm:$0xff] %v5528_v11  ;;  %6262 = vst [vmem:[#allocation15_spill] sm:$0xff] %v5531_v57  ;;  %v2238_v57 = vadd.f32 %v6277_v6, %v5301_v2  ;;  %v5578_v49 = vadd.f32 %v6279_v12, %v5301_v2  ;;  %v5586_v27 = vadd.f32 %v6281_v40, %v5301_v2  ;;  %v6282_v7 = vld [vmem:[#allocation72_spill] sm:$0xff]  ;;  %v6283_v6 = vld [vmem:[#allocation75_spill] sm:$0xff] }
 0x616   :  { %6263 = vst [vmem:[#allocation100_spill] sm:$0xff] %v5535_v50  ;;  %6265 = vst [vmem:[#allocation2_spill] sm:$0xff] %v5538_v15  ;;  %v5594_v5 = vadd.f32 %v6283_v6, %v5301_v2  ;;  %v6284_v56 = vld [vmem:[#allocation78_spill] sm:$0xff]  ;;  %v6286_v11 = vld [vmem:[#allocation83_spill] sm:$0xff]  ;;  %v2319_v50 = vpop.f32.mrf.mxu0 }
 0x617   :  { %6266 = vst [vmem:[#allocation102_spill] sm:$0xff] %v5541_v8  ;;  %6267 = vst [vmem:[#allocation12_spill] sm:$0xff] %v5543_v31  ;;  %v5598_v12 = vadd.f32 %v6284_v56, %v5287_v28  ;;  %v6285_v31 = vld [vmem:[#allocation81_spill] sm:$0xff]  ;;  %v5606_v40 = vadd.f32 %v6286_v11, %v5287_v28  ;;  %v6290_v6 = vld [vmem:[#allocation86_spill] sm:$0xff] }
 0x618   :  { %6269 = vst [vmem:[#allocation4_spill] sm:$0xff] %v5546_v33  ;;  %6270 = vst [vmem:[#allocation14_spill] sm:$0xff] %v5549_v23  ;;  %v5614_v25 = vadd.f32 %v6290_v6, %v5287_v28  ;;  %v6291_v56 = vld [vmem:[#allocation87_spill] sm:$0xff]  ;;  %v6294_v23 = vld [vmem:[#allocation88_spill] sm:$0xff] }
 0x619   :  { %v5289_v55 = vpop.permute.xlu0 %2023  ;;  %6272 = vst [vmem:[#allocation48_spill] sm:$0xff] %v5553_v47  ;;  %6274 = vst [vmem:[#allocation51_spill] sm:$0xff] %v5557_v51  ;;  %v6280_v47 = vld [vmem:[#allocation66_spill] sm:$0xff]  ;;  %v5618_v33 = vadd.f32 %v6291_v56, %v5301_v2  ;;  %v6296_v60 = vld [vmem:[#allocation89_spill] sm:$0xff] }
 0x61a   :  { %6275 = vst [vmem:[#allocation104_spill] sm:$0xff] %v5564_v62  ;;  %v5582_v51 = vadd.f32 %v6280_v47, %v5287_v28  ;;  %v5590_v62 = vadd.f32 %v6282_v7, %v5287_v28  ;;  %v5602_v47 = vadd.f32 %v6285_v31, %v5301_v2  ;;  %6287 = vst [vmem:[#allocation54_spill] sm:$0xff] %v5606_v40  ;;  %v6288_v7 = vld [vmem:[#allocation85_spill] sm:$0xff]  ;;  %v6292_v31 = vld [vmem:[#allocation35_spill] sm:$0xff] }
 0x61b   :  { %v5610_v15 = vadd.f32 %v6288_v7, %v5301_v2  ;;  %v2071_v8 = vsel %vm1555_vm6, %v6292_v31, %v5289_v55  ;;  %v5629_v7 = vadd.f32 %v6294_v23, %v5287_v28  ;;  %v5633_v6 = vadd.f32 %v6296_v60, %v5301_v2  ;;  %v6298_v58 = vld [vmem:[#allocation91_spill] sm:$0xff]  ;;  %v6300_v40 = vld [vmem:[#allocation37_spill] sm:$0xff] }
 0x61c   :  { %v5637_v56 = vadd.f32 %v6298_v58, %v5287_v28  ;;  %v6301_v42 = vld [vmem:[#allocation93_spill] sm:$0xff]  ;;  %v2088_v58 = vmul.f32 %v5289_v55, %v5271_v22  ;;  %v6312_v55 = vld [vmem:[#allocation39_spill] sm:$0xff] }
 0x61d   :  { %v5339_v10 = vpop.permute.xlu0 %2027  ;;  %6289 = vst [vmem:[#allocation57_spill] sm:$0xff] %v5610_v15  ;;  %6295 = vst [vmem:[#allocation63_spill] sm:$0xff] %v5629_v7  ;;  %v5644_v15 = vadd.f32 %v6301_v42, %v5301_v2  ;;  %v6305_v7 = vld [vmem:[#allocation97_spill] sm:$0xff]  ;;  %v5666_v42 = vadd.f32 %v5277_v24, %v5287_v28  ;;  %v5683_v24 = vadd.f32 %v5327_v4, %v5301_v2 }
 0x61e   :  { %6297 = vst [vmem:[#allocation66_spill] sm:$0xff] %v5633_v6  ;;  %6299 = vst [vmem:[#allocation69_spill] sm:$0xff] %v5637_v56  ;;  %v2073_v31 = vsel %vm1555_vm6, %v6300_v40, %v5339_v10  ;;  %v5652_v60 = vadd.f32 %v6305_v7, %v5301_v2  ;;  %v6307_v6 = vld [vmem:[#allocation99_spill] sm:$0xff]  ;;  %v2092_v22 = vmul.f32 %v5339_v10, %v5319_v0  ;;  %v6314_v10 = vld [vmem:[#allocation40_spill] sm:$0xff] }
 0x61f   :  { %6302 = vst [vmem:[#allocation72_spill] sm:$0xff] %v5644_v15  ;;  %v5658_v56 = vadd.f32 %v6307_v6, %v5287_v28  ;;  %v6309_v40 = vld [vmem:[#allocation103_spill] sm:$0xff]  ;;  %6310 = vst [vmem:[#allocation83_spill] sm:$0xff] %v5666_v42  ;;  %v2091_v7 = vmul.f32 %v2073_v31, %v5310_v63  ;;  %v5687_v63 = vadd.f32 %v5377_v44, %v5287_v28  ;;  %v6315_v31 = vld [vmem:[#allocation16_spill] sm:$0xff] }
 0x620   :  { %6306 = vst [vmem:[#allocation78_spill] sm:$0xff] %v5652_v60  ;;  %v5662_v35 = vadd.f32 %v6309_v40, %v5301_v2  ;;  %6313 = vst [vmem:[#allocation85_spill] sm:$0xff] %v5683_v24  ;;  %v5691_v0 = vadd.f32 %v5432_v21, %v5301_v2  ;;  %v2120_v4 = vadd.f32 %v2088_v58, %v5267_v34  ;;  %v6317_v42 = vld [vmem:[#allocation43_spill] sm:$0xff]  ;;  %v6319_v58 = vld [vmem:[#allocation6_spill] sm:$0xff] }
 0x621   :  { %v5390_v9 = vpop.permute.xlu0 %2031  ;;  %6308 = vst [vmem:[#allocation81_spill] sm:$0xff] %v5658_v56 }
 0x622   :  { %v5392_v16 = vpop.permute.xlu1 %2025  ;;  %v2075_v6 = vsel %vm1555_vm6, %v6312_v55, %v5390_v9  ;;  %v2096_v40 = vmul.f32 %v5390_v9, %v5359_v14  ;;  %v5697_v9 = vadd.f32 %v2319_v50, %v5287_v28 }
 0x623   :  { %v2072_v14 = vsel %vm1555_vm6, %v6314_v10, %v5392_v16  ;;  %v2090_v44 = vmul.f32 %v5392_v16, %v6315_v31  ;;  %v2095_v21 = vmul.f32 %v2075_v6, %v5348_v30  ;;  %v6318_v10 = vld [vmem:[#allocation44_spill] sm:$0xff]  ;;  %v6320_v6 = vld [vmem:[#allocation58_spill] sm:$0xff] }
 0x624   :  { %v2128_v34 = vadd.f32 %v2096_v40, %v5355_v20  ;;  %v2089_v16 = vmul.f32 %v2072_v14, %v6319_v58  ;;  %v6321_v40 = vld [vmem:[#allocation46_spill] sm:$0xff]  ;;  %v6327_v58 = vld [vmem:[#allocation27_spill] sm:$0xff] }
 0x625   :  { %v5445_v48 = vpop.permute.xlu0 %2035 }
 0x626   :  { %v5447_v37 = vpop.permute.xlu1 %2029  ;;  %v2077_v24 = vsel %vm1555_vm6, %v6317_v42, %v5445_v48  ;;  %v2100_v30 = vmul.f32 %v5445_v48, %v5399_v41 }
 0x627   :  { %v2074_v50 = vsel %vm1555_vm6, %v6318_v10, %v5447_v37  ;;  %v2094_v42 = vmul.f32 %v5447_v37, %v5333_v38  ;;  %v6322_v37 = vld [vmem:[#allocation5_spill] sm:$0xff] }
 0x628   :  { %v2093_v20 = vmul.f32 %v2074_v50, %v5323_v45  ;;  %v2132_v14 = vadd.f32 %v2100_v30, %v5395_v52 }
 0x629   :  { %v5498_v17 = vpop.permute.xlu0 %2039 }
 0x62a   :  { %v5500_v61 = vpop.permute.xlu1 %2033  ;;  %v2079_v41 = vsel %vm1555_vm6, %v6321_v40, %v5498_v17  ;;  %v2104_v38 = vmul.f32 %v5498_v17, %v5428_v18  ;;  %v6325_v17 = vld [vmem:[#allocation61_spill] sm:$0xff] }
 0x62b   :  { %v2098_v45 = vmul.f32 %v5500_v61, %v5373_v13  ;;  %v2103_v50 = vmul.f32 %v2079_v41, %v5424_v53  ;;  %v6331_v53 = vld [vmem:[#allocation33_spill] sm:$0xff]  ;;  %v6333_v41 = vld [vmem:[#allocation64_spill] sm:$0xff] }
 0x62d   :  { %v5559_v32 = vpop.permute.xlu0 %2043 }
 0x62e   :  { %v5561_v46 = vpop.permute.xlu1 %2037 }
 0x631   :  { %v5623_v3 = vpop.permute.xlu0 %2047 }
 0x632   :  { %v5625_v11 = vpop.permute.xlu1 %2041 }
 0x633   :  { %6293 = vst [vmem:[#allocation60_spill] sm:$0xff] %v5625_v11  ;;  %v6303_v11 = vld [vmem:[#allocation95_spill] sm:$0xff] }
 0x634   :  { %v5648_v23 = vadd.f32 %v6303_v11, %v5287_v28  ;;  %v2321_v11 = vpop.f32.mrf.mxu0  ;;  %v2124_v28 = vadd.f32 %v2092_v22, %v5315_v19  ;;  %v2099_v19 = vmul.f32 %v2077_v24, %v5386_v26  ;;  %v2127_v22 = vadd.f32 %v2095_v21, %v5344_v29 }
 0x635   :  { %v5677_v60 = vpop.permute.xlu0 %2051 }
 0x636   :  { %6304 = vst [vmem:[#allocation75_spill] sm:$0xff] %v5648_v23  ;;  %v6311_v23 = vld [vmem:[#allocation13_spill] sm:$0xff]  ;;  %v5679_v56 = vpop.permute.xlu1 %2045  ;;  %v2131_v13 = vadd.f32 %v2099_v19, %v5382_v1  ;;  %v6332_v19 = vld [vmem:[#allocation50_spill] sm:$0xff] }
 0x637   :  { %v2087_v15 = vmul.f32 %v2071_v8, %v6311_v23  ;;  %v5700_v8 = vadd.f32 %v2321_v11, %v5301_v2  ;;  %v6316_v23 = vld [vmem:[#allocation3_spill] sm:$0xff]  ;;  %v2123_v11 = vadd.f32 %v2091_v7, %v5306_v54  ;;  %v2122_v54 = vadd.f32 %v2090_v44, %v5304_v39  ;;  %v6324_v44 = vld [vmem:[#allocation18_spill] sm:$0xff] }
 0x638   :  { %v6323_v39 = vld [vmem:[#allocation47_spill] sm:$0xff]  ;;  %v2126_v21 = vadd.f32 %v2094_v42, %v6324_v44  ;;  %v6329_v42 = vld [vmem:[#allocation49_spill] sm:$0xff]  ;;  %v6337_v44 = vld [vmem:[#allocation26_spill] sm:$0xff] }
 0x639   :  { %v2119_v55 = vadd.f32 %v2087_v15, %v6316_v23  ;;  %v2571_v31 = vpop.permute.xlu0 %2570  ;;  %v2076_v26 = vsel %vm1555_vm6, %v6323_v39, %v5500_v61  ;;  %v6326_v61 = vld [vmem:[#allocation7_spill] sm:$0xff] }
 0x63a   :  { %v5717_v15 = vpop.permute.xlu1 %2049  ;;  %v2618_v23 = vsel %vm1555_vm6, %v6320_v6, %v2571_v31  ;;  %v2635_v10 = vmul.f32 %v2571_v31, %v2238_v57  ;;  %v2121_v57 = vadd.f32 %v2089_v16, %v6322_v37  ;;  %v5760_v16 = vadd.f32 %v2104_v38, %v6327_v58  ;;  %v6328_v31 = vld [vmem:[#allocation20_spill] sm:$0xff]  ;;  %v6330_v6 = vld [vmem:[#allocation21_spill] sm:$0xff]  ;;  %v6335_v39 = vld [vmem:[#allocation31_spill] sm:$0xff] }
 0x63b   :  { %v2634_v7 = vmul.f32 %v2618_v23, %v5568_v59  ;;  %v2097_v30 = vmul.f32 %v2076_v26, %v6328_v31  ;;  %v5767_v23 = vadd.f32 %v2098_v45, %v6330_v6 }
 0x63c   :  { %v2667_v48 = vadd.f32 %v2635_v10, %v2120_v4  ;;  %v2108_v10 = vmul.f32 %v5559_v32, %v6331_v53  ;;  %v6344_v53 = vld [vmem:[#allocation52_spill] sm:$0xff] }
 0x63d   :  { %v2666_v59 = vadd.f32 %v2634_v7, %v2119_v55  ;;  %v2575_v24 = vpop.permute.xlu0 %2574  ;;  %v2125_v55 = vadd.f32 %v2093_v20, %v6326_v61 }
 0x63e   :  { %v5741_v29 = vpop.permute.xlu1 %2053  ;;  %2699 = vst.msk [vmem:[%s6017_s12 + $0x8] sm:$0xff] %vm265_vm2, %v2667_v48  ;;  %v2620_v18 = vsel %vm1555_vm6, %v6325_v17, %v2575_v24  ;;  %v2639_v4 = vmul.f32 %v2575_v24, %v5586_v27  ;;  %v2081_v27 = vsel %vm1555_vm6, %v6329_v42, %v5559_v32  ;;  %v6334_v48 = vld [vmem:[#allocation65_spill] sm:$0xff]  ;;  %v6338_v17 = vld [vmem:[#allocation19_spill] sm:$0xff] }
 0x63f   :  { %2698 = vst [vmem:[%s6017_s12] sm:$0xff] %v2666_v59  ;;  %v2638_v52 = vmul.f32 %v2620_v18, %v5582_v51  ;;  %v2078_v51 = vsel %vm1555_vm6, %v6332_v19, %v5561_v46  ;;  %v2107_v26 = vmul.f32 %v2081_v27, %v6335_v39  ;;  %v2129_v18 = vadd.f32 %v2097_v30, %v6338_v17  ;;  %v6343_v30 = vld [vmem:[#allocation24_spill] sm:$0xff]  ;;  %v6351_v39 = vld [vmem:[#allocation71_spill] sm:$0xff] }
 0x640   :  { %v2671_v1 = vadd.f32 %v2639_v4, %v2124_v28 }
 0x641   :  { %v2670_v20 = vadd.f32 %v2638_v52, %v2123_v11  ;;  %v2579_v7 = vpop.permute.xlu0 %2578  ;;  %v6336_v11 = vld [vmem:[#allocation25_spill] sm:$0xff]  ;;  %v6339_v52 = vld [vmem:[#allocation22_spill] sm:$0xff] }
 0x642   :  { %v2573_v40 = vpop.permute.xlu1 %2572  ;;  %2703 = vst.msk [vmem:[%s6017_s12 + $0x28] sm:$0xff] %vm265_vm2, %v2671_v1  ;;  %v2622_v28 = vsel %vm1555_vm6, %v6333_v41, %v2579_v7  ;;  %v2643_v38 = vmul.f32 %v2579_v7, %v5602_v47  ;;  %v2102_v45 = vmul.f32 %v5561_v46, %v6336_v11  ;;  %v2135_v47 = vadd.f32 %v2103_v50, %v6337_v44  ;;  %v6346_v7 = vld [vmem:[#allocation60_spill] sm:$0xff]  ;;  %v6353_v11 = vld [vmem:[#allocation23_spill] sm:$0xff]  ;;  %v6355_v44 = vld [vmem:[#allocation69_spill] sm:$0xff] }
 0x643   :  { %v2619_v32 = vsel %vm1555_vm6, %v6334_v48, %v2573_v40  ;;  %v2637_v37 = vmul.f32 %v2573_v40, %v5578_v49  ;;  %2702 = vst [vmem:[%s6017_s12 + $0x20] sm:$0xff] %v2670_v20  ;;  %v2642_v59 = vmul.f32 %v2622_v28, %v5598_v12  ;;  %v5795_v49 = vadd.f32 %v2108_v10, %v5487_v43  ;;  %v6345_v10 = vld [vmem:[#allocation10_spill] sm:$0xff]  ;;  %v6347_v40 = vld [vmem:[#allocation53_spill] sm:$0xff] }
 0x644   :  { %v2636_v24 = vmul.f32 %v2619_v32, %v5574_v36  ;;  %v2675_v4 = vadd.f32 %v2643_v38, %v2128_v34  ;;  %v2101_v58 = vmul.f32 %v2078_v51, %v6339_v52  ;;  %v6340_v36 = vld [vmem:[#allocation67_spill] sm:$0xff]  ;;  %v6341_v34 = vld [vmem:[#allocation68_spill] sm:$0xff]  ;;  %v2134_v1 = vadd.f32 %v2102_v45, %v6343_v30  ;;  %v6348_v28 = vld [vmem:[#allocation30_spill] sm:$0xff] }
 0x645   :  { %v2669_v61 = vadd.f32 %v2637_v37, %v2122_v54  ;;  %v2674_v46 = vadd.f32 %v2642_v59, %v2127_v22  ;;  %v2583_v42 = vpop.permute.xlu0 %2582  ;;  %v2112_v19 = vmul.f32 %v5623_v3, %v6345_v10  ;;  %v2080_v41 = vsel %vm1555_vm6, %v6347_v40, %v6346_v7  ;;  %v6354_v59 = vld [vmem:[#allocation42_spill] sm:$0xff]  ;;  %v6357_v52 = vld [vmem:[#allocation11_spill] sm:$0xff] }
 0x646   :  { %v2668_v31 = vadd.f32 %v2636_v24, %v2121_v57  ;;  %v2577_v27 = vpop.permute.xlu1 %2576  ;;  %2707 = vst.msk [vmem:[%s6017_s12 + $0x48] sm:$0xff] %vm265_vm2, %v2675_v4  ;;  %v2624_v43 = vsel %vm1555_vm6, %v6340_v36, %v2583_v42  ;;  %v2647_v12 = vmul.f32 %v2583_v42, %v5618_v33  ;;  %v6342_v57 = vld [vmem:[#allocation92_spill] sm:$0xff]  ;;  %v2106_v38 = vmul.f32 %v6346_v7, %v6348_v28  ;;  %v6356_v4 = vld [vmem:[#allocation54_spill] sm:$0xff]  ;;  %v6367_v7 = vld [vmem:[#allocation63_spill] sm:$0xff] }
 0x647   :  { %2701 = vst.msk [vmem:[%s6017_s12 + $0x18] sm:$0xff] %vm265_vm2, %v2669_v61  ;;  %v2621_v54 = vsel %vm1555_vm6, %v6341_v34, %v2577_v27  ;;  %v2641_v22 = vmul.f32 %v2577_v27, %v5594_v5  ;;  %v2139_v50 = vadd.f32 %v2107_v26, %v6342_v57  ;;  %2706 = vst [vmem:[%s6017_s12 + $0x40] sm:$0xff] %v2674_v46  ;;  %v6359_v36 = vld [vmem:[#allocation90_spill] sm:$0xff] }
 0x648   :  { %2700 = vst [vmem:[%s6017_s12 + $0x10] sm:$0xff] %v2668_v31  ;;  %v2646_v6 = vmul.f32 %v2624_v43, %v5614_v25  ;;  %v2640_v33 = vmul.f32 %v2621_v54, %v5590_v62  ;;  %v2083_v5 = vsel %vm1555_vm6, %v6344_v53, %v5623_v3  ;;  %v2679_v51 = vadd.f32 %v2647_v12, %v2132_v14  ;;  %v6349_v3 = vld [vmem:[#allocation70_spill] sm:$0xff]  ;;  %v6358_v31 = vld [vmem:[#allocation28_spill] sm:$0xff]  ;;  %v6360_v12 = vld [vmem:[#allocation55_spill] sm:$0xff] }
 0x649   :  { %v2673_v20 = vadd.f32 %v2641_v22, %v2126_v21  ;;  %v2587_v32 = vpop.permute.xlu0 %2586  ;;  %v6350_v21 = vld [vmem:[#allocation72_spill] sm:$0xff]  ;;  %v2133_v45 = vadd.f32 %v2101_v58, %v6353_v11  ;;  %v2111_v24 = vmul.f32 %v2083_v5, %v6354_v59  ;;  %v2144_v46 = vadd.f32 %v2112_v19, %v6357_v52  ;;  %v6364_v5 = vld [vmem:[#allocation41_spill] sm:$0xff]  ;;  %v6365_v19 = vld [vmem:[#allocation14_spill] sm:$0xff] }
 0x64a   :  { %v2678_v48 = vadd.f32 %v2646_v6, %v2131_v13  ;;  %v2672_v25 = vadd.f32 %v2640_v33, %v2125_v55  ;;  %v2581_v62 = vpop.permute.xlu1 %2580  ;;  %2711 = vst.msk [vmem:[%s6017_s12 + $0x68] sm:$0xff] %vm265_vm2, %v2679_v51  ;;  %v2626_v14 = vsel %vm1555_vm6, %v6349_v3, %v2587_v32  ;;  %v2651_v37 = vmul.f32 %v2587_v32, %v6350_v21  ;;  %v6352_v55 = vld [vmem:[#allocation57_spill] sm:$0xff]  ;;  %v6362_v33 = vld [vmem:[#allocation74_spill] sm:$0xff] }
 0x64b   :  { %2705 = vst.msk [vmem:[%s6017_s12 + $0x38] sm:$0xff] %vm265_vm2, %v2673_v20  ;;  %v2623_v13 = vsel %vm1555_vm6, %v6351_v39, %v2581_v62  ;;  %v2645_v26 = vmul.f32 %v2581_v62, %v6352_v55  ;;  %v2650_v17 = vmul.f32 %v2626_v14, %v6355_v44  ;;  %v2105_v42 = vmul.f32 %v2080_v41, %v6358_v31  ;;  %v6366_v20 = vld [vmem:[#allocation81_spill] sm:$0xff]  ;;  %v6368_v41 = vld [vmem:[#allocation56_spill] sm:$0xff]  ;;  %v6371_v3 = vld [vmem:[#allocation102_spill] sm:$0xff] }
 0x64c   :  { %2710 = vst [vmem:[%s6017_s12 + $0x60] sm:$0xff] %v2678_v48  ;;  %2704 = vst [vmem:[%s6017_s12 + $0x30] sm:$0xff] %v2672_v25  ;;  %v2644_v61 = vmul.f32 %v2623_v13, %v6356_v4  ;;  %v2683_v58 = vadd.f32 %v2651_v37, %v5760_v16  ;;  %v2138_v43 = vadd.f32 %v2106_v38, %v6359_v36  ;;  %v6361_v16 = vld [vmem:[#allocation73_spill] sm:$0xff]  ;;  %v6369_v38 = vld [vmem:[#allocation96_spill] sm:$0xff] }
 0x64d   :  { %v2677_v27 = vadd.f32 %v2645_v26, %v5767_v23  ;;  %v2085_v34 = vsel %vm1555_vm6, %v6360_v12, %v5677_v60  ;;  %v2682_v54 = vadd.f32 %v2650_v17, %v2135_v47  ;;  %v2591_v57 = vpop.permute.xlu0 %2590  ;;  %v2143_v10 = vadd.f32 %v2111_v24, %v6364_v5  ;;  %v6370_v32 = vld [vmem:[#allocation29_spill] sm:$0xff]  ;;  %v6374_v26 = vld [vmem:[#allocation78_spill] sm:$0xff]  ;;  %v6376_v24 = vld [vmem:[#allocation36_spill] sm:$0xff] }
 0x64e   :  { %v2676_v22 = vadd.f32 %v2644_v61, %v2129_v18  ;;  %v2585_v30 = vpop.permute.xlu1 %2584  ;;  %2715 = vst.msk [vmem:[%s6017_s12 + $0x88] sm:$0xff] %vm265_vm2, %v2683_v58  ;;  %v2628_v23 = vsel %vm1555_vm6, %v6361_v16, %v2591_v57  ;;  %v2655_v6 = vmul.f32 %v2591_v57, %v5662_v35  ;;  %v6363_v18 = vld [vmem:[#allocation66_spill] sm:$0xff]  ;;  %v2116_v51 = vmul.f32 %v5677_v60, %v6365_v19  ;;  %v6373_v55 = vld [vmem:[#allocation77_spill] sm:$0xff]  ;;  %v2325_v61 = vpop.f32.mrf.mxu0 }
 0x64f   :  { %2709 = vst.msk [vmem:[%s6017_s12 + $0x58] sm:$0xff] %vm265_vm2, %v2677_v27  ;;  %v2625_v47 = vsel %vm1555_vm6, %v6362_v33, %v2585_v30  ;;  %v2649_v53 = vmul.f32 %v2585_v30, %v6363_v18  ;;  %2714 = vst [vmem:[%s6017_s12 + $0x80] sm:$0xff] %v2682_v54  ;;  %v2654_v35 = vmul.f32 %v2628_v23, %v6366_v20  ;;  %v6378_v52 = vld [vmem:[#allocation38_spill] sm:$0xff]  ;;  %v6381_v54 = vld [vmem:[#allocation100_spill] sm:$0xff] }
 0x650   :  { %2708 = vst [vmem:[%s6017_s12 + $0x50] sm:$0xff] %v2676_v22  ;;  %v2648_v40 = vmul.f32 %v2625_v47, %v6367_v7  ;;  %v2082_v28 = vsel %vm1555_vm6, %v6368_v41, %v5679_v56  ;;  %v2110_v48 = vmul.f32 %v5679_v56, %v6369_v38  ;;  %v2687_v60 = vadd.f32 %v2655_v6, %v5795_v49  ;;  %v6372_v56 = vld [vmem:[#allocation76_spill] sm:$0xff]  ;;  %v6380_v12 = vld [vmem:[#allocation2_spill] sm:$0xff]  ;;  %v6384_v33 = vld [vmem:[#allocation85_spill] sm:$0xff] }
 0x651   :  { %v2681_v25 = vadd.f32 %v2649_v53, %v2134_v1  ;;  %v2137_v62 = vadd.f32 %v2105_v42, %v6370_v32  ;;  %v2115_v14 = vmul.f32 %v2085_v34, %v6371_v3  ;;  %v2686_v21 = vadd.f32 %v2654_v35, %v2139_v50  ;;  %v2595_v39 = vpop.permute.xlu0 %2594  ;;  %v6379_v42 = vld [vmem:[#allocation59_spill] sm:$0xff]  ;;  %v6385_v18 = vld [vmem:[#allocation94_spill] sm:$0xff]  ;;  %v6386_v5 = vld [vmem:[#allocation45_spill] sm:$0xff]  ;;  %v2327_v3 = vpop.f32.mrf.mxu0 }
 0x652   :  { %v2680_v37 = vadd.f32 %v2648_v40, %v2133_v45  ;;  %v2589_v13 = vpop.permute.xlu1 %2588  ;;  %2719 = vst.msk [vmem:[%s6017_s12 + $0xa8] sm:$0xff] %vm265_vm2, %v2687_v60  ;;  %v2630_v49 = vsel %vm1555_vm6, %v6372_v56, %v2595_v39  ;;  %v2659_v1 = vmul.f32 %v2595_v39, %v5691_v0  ;;  %v6375_v45 = vld [vmem:[#allocation4_spill] sm:$0xff]  ;;  %v2109_v44 = vmul.f32 %v2082_v28, %v6376_v24  ;;  %v6377_v0 = vld [vmem:[#allocation75_spill] sm:$0xff]  ;;  %v6389_v7 = vld [vmem:[#allocation62_spill] sm:$0xff] }
 0x653   :  { %2713 = vst.msk [vmem:[%s6017_s12 + $0x78] sm:$0xff] %vm265_vm2, %v2681_v25  ;;  %v2627_v50 = vsel %vm1555_vm6, %v6373_v55, %v2589_v13  ;;  %v2653_v11 = vmul.f32 %v2589_v13, %v6374_v26  ;;  %v2148_v59 = vadd.f32 %v2116_v51, %v6375_v45  ;;  %2718 = vst [vmem:[%s6017_s12 + $0xa0] sm:$0xff] %v2686_v21  ;;  %v6388_v20 = vld [vmem:[#allocation12_spill] sm:$0xff]  ;;  %v6390_v38 = vld [vmem:[#allocation101_spill] sm:$0xff] }
 0x654   :  { %2712 = vst [vmem:[%s6017_s12 + $0x70] sm:$0xff] %v2680_v37  ;;  %v2658_v17 = vmul.f32 %v2630_v49, %v5687_v63  ;;  %v2652_v4 = vmul.f32 %v2627_v50, %v6377_v0  ;;  %v2142_v31 = vadd.f32 %v2110_v48, %v6378_v52  ;;  %v2084_v58 = vsel %vm1555_vm6, %v6379_v42, %v5717_v15  ;;  %v6391_v48 = vld [vmem:[#allocation32_spill] sm:$0xff]  ;;  %v6393_v32 = vld [vmem:[#allocation34_spill] sm:$0xff]  ;;  %v6394_v37 = vld [vmem:[#allocation15_spill] sm:$0xff] }
 0x655   :  { %v2691_v27 = vadd.f32 %v2659_v1, %v2144_v46  ;;  %v2685_v36 = vadd.f32 %v2653_v11, %v2138_v43  ;;  %v2147_v34 = vadd.f32 %v2115_v14, %v6380_v12  ;;  %v2114_v22 = vmul.f32 %v5717_v15, %v6381_v54  ;;  %v2599_v16 = vpop.permute.xlu0 %2598  ;;  %v6382_v46 = vld [vmem:[#allocation79_spill] sm:$0xff]  ;;  %v6383_v15 = vld [vmem:[#allocation80_spill] sm:$0xff]  ;;  %v6396_v49 = vld [vmem:[#allocation82_spill] sm:$0xff] }
 0x656   :  { %v2690_v57 = vadd.f32 %v2658_v17, %v2143_v10  ;;  %v2684_v30 = vadd.f32 %v2652_v4, %v2137_v62  ;;  %v2593_v63 = vpop.permute.xlu1 %2592  ;;  %v2632_v43 = vsel %vm1555_vm6, %v6382_v46, %v2599_v16  ;;  %v2663_v23 = vmul.f32 %v2599_v16, %v5700_v8  ;;  %v6387_v8 = vld [vmem:[#allocation83_spill] sm:$0xff]  ;;  %v6392_v25 = vld [vmem:[#allocation8_spill] sm:$0xff]  ;;  %v6397_v50 = vld [vmem:[#allocation98_spill] sm:$0xff] }
 0x657   :  { %2723 = vst.msk [vmem:[%s6017_s12 + $0xc8] sm:$0xff] %vm265_vm2, %v2691_v27  ;;  %2717 = vst.msk [vmem:[%s6017_s12 + $0x98] sm:$0xff] %vm265_vm2, %v2685_v36  ;;  %v2629_v6 = vsel %vm1555_vm6, %v6383_v15, %v2593_v63  ;;  %v2657_v47 = vmul.f32 %v2593_v63, %v6384_v33  ;;  %v2141_v53 = vadd.f32 %v2109_v44, %v6385_v18  ;;  %v6395_v13 = vld [vmem:[#allocation104_spill] sm:$0xff]  ;;  %v6398_v45 = vld [vmem:[#allocation17_spill] sm:$0xff] }
 0x658   :  { %v2113_v10 = vmul.f32 %v2084_v58, %v6386_v5  ;;  %2722 = vst [vmem:[%s6017_s12 + $0xc0] sm:$0xff] %v2690_v57  ;;  %2716 = vst [vmem:[%s6017_s12 + $0x90] sm:$0xff] %v2684_v30  ;;  %v2662_v19 = vmul.f32 %v2632_v43, %v5697_v9  ;;  %v2656_v51 = vmul.f32 %v2629_v6, %v6387_v8  ;;  %v6400_v44 = vld [vmem:[#allocation51_spill] sm:$0xff]  ;;  %v6401_v52 = vld [vmem:[#allocation48_spill] sm:$0xff] }
 0x659   :  { %v2316_v35 = vadd.f32 %v6388_v20, %v5301_v2  ;;  %v2086_v40 = vsel %vm1555_vm6, %v6389_v7, %v5741_v29  ;;  %v2695_v41 = vadd.f32 %v2663_v23, %v2148_v59  ;;  %v2689_v28 = vadd.f32 %v2657_v47, %v2142_v31  ;;  %v6399_v59 = vld [vmem:[#allocation9_spill] sm:$0xff]  ;;  %v6402_v12 = vld [vmem:[#allocation84_spill] sm:$0xff] }
 0x65a   :  { %v1779_v60 = vadd.f32 %v6391_v48, %v6390_v38  ;;  %v2314_v62 = vadd.f32 %v6393_v32, %v6392_v25  ;;  %v2694_v14 = vadd.f32 %v2662_v19, %v2147_v34  ;;  %v2688_v9 = vadd.f32 %v2656_v51, %v2141_v53  ;;  %v2597_v21 = vpop.permute.xlu1 %2596 }
 0x65b   :  { %v2146_v39 = vadd.f32 %v2114_v22, %v6394_v37  ;;  %v2118_v56 = vmul.f32 %v5741_v29, %v6395_v13  ;;  %2727 = vst.msk [vmem:[%s6017_s12 + $0xe8] sm:$0xff] %vm265_vm2, %v2695_v41  ;;  %2721 = vst.msk [vmem:[%s6017_s12 + $0xb8] sm:$0xff] %vm265_vm2, %v2689_v28  ;;  %v2631_v1 = vsel %vm1555_vm6, %v6396_v49, %v2597_v21 }
 0x65c   :  { %v2661_v55 = vmul.f32 %v2597_v21, %v2316_v35  ;;  %v2145_v26 = vadd.f32 %v2113_v10, %v6397_v50  ;;  %v2117_v11 = vmul.f32 %v2086_v40, %v1779_v60  ;;  %2726 = vst [vmem:[%s6017_s12 + $0xe0] sm:$0xff] %v2694_v14  ;;  %2720 = vst [vmem:[%s6017_s12 + $0xb0] sm:$0xff] %v2688_v9 }
 0x65d   :  { %v2660_v29 = vmul.f32 %v2631_v1, %v2314_v62  ;;  %v1571_v24 = vsel %vm1555_vm6, %v6399_v59, %v6398_v45  ;;  %v1603_v17 = vmul.f32 %v6398_v45, %v6400_v44  ;;  %v2328_v0 = vadd.f32 %v2327_v3, %v5301_v2 }
 0x65e   :  { %v2693_v4 = vadd.f32 %v2661_v55, %v2146_v39  ;;  %v1602_v31 = vmul.f32 %v1571_v24, %v6401_v52  ;;  %v2326_v42 = vadd.f32 %v2325_v61, %v6392_v25  ;;  %v2601_v27 = vpop.permute.xlu1 %2600 }
 0x65f   :  { %v2692_v58 = vadd.f32 %v2660_v29, %v2145_v26  ;;  %v2150_v36 = vadd.f32 %v2118_v56, %v1603_v17  ;;  %v2633_v34 = vsel %vm1555_vm6, %v6402_v12, %v2601_v27  ;;  %v2665_v54 = vmul.f32 %v2601_v27, %v2328_v0 }
 0x660   :  { %2725 = vst.msk [vmem:[%s6017_s12 + $0xd8] sm:$0xff] %vm265_vm2, %v2693_v4  ;;  %v2149_v22 = vadd.f32 %v2117_v11, %v1602_v31  ;;  %v2664_v2 = vmul.f32 %v2633_v34, %v2326_v42 }
 0x661   :  { %2724 = vst [vmem:[%s6017_s12 + $0xd0] sm:$0xff] %v2692_v58  ;;  %v2697_v57 = vadd.f32 %v2665_v54, %v2150_v36 }
 0x662   :  { %v2696_v61 = vadd.f32 %v2664_v2, %v2149_v22 }
 0x663   :  { %2729 = vst.msk [vmem:[%s6017_s12 + $0xf8] sm:$0xff] %vm265_vm2, %v2697_v57 }
 0x664   :  { %2728 = vst [vmem:[%s6017_s12 + $0xf0] sm:$0xff] %v2696_v61 }

</bundles_post_ra>
